<compile_context>
chip_gen: v5e
topology: v5e:2x2
jax: 0.10.0
libtpu: 0.0.40
codegen_flags: <defaults>
</compile_context>

<pallas_src>
import jax
import jax.numpy as jnp
import numpy as np
from jax.experimental import pallas as pl
from jax.experimental.pallas import tpu as pltpu

# ---- small, module-consistent hyperparameters -------------------------------
EMB = 32            # embedding_size
LSTM_UNITS = 32     # LSTM_units (== channels of img_feat, == MutanFusion input_dim)
LSTM_LAYERS = 2     # LSTM_layers (kernel specialized to 2 layers)
BATCH = 2
SEQ = 8
VOCAB = 16          # ans_vocab_size
POOL = 4            # global_avg_pool_size == H == W of img_feat
MUTAN_OUT = 1000    # hard-coded self.mutan_out in the PyTorch module
MUTAN_PAD = 1024    # 1000 padded to a lane-aligned 1024 slab
MUTAN_LAYERS = 5    # MutanFusion num_layers default


# -----------------------------------------------------------------------------
# Fused kernel
# -----------------------------------------------------------------------------
def fused_forward_kernel(
    img_ref,                              # (B, H*W, C)          VMEM
    x_ref,                                # (T*B, E) time-major  VMEM
    w_ih0_ref, w_hh0_ref, b0_ref,         # layer 0: (E,4H), (H,4H), (1,4H)
    w_ih1_ref, w_hh1_ref, b1_ref,         # layer 1: (H,4H), (H,4H), (1,4H)
    bq_ref, bv_ref,                       # (1, L*MP) each       VMEM
    b_pred_ref,                           # (1, V)               VMEM
    wqv_hbm,                              # (2U, L*MP) bf16      HBM (pl.ANY)
    wpred_hbm,                            # (MP, V)    bf16      HBM (pl.ANY)
    o_ref,                                # (B, V)               output
    wqv_vmem,                             # VMEM (2U, L*MP) bf16 scratch
    wpred_vmem,                           # VMEM (MP, V)    bf16 scratch
    dma_sem,                              # DMA semaphores (2,)
):
    B = img_ref.shape[0]
    HW = img_ref.shape[1]
    H = w_hh0_ref.shape[0]
    TB = x_ref.shape[0]
    T = TB // B

    # ---- 0) kick off the MUTAN / head weight DMAs; they overlap the LSTM ----
    cp_wqv = pltpu.make_async_copy(wqv_hbm, wqv_vmem, dma_sem.at[0])
    cp_wp = pltpu.make_async_copy(wpred_hbm, wpred_vmem, dma_sem.at[1])
    cp_wqv.start()
    cp_wp.start()

    # ---- 1) global average pool over spatial positions: (B, H*W, C) -> (B, C) ----
    img_feat_sq = jnp.sum(img_ref[...], axis=1) * (1.0 / float(HW))

    # ---- 2) LSTM: input projections hoisted, recurrence unrolled in Python ----
    def lstm_layer(gx, w_hh, collect_seq):
        # gx: (T*B, 4H) value; gate order i, f, g, o as in PyTorch.
        h = jnp.zeros((B, H), jnp.float32)
        c = jnp.zeros((B, H), jnp.float32)
        hs = []
        for t in range(T):                              # T=8, fully unrolled
            gates = gx[t * B:(t + 1) * B, :] + jnp.dot(
                h, w_hh, preferred_element_type=jnp.float32)
            i = jax.nn.sigmoid(gates[:, 0:H])
            f = jax.nn.sigmoid(gates[:, H:2 * H])
            g = jnp.tanh(gates[:, 2 * H:3 * H])
            o = jax.nn.sigmoid(gates[:, 3 * H:4 * H])
            c = f * c + i * g
            h = o * jnp.tanh(c)
            if collect_seq:
                hs.append(h)
        return h, hs

    # Layer 0: one wide matmul for the x-projection, then the serial chain.
    gx0 = jnp.dot(x_ref[...], w_ih0_ref[...],
                  preferred_element_type=jnp.float32) + b0_ref[...]
    _, hs0 = lstm_layer(gx0, w_hh0_ref[...], collect_seq=True)
    h0_seq = jnp.concatenate(hs0, axis=0)               # (T*B, H), register-resident

    # Layer 1: projection over the whole layer-0 hidden sequence, then recur.
    gx1 = jnp.dot(h0_seq, w_ih1_ref[...],
                  preferred_element_type=jnp.float32) + b1_ref[...]
    ques_lstm, _ = lstm_layer(gx1, w_hh1_ref[...], collect_seq=False)
    # Dropout(p=0.3) == identity (eval).

    # ---- 3) MUTAN fusion: merged block-matmul (K = 2U) over 5 layers at once ----
    # LHS = [[img_feat_sq, 0], [0, ques_lstm]]  -> rows 0:B give hq, rows B:2B give hv.
    zer = jnp.zeros((B, H), jnp.float32)
    lhs = jnp.concatenate(
        [jnp.concatenate([img_feat_sq, zer], axis=1),
         jnp.concatenate([zer, ques_lstm], axis=1)], axis=0).astype(jnp.bfloat16)

    cp_wqv.wait()                                        # weights now in VMEM
    res = jnp.dot(lhs, wqv_vmem[...],
                  preferred_element_type=jnp.float32)    # (2B, L*MP) f32
    hq = jnp.tanh(res[0:B, :] + bq_ref[...])             # wq applied to img_feat_sq
    hv = jnp.tanh(res[B:2 * B, :] + bv_ref[...])         # wv applied to ques_lstm
    prod = hq * hv                                       # (B, L*MP)
    acc = prod[:, 0:MUTAN_PAD]
    for l in range(1, MUTAN_LAYERS):                     # lane-aligned 1024 slabs
        acc = acc + prod[:, l * MUTAN_PAD:(l + 1) * MUTAN_PAD]
    iq = jnp.tanh(acc)                                   # (B, MP); padded cols == 0

    # ---- 4) head: signed sqrt -> L2 normalize (dim=1) -> Linear -> Softmax ----
    s = jnp.sqrt(jnp.maximum(iq, 0.0)) - jnp.sqrt(jnp.maximum(-iq, 0.0))
    sumsq = jnp.sum(s * s, axis=1, keepdims=True)
    s = s * jax.lax.rsqrt(jnp.maximum(sumsq, 1e-24))     # == x / max(||x||, 1e-12)

    cp_wp.wait()
    logits = jnp.dot(s.astype(jnp.bfloat16), wpred_vmem[...],
                     preferred_element_type=jnp.float32) + b_pred_ref[...]
    m = jnp.max(logits, axis=1, keepdims=True)
    e = jnp.exp(logits - m)
    o_ref[...] = e * pl.reciprocal(jnp.sum(e, axis=1, keepdims=True), approx=True)


# -----------------------------------------------------------------------------
# Wrapper: one gridless pallas_call; whole working set ~1.5 MB, far under VMEM
# on v5e/v6e/v7x.  Big MUTAN/head weights go in as raw HBM refs (pl.ANY) and are
# double-purposed by the in-kernel async copies above.
# -----------------------------------------------------------------------------
@jax.jit
def mutan_baseline_forward(kparams, ques_embed, img_feat):
    B, Hs, Ws, C = img_feat.shape
    T, E = ques_embed.shape[1], ques_embed.shape[2]
    V = kparams["w_pred"].shape[1]
    img_r = img_feat.reshape(B, Hs * Ws, C)                        # pool over one axis
    x_tm = jnp.transpose(ques_embed, (1, 0, 2)).reshape(T * B, E)  # time-major, flat

    l0, l1 = kparams["lstm"]
    vmem = pl.BlockSpec(memory_space=pltpu.MemorySpace.VMEM)
    hbm = pl.BlockSpec(memory_space=pl.ANY)
    lmp = MUTAN_LAYERS * MUTAN_PAD

    return pl.pallas_call(
        fused_forward_kernel,
        out_shape=jax.ShapeDtypeStruct((B, V), jnp.float32),
        in_specs=[vmem] * 11 + [hbm, hbm],
        out_specs=vmem,
        scratch_shapes=[
            pltpu.VMEM((2 * LSTM_UNITS, lmp), jnp.bfloat16),   # merged MUTAN weight
            pltpu.VMEM((MUTAN_PAD, V), jnp.bfloat16),          # prediction weight
            pltpu.SemaphoreType.DMA((2,)),
        ],
    )(img_r, x_tm,
      l0["w_ih_t"], l0["w_hh_t"], l0["b"],
      l1["w_ih_t"], l1["w_hh_t"], l1["b"],
      kparams["bq_cat"], kparams["bv_cat"], kparams["b_pred"],
      kparams["wqv_cat"], kparams["w_pred"])


# -----------------------------------------------------------------------------
# Host-side weight preparation (one-time): transpose LSTM weights, fold biases,
# pad MUTAN weights 1000 -> 1024, concatenate the 5 layers, stack the wq/wv
# sides into one (2U, 5*1024) bf16 matrix, zero-pad w_pred rows (bf16).
# -----------------------------------------------------------------------------
def prepare_kernel_params(params):
    lstm_k = []
    for layer in params["lstm"]:
        lstm_k.append(dict(
            w_ih_t=jnp.transpose(layer["w_ih"]),
            w_hh_t=jnp.transpose(layer["w_hh"]),
            b=(layer["b_ih"] + layer["b_hh"]).reshape(1, -1),
        ))

    L, U, OUT = params["wq"].shape
    pad = MUTAN_PAD - OUT

    def cat_w(w):            # (L, U, OUT) -> (U, L*MP), zero-padded per layer
        wp = jnp.pad(w, ((0, 0), (0, 0), (0, pad)))
        return jnp.transpose(wp, (1, 0, 2)).reshape(U, L * MUTAN_PAD)

    def cat_b(b):            # (L, OUT) -> (1, L*MP)
        return jnp.pad(b, ((0, 0), (0, pad))).reshape(1, L * MUTAN_PAD)

    # rows 0:U act on img_feat_sq (ques_transformation_layers, "wq");
    # rows U:2U act on ques_lstm (image_transformation_layers, "wv") — this
    # mirrors the swapped-argument call self.mutan(img_feat_sq, ques_lstm).
    wqv = jnp.concatenate([cat_w(params["wq"]), cat_w(params["wv"])], axis=0)

    return dict(
        lstm=lstm_k,
        wqv_cat=wqv.astype(jnp.bfloat16),                      # (2U, L*MP) bf16
        bq_cat=cat_b(params["bq"]), bv_cat=cat_b(params["bv"]),
        w_pred=jnp.pad(params["w_pred"], ((0, pad), (0, 0))).astype(jnp.bfloat16),
        b_pred=params["b_pred"],
    )


# -----------------------------------------------------------------------------
# Pure-JAX reference (f32, unpadded) for the correctness check
# -----------------------------------------------------------------------------
def reference_forward(params, ques_embed, img_feat):
    img_feat_sq = jnp.mean(img_feat, axis=(1, 2))
    x = jnp.transpose(ques_embed, (1, 0, 2))
    for layer in params["lstm"]:
        T, B, _ = x.shape
        H = layer["w_hh"].shape[1]

        def step(carry, x_t, layer=layer):
            h, c = carry
            gates = (x_t @ layer["w_ih"].T + layer["b_ih"]
                     + h @ layer["w_hh"].T + layer["b_hh"])
            i, f, g, o = jnp.split(gates, 4, axis=1)
            c = jax.nn.sigmoid(f) * c + jax.nn.sigmoid(i) * jnp.tanh(g)
            h = jax.nn.sigmoid(o) * jnp.tanh(c)
            return (h, c), h

        init = (jnp.zeros((B, H), jnp.float32), jnp.zeros((B, H), jnp.float32))
        _, hs = jax.lax.scan(step, init, x)
        x = hs
    ques_lstm = x[-1]

    acc = jnp.zeros((ques_lstm.shape[0], MUTAN_OUT), jnp.float32)
    for l in range(MUTAN_LAYERS):
        x_hq = jnp.tanh(img_feat_sq @ params["wq"][l] + params["bq"][l])
        x_hv = jnp.tanh(ques_lstm @ params["wv"][l] + params["bv"][l])
        acc = acc + x_hq * x_hv
    iq = jnp.tanh(acc)

    s = jnp.sqrt(jnp.maximum(iq, 0.0)) - jnp.sqrt(jnp.maximum(-iq, 0.0))
    s = s / jnp.maximum(jnp.linalg.norm(s, axis=1, keepdims=True), 1e-12)
    logits = s @ params["w_pred"] + params["b_pred"]
    return jax.nn.softmax(logits, axis=1)


# -----------------------------------------------------------------------------
# Deterministic parameter init (PyTorch-style uniform bounds, synthetic values)
# -----------------------------------------------------------------------------
def init_params(key):
    keys = iter(jax.random.split(key, 64))

    def unif(shape, bound):
        return jax.random.uniform(next(keys), shape, jnp.float32, -bound, bound)

    lstm = []
    k = 1.0 / np.sqrt(LSTM_UNITS)
    for l in range(LSTM_LAYERS):
        d_in = EMB if l == 0 else LSTM_UNITS
        lstm.append(dict(
            w_ih=unif((4 * LSTM_UNITS, d_in), k),
            w_hh=unif((4 * LSTM_UNITS, LSTM_UNITS), k),
            b_ih=unif((4 * LSTM_UNITS,), k),
            b_hh=unif((4 * LSTM_UNITS,), k),
        ))

    km = 1.0 / np.sqrt(LSTM_UNITS)
    # stored pre-transposed as (L, in, out) so the math is x @ W directly
    wq = unif((MUTAN_LAYERS, LSTM_UNITS, MUTAN_OUT), km)   # ques_transformation_layers
    bq = unif((MUTAN_LAYERS, MUTAN_OUT), km)               #   (applied to img_feat_sq)
    wv = unif((MUTAN_LAYERS, LSTM_UNITS, MUTAN_OUT), km)   # image_transformation_layers
    bv = unif((MUTAN_LAYERS, MUTAN_OUT), km)               #   (applied to ques_lstm)

    kp = 1.0 / np.sqrt(MUTAN_OUT)
    w_pred = unif((MUTAN_OUT, VOCAB), kp)                  # pre-transposed (in, out)
    b_pred = unif((1, VOCAB), kp)

    return dict(lstm=lstm, wv=wv, bv=bv, wq=wq, bq=bq,
                w_pred=w_pred, b_pred=b_pred)


if __name__ == "__main__":
    key = jax.random.PRNGKey(0)
    k_param, k_ques, k_img = jax.random.split(key, 3)
    params = init_params(k_param)
    kparams = prepare_kernel_params(params)

    ques_embed = jax.random.normal(k_ques, (BATCH, SEQ, EMB), jnp.float32)
    img_feat = jax.random.normal(k_img, (BATCH, POOL, POOL, LSTM_UNITS), jnp.float32)

    out = mutan_baseline_forward(kparams, ques_embed, img_feat)
    out = jax.block_until_ready(out)

    ref = reference_forward(params, ques_embed, img_feat)
    assert out.shape == (BATCH, VOCAB)
    # Tolerance relaxed for bf16 MUTAN/head weights + approx softmax reciprocal
    # (f32 accumulation everywhere; observed error << 1e-3 on probabilities).
    assert np.allclose(np.asarray(out), np.asarray(ref), atol=5e-3, rtol=5e-2)
    print("KERNEL_OK")
</pallas_src>

<mosaic_0001>
module attributes {stable_mosaic.version = 11 : i64} {
  func.func @fused_forward_kernel(%arg0: memref<2x16x32xf32, #tpu.memory_space<vmem>>, %arg1: memref<16x32xf32, #tpu.memory_space<vmem>>, %arg2: memref<32x128xf32, #tpu.memory_space<vmem>>, %arg3: memref<32x128xf32, #tpu.memory_space<vmem>>, %arg4: memref<1x128xf32, #tpu.memory_space<vmem>>, %arg5: memref<32x128xf32, #tpu.memory_space<vmem>>, %arg6: memref<32x128xf32, #tpu.memory_space<vmem>>, %arg7: memref<1x128xf32, #tpu.memory_space<vmem>>, %arg8: memref<1x5120xf32, #tpu.memory_space<vmem>>, %arg9: memref<1x5120xf32, #tpu.memory_space<vmem>>, %arg10: memref<1x16xf32, #tpu.memory_space<vmem>>, %arg11: memref<64x5120xbf16, #tpu.memory_space<any>>, %arg12: memref<1024x16xbf16, #tpu.memory_space<any>>, %arg13: memref<2x16xf32, #tpu.memory_space<vmem>>, %arg14: memref<64x5120xbf16, #tpu.memory_space<vmem>>, %arg15: memref<1024x16xbf16, #tpu.memory_space<vmem>>, %arg16: memref<2x!tpu.dma_semaphore, #tpu.memory_space<semaphore_mem>>) attributes {dimension_semantics = [], scalar_prefetch = 0 : i64, scratch_operands = 3 : i64, tpu.core_type = #tpu.core_type<tc>} {
    %c0_i32 = arith.constant 0 : i32
    %0 = tpu.memref_slice %arg16[%c0_i32] : memref<2x!tpu.dma_semaphore, #tpu.memory_space<semaphore_mem>> -> memref<1x!tpu.dma_semaphore, #tpu.memory_space<semaphore_mem>>
    %1 = tpu.memref_squeeze %0 : memref<1x!tpu.dma_semaphore, #tpu.memory_space<semaphore_mem>> -> memref<!tpu.dma_semaphore, #tpu.memory_space<semaphore_mem>>
    tpu.enqueue_dma source(%arg11 : memref<64x5120xbf16, #tpu.memory_space<any>>) target(%arg14 : memref<64x5120xbf16, #tpu.memory_space<vmem>>) target_semaphore(%1 : memref<!tpu.dma_semaphore, #tpu.memory_space<semaphore_mem>>)
    %c1_i32 = arith.constant 1 : i32
    %2 = tpu.memref_slice %arg16[%c1_i32] : memref<2x!tpu.dma_semaphore, #tpu.memory_space<semaphore_mem>> -> memref<1x!tpu.dma_semaphore, #tpu.memory_space<semaphore_mem>>
    %3 = tpu.memref_squeeze %2 : memref<1x!tpu.dma_semaphore, #tpu.memory_space<semaphore_mem>> -> memref<!tpu.dma_semaphore, #tpu.memory_space<semaphore_mem>>
    tpu.enqueue_dma source(%arg12 : memref<1024x16xbf16, #tpu.memory_space<any>>) target(%arg15 : memref<1024x16xbf16, #tpu.memory_space<vmem>>) target_semaphore(%3 : memref<!tpu.dma_semaphore, #tpu.memory_space<semaphore_mem>>)
    %c0 = arith.constant 0 : index
    %c0_0 = arith.constant 0 : index
    %c0_1 = arith.constant 0 : index
    %4 = vector.load %arg0[%c0, %c0_0, %c0_1] : memref<2x16x32xf32, #tpu.memory_space<vmem>>, vector<2x16x32xf32>
    %cst = arith.constant dense<0.000000e+00> : vector<2x32xf32>
    %5 = vector.multi_reduction <add>, %4, %cst [1] : vector<2x16x32xf32> to vector<2x32xf32>
    %cst_2 = arith.constant 6.250000e-02 : f32
    %6 = vector.broadcast %cst_2 : f32 to vector<2x32xf32>
    %7 = arith.mulf %5, %6 : vector<2x32xf32>
    %c0_3 = arith.constant 0 : index
    %c0_4 = arith.constant 0 : index
    %8 = vector.load %arg1[%c0_3, %c0_4] : memref<16x32xf32, #tpu.memory_space<vmem>>, vector<16x32xf32>
    %c0_5 = arith.constant 0 : index
    %c0_6 = arith.constant 0 : index
    %9 = vector.load %arg2[%c0_5, %c0_6] : memref<32x128xf32, #tpu.memory_space<vmem>>, vector<32x128xf32>
    %cst_7 = arith.constant dense<0.000000e+00> : vector<16x128xf32>
    %10 = tpu.matmul %8, %9, %cst_7 {dimension_numbers = #tpu.dot_dimension_numbers<[1], [0], [0], [1], [0, 0, 1, 1], [], []>} : vector<16x32xf32>, vector<32x128xf32>, vector<16x128xf32> -> vector<16x128xf32>
    %c0_8 = arith.constant 0 : index
    %c0_9 = arith.constant 0 : index
    %11 = vector.load %arg4[%c0_8, %c0_9] : memref<1x128xf32, #tpu.memory_space<vmem>>, vector<1x128xf32>
    %12 = vector.broadcast %11 : vector<1x128xf32> to vector<16x128xf32>
    %13 = arith.addf %10, %12 : vector<16x128xf32>
    %c0_10 = arith.constant 0 : index
    %c0_11 = arith.constant 0 : index
    %14 = vector.load %arg3[%c0_10, %c0_11] : memref<32x128xf32, #tpu.memory_space<vmem>>, vector<32x128xf32>
    %cst_12 = arith.constant 0.000000e+00 : f32
    %15 = vector.broadcast %cst_12 : f32 to vector<2x32xf32>
    %cst_13 = arith.constant 0.000000e+00 : f32
    %16 = vector.broadcast %cst_13 : f32 to vector<2x32xf32>
    %17 = vector.extract_strided_slice %13 {offsets = [0, 0], sizes = [2, 128], strides = [1, 1]} : vector<16x128xf32> to vector<2x128xf32>
    %cst_14 = arith.constant dense<0.000000e+00> : vector<2x128xf32>
    %18 = tpu.matmul %15, %14, %cst_14 {dimension_numbers = #tpu.dot_dimension_numbers<[1], [0], [0], [1], [0, 0, 1, 1], [], []>} : vector<2x32xf32>, vector<32x128xf32>, vector<2x128xf32> -> vector<2x128xf32>
    %19 = arith.addf %17, %18 : vector<2x128xf32>
    %20 = vector.extract_strided_slice %19 {offsets = [0, 0], sizes = [2, 32], strides = [1, 1]} : vector<2x128xf32> to vector<2x32xf32>
    %21 = arith.negf %20 : vector<2x32xf32>
    %22 = math.exp %21 : vector<2x32xf32>
    %cst_15 = arith.constant 1.000000e+00 : f32
    %23 = vector.broadcast %cst_15 : f32 to vector<2x32xf32>
    %24 = arith.addf %23, %22 : vector<2x32xf32>
    %25 = arith.divf %23, %24 : vector<2x32xf32>
    %26 = vector.extract_strided_slice %19 {offsets = [0, 32], sizes = [2, 32], strides = [1, 1]} : vector<2x128xf32> to vector<2x32xf32>
    %27 = arith.negf %26 : vector<2x32xf32>
    %28 = math.exp %27 : vector<2x32xf32>
    %cst_16 = arith.constant 1.000000e+00 : f32
    %29 = vector.broadcast %cst_16 : f32 to vector<2x32xf32>
    %30 = arith.addf %29, %28 : vector<2x32xf32>
    %31 = arith.divf %29, %30 : vector<2x32xf32>
    %32 = vector.extract_strided_slice %19 {offsets = [0, 64], sizes = [2, 32], strides = [1, 1]} : vector<2x128xf32> to vector<2x32xf32>
    %33 = math.tanh %32 : vector<2x32xf32>
    %34 = vector.extract_strided_slice %19 {offsets = [0, 96], sizes = [2, 32], strides = [1, 1]} : vector<2x128xf32> to vector<2x32xf32>
    %35 = arith.negf %34 : vector<2x32xf32>
    %36 = math.exp %35 : vector<2x32xf32>
    %cst_17 = arith.constant 1.000000e+00 : f32
    %37 = vector.broadcast %cst_17 : f32 to vector<2x32xf32>
    %38 = arith.addf %37, %36 : vector<2x32xf32>
    %39 = arith.divf %37, %38 : vector<2x32xf32>
    %40 = arith.mulf %31, %16 : vector<2x32xf32>
    %41 = arith.mulf %25, %33 : vector<2x32xf32>
    %42 = arith.addf %40, %41 : vector<2x32xf32>
    %43 = math.tanh %42 : vector<2x32xf32>
    %44 = arith.mulf %39, %43 : vector<2x32xf32>
    %45 = vector.extract_strided_slice %13 {offsets = [2, 0], sizes = [2, 128], strides = [1, 1]} : vector<16x128xf32> to vector<2x128xf32>
    %cst_18 = arith.constant dense<0.000000e+00> : vector<2x128xf32>
    %46 = tpu.matmul %44, %14, %cst_18 {dimension_numbers = #tpu.dot_dimension_numbers<[1], [0], [0], [1], [0, 0, 1, 1], [], []>} : vector<2x32xf32>, vector<32x128xf32>, vector<2x128xf32> -> vector<2x128xf32>
    %47 = arith.addf %45, %46 : vector<2x128xf32>
    %48 = vector.extract_strided_slice %47 {offsets = [0, 0], sizes = [2, 32], strides = [1, 1]} : vector<2x128xf32> to vector<2x32xf32>
    %49 = arith.negf %48 : vector<2x32xf32>
    %50 = math.exp %49 : vector<2x32xf32>
    %cst_19 = arith.constant 1.000000e+00 : f32
    %51 = vector.broadcast %cst_19 : f32 to vector<2x32xf32>
    %52 = arith.addf %51, %50 : vector<2x32xf32>
    %53 = arith.divf %51, %52 : vector<2x32xf32>
    %54 = vector.extract_strided_slice %47 {offsets = [0, 32], sizes = [2, 32], strides = [1, 1]} : vector<2x128xf32> to vector<2x32xf32>
    %55 = arith.negf %54 : vector<2x32xf32>
    %56 = math.exp %55 : vector<2x32xf32>
    %cst_20 = arith.constant 1.000000e+00 : f32
    %57 = vector.broadcast %cst_20 : f32 to vector<2x32xf32>
    %58 = arith.addf %57, %56 : vector<2x32xf32>
    %59 = arith.divf %57, %58 : vector<2x32xf32>
    %60 = vector.extract_strided_slice %47 {offsets = [0, 64], sizes = [2, 32], strides = [1, 1]} : vector<2x128xf32> to vector<2x32xf32>
    %61 = math.tanh %60 : vector<2x32xf32>
    %62 = vector.extract_strided_slice %47 {offsets = [0, 96], sizes = [2, 32], strides = [1, 1]} : vector<2x128xf32> to vector<2x32xf32>
    %63 = arith.negf %62 : vector<2x32xf32>
    %64 = math.exp %63 : vector<2x32xf32>
    %cst_21 = arith.constant 1.000000e+00 : f32
    %65 = vector.broadcast %cst_21 : f32 to vector<2x32xf32>
    %66 = arith.addf %65, %64 : vector<2x32xf32>
    %67 = arith.divf %65, %66 : vector<2x32xf32>
    %68 = arith.mulf %59, %42 : vector<2x32xf32>
    %69 = arith.mulf %53, %61 : vector<2x32xf32>
    %70 = arith.addf %68, %69 : vector<2x32xf32>
    %71 = math.tanh %70 : vector<2x32xf32>
    %72 = arith.mulf %67, %71 : vector<2x32xf32>
    %73 = vector.extract_strided_slice %13 {offsets = [4, 0], sizes = [2, 128], strides = [1, 1]} : vector<16x128xf32> to vector<2x128xf32>
    %cst_22 = arith.constant dense<0.000000e+00> : vector<2x128xf32>
    %74 = tpu.matmul %72, %14, %cst_22 {dimension_numbers = #tpu.dot_dimension_numbers<[1], [0], [0], [1], [0, 0, 1, 1], [], []>} : vector<2x32xf32>, vector<32x128xf32>, vector<2x128xf32> -> vector<2x128xf32>
    %75 = arith.addf %73, %74 : vector<2x128xf32>
    %76 = vector.extract_strided_slice %75 {offsets = [0, 0], sizes = [2, 32], strides = [1, 1]} : vector<2x128xf32> to vector<2x32xf32>
    %77 = arith.negf %76 : vector<2x32xf32>
    %78 = math.exp %77 : vector<2x32xf32>
    %cst_23 = arith.constant 1.000000e+00 : f32
    %79 = vector.broadcast %cst_23 : f32 to vector<2x32xf32>
    %80 = arith.addf %79, %78 : vector<2x32xf32>
    %81 = arith.divf %79, %80 : vector<2x32xf32>
    %82 = vector.extract_strided_slice %75 {offsets = [0, 32], sizes = [2, 32], strides = [1, 1]} : vector<2x128xf32> to vector<2x32xf32>
    %83 = arith.negf %82 : vector<2x32xf32>
    %84 = math.exp %83 : vector<2x32xf32>
    %cst_24 = arith.constant 1.000000e+00 : f32
    %85 = vector.broadcast %cst_24 : f32 to vector<2x32xf32>
    %86 = arith.addf %85, %84 : vector<2x32xf32>
    %87 = arith.divf %85, %86 : vector<2x32xf32>
    %88 = vector.extract_strided_slice %75 {offsets = [0, 64], sizes = [2, 32], strides = [1, 1]} : vector<2x128xf32> to vector<2x32xf32>
    %89 = math.tanh %88 : vector<2x32xf32>
    %90 = vector.extract_strided_slice %75 {offsets = [0, 96], sizes = [2, 32], strides = [1, 1]} : vector<2x128xf32> to vector<2x32xf32>
    %91 = arith.negf %90 : vector<2x32xf32>
    %92 = math.exp %91 : vector<2x32xf32>
    %cst_25 = arith.constant 1.000000e+00 : f32
    %93 = vector.broadcast %cst_25 : f32 to vector<2x32xf32>
    %94 = arith.addf %93, %92 : vector<2x32xf32>
    %95 = arith.divf %93, %94 : vector<2x32xf32>
    %96 = arith.mulf %87, %70 : vector<2x32xf32>
    %97 = arith.mulf %81, %89 : vector<2x32xf32>
    %98 = arith.addf %96, %97 : vector<2x32xf32>
    %99 = math.tanh %98 : vector<2x32xf32>
    %100 = arith.mulf %95, %99 : vector<2x32xf32>
    %101 = vector.extract_strided_slice %13 {offsets = [6, 0], sizes = [2, 128], strides = [1, 1]} : vector<16x128xf32> to vector<2x128xf32>
    %cst_26 = arith.constant dense<0.000000e+00> : vector<2x128xf32>
    %102 = tpu.matmul %100, %14, %cst_26 {dimension_numbers = #tpu.dot_dimension_numbers<[1], [0], [0], [1], [0, 0, 1, 1], [], []>} : vector<2x32xf32>, vector<32x128xf32>, vector<2x128xf32> -> vector<2x128xf32>
    %103 = arith.addf %101, %102 : vector<2x128xf32>
    %104 = vector.extract_strided_slice %103 {offsets = [0, 0], sizes = [2, 32], strides = [1, 1]} : vector<2x128xf32> to vector<2x32xf32>
    %105 = arith.negf %104 : vector<2x32xf32>
    %106 = math.exp %105 : vector<2x32xf32>
    %cst_27 = arith.constant 1.000000e+00 : f32
    %107 = vector.broadcast %cst_27 : f32 to vector<2x32xf32>
    %108 = arith.addf %107, %106 : vector<2x32xf32>
    %109 = arith.divf %107, %108 : vector<2x32xf32>
    %110 = vector.extract_strided_slice %103 {offsets = [0, 32], sizes = [2, 32], strides = [1, 1]} : vector<2x128xf32> to vector<2x32xf32>
    %111 = arith.negf %110 : vector<2x32xf32>
    %112 = math.exp %111 : vector<2x32xf32>
    %cst_28 = arith.constant 1.000000e+00 : f32
    %113 = vector.broadcast %cst_28 : f32 to vector<2x32xf32>
    %114 = arith.addf %113, %112 : vector<2x32xf32>
    %115 = arith.divf %113, %114 : vector<2x32xf32>
    %116 = vector.extract_strided_slice %103 {offsets = [0, 64], sizes = [2, 32], strides = [1, 1]} : vector<2x128xf32> to vector<2x32xf32>
    %117 = math.tanh %116 : vector<2x32xf32>
    %118 = vector.extract_strided_slice %103 {offsets = [0, 96], sizes = [2, 32], strides = [1, 1]} : vector<2x128xf32> to vector<2x32xf32>
    %119 = arith.negf %118 : vector<2x32xf32>
    %120 = math.exp %119 : vector<2x32xf32>
    %cst_29 = arith.constant 1.000000e+00 : f32
    %121 = vector.broadcast %cst_29 : f32 to vector<2x32xf32>
    %122 = arith.addf %121, %120 : vector<2x32xf32>
    %123 = arith.divf %121, %122 : vector<2x32xf32>
    %124 = arith.mulf %115, %98 : vector<2x32xf32>
    %125 = arith.mulf %109, %117 : vector<2x32xf32>
    %126 = arith.addf %124, %125 : vector<2x32xf32>
    %127 = math.tanh %126 : vector<2x32xf32>
    %128 = arith.mulf %123, %127 : vector<2x32xf32>
    %129 = vector.extract_strided_slice %13 {offsets = [8, 0], sizes = [2, 128], strides = [1, 1]} : vector<16x128xf32> to vector<2x128xf32>
    %cst_30 = arith.constant dense<0.000000e+00> : vector<2x128xf32>
    %130 = tpu.matmul %128, %14, %cst_30 {dimension_numbers = #tpu.dot_dimension_numbers<[1], [0], [0], [1], [0, 0, 1, 1], [], []>} : vector<2x32xf32>, vector<32x128xf32>, vector<2x128xf32> -> vector<2x128xf32>
    %131 = arith.addf %129, %130 : vector<2x128xf32>
    %132 = vector.extract_strided_slice %131 {offsets = [0, 0], sizes = [2, 32], strides = [1, 1]} : vector<2x128xf32> to vector<2x32xf32>
    %133 = arith.negf %132 : vector<2x32xf32>
    %134 = math.exp %133 : vector<2x32xf32>
    %cst_31 = arith.constant 1.000000e+00 : f32
    %135 = vector.broadcast %cst_31 : f32 to vector<2x32xf32>
    %136 = arith.addf %135, %134 : vector<2x32xf32>
    %137 = arith.divf %135, %136 : vector<2x32xf32>
    %138 = vector.extract_strided_slice %131 {offsets = [0, 32], sizes = [2, 32], strides = [1, 1]} : vector<2x128xf32> to vector<2x32xf32>
    %139 = arith.negf %138 : vector<2x32xf32>
    %140 = math.exp %139 : vector<2x32xf32>
    %cst_32 = arith.constant 1.000000e+00 : f32
    %141 = vector.broadcast %cst_32 : f32 to vector<2x32xf32>
    %142 = arith.addf %141, %140 : vector<2x32xf32>
    %143 = arith.divf %141, %142 : vector<2x32xf32>
    %144 = vector.extract_strided_slice %131 {offsets = [0, 64], sizes = [2, 32], strides = [1, 1]} : vector<2x128xf32> to vector<2x32xf32>
    %145 = math.tanh %144 : vector<2x32xf32>
    %146 = vector.extract_strided_slice %131 {offsets = [0, 96], sizes = [2, 32], strides = [1, 1]} : vector<2x128xf32> to vector<2x32xf32>
    %147 = arith.negf %146 : vector<2x32xf32>
    %148 = math.exp %147 : vector<2x32xf32>
    %cst_33 = arith.constant 1.000000e+00 : f32
    %149 = vector.broadcast %cst_33 : f32 to vector<2x32xf32>
    %150 = arith.addf %149, %148 : vector<2x32xf32>
    %151 = arith.divf %149, %150 : vector<2x32xf32>
    %152 = arith.mulf %143, %126 : vector<2x32xf32>
    %153 = arith.mulf %137, %145 : vector<2x32xf32>
    %154 = arith.addf %152, %153 : vector<2x32xf32>
    %155 = math.tanh %154 : vector<2x32xf32>
    %156 = arith.mulf %151, %155 : vector<2x32xf32>
    %157 = vector.extract_strided_slice %13 {offsets = [10, 0], sizes = [2, 128], strides = [1, 1]} : vector<16x128xf32> to vector<2x128xf32>
    %cst_34 = arith.constant dense<0.000000e+00> : vector<2x128xf32>
    %158 = tpu.matmul %156, %14, %cst_34 {dimension_numbers = #tpu.dot_dimension_numbers<[1], [0], [0], [1], [0, 0, 1, 1], [], []>} : vector<2x32xf32>, vector<32x128xf32>, vector<2x128xf32> -> vector<2x128xf32>
    %159 = arith.addf %157, %158 : vector<2x128xf32>
    %160 = vector.extract_strided_slice %159 {offsets = [0, 0], sizes = [2, 32], strides = [1, 1]} : vector<2x128xf32> to vector<2x32xf32>
    %161 = arith.negf %160 : vector<2x32xf32>
    %162 = math.exp %161 : vector<2x32xf32>
    %cst_35 = arith.constant 1.000000e+00 : f32
    %163 = vector.broadcast %cst_35 : f32 to vector<2x32xf32>
    %164 = arith.addf %163, %162 : vector<2x32xf32>
    %165 = arith.divf %163, %164 : vector<2x32xf32>
    %166 = vector.extract_strided_slice %159 {offsets = [0, 32], sizes = [2, 32], strides = [1, 1]} : vector<2x128xf32> to vector<2x32xf32>
    %167 = arith.negf %166 : vector<2x32xf32>
    %168 = math.exp %167 : vector<2x32xf32>
    %cst_36 = arith.constant 1.000000e+00 : f32
    %169 = vector.broadcast %cst_36 : f32 to vector<2x32xf32>
    %170 = arith.addf %169, %168 : vector<2x32xf32>
    %171 = arith.divf %169, %170 : vector<2x32xf32>
    %172 = vector.extract_strided_slice %159 {offsets = [0, 64], sizes = [2, 32], strides = [1, 1]} : vector<2x128xf32> to vector<2x32xf32>
    %173 = math.tanh %172 : vector<2x32xf32>
    %174 = vector.extract_strided_slice %159 {offsets = [0, 96], sizes = [2, 32], strides = [1, 1]} : vector<2x128xf32> to vector<2x32xf32>
    %175 = arith.negf %174 : vector<2x32xf32>
    %176 = math.exp %175 : vector<2x32xf32>
    %cst_37 = arith.constant 1.000000e+00 : f32
    %177 = vector.broadcast %cst_37 : f32 to vector<2x32xf32>
    %178 = arith.addf %177, %176 : vector<2x32xf32>
    %179 = arith.divf %177, %178 : vector<2x32xf32>
    %180 = arith.mulf %171, %154 : vector<2x32xf32>
    %181 = arith.mulf %165, %173 : vector<2x32xf32>
    %182 = arith.addf %180, %181 : vector<2x32xf32>
    %183 = math.tanh %182 : vector<2x32xf32>
    %184 = arith.mulf %179, %183 : vector<2x32xf32>
    %185 = vector.extract_strided_slice %13 {offsets = [12, 0], sizes = [2, 128], strides = [1, 1]} : vector<16x128xf32> to vector<2x128xf32>
    %cst_38 = arith.constant dense<0.000000e+00> : vector<2x128xf32>
    %186 = tpu.matmul %184, %14, %cst_38 {dimension_numbers = #tpu.dot_dimension_numbers<[1], [0], [0], [1], [0, 0, 1, 1], [], []>} : vector<2x32xf32>, vector<32x128xf32>, vector<2x128xf32> -> vector<2x128xf32>
    %187 = arith.addf %185, %186 : vector<2x128xf32>
    %188 = vector.extract_strided_slice %187 {offsets = [0, 0], sizes = [2, 32], strides = [1, 1]} : vector<2x128xf32> to vector<2x32xf32>
    %189 = arith.negf %188 : vector<2x32xf32>
    %190 = math.exp %189 : vector<2x32xf32>
    %cst_39 = arith.constant 1.000000e+00 : f32
    %191 = vector.broadcast %cst_39 : f32 to vector<2x32xf32>
    %192 = arith.addf %191, %190 : vector<2x32xf32>
    %193 = arith.divf %191, %192 : vector<2x32xf32>
    %194 = vector.extract_strided_slice %187 {offsets = [0, 32], sizes = [2, 32], strides = [1, 1]} : vector<2x128xf32> to vector<2x32xf32>
    %195 = arith.negf %194 : vector<2x32xf32>
    %196 = math.exp %195 : vector<2x32xf32>
    %cst_40 = arith.constant 1.000000e+00 : f32
    %197 = vector.broadcast %cst_40 : f32 to vector<2x32xf32>
    %198 = arith.addf %197, %196 : vector<2x32xf32>
    %199 = arith.divf %197, %198 : vector<2x32xf32>
    %200 = vector.extract_strided_slice %187 {offsets = [0, 64], sizes = [2, 32], strides = [1, 1]} : vector<2x128xf32> to vector<2x32xf32>
    %201 = math.tanh %200 : vector<2x32xf32>
    %202 = vector.extract_strided_slice %187 {offsets = [0, 96], sizes = [2, 32], strides = [1, 1]} : vector<2x128xf32> to vector<2x32xf32>
    %203 = arith.negf %202 : vector<2x32xf32>
    %204 = math.exp %203 : vector<2x32xf32>
    %cst_41 = arith.constant 1.000000e+00 : f32
    %205 = vector.broadcast %cst_41 : f32 to vector<2x32xf32>
    %206 = arith.addf %205, %204 : vector<2x32xf32>
    %207 = arith.divf %205, %206 : vector<2x32xf32>
    %208 = arith.mulf %199, %182 : vector<2x32xf32>
    %209 = arith.mulf %193, %201 : vector<2x32xf32>
    %210 = arith.addf %208, %209 : vector<2x32xf32>
    %211 = math.tanh %210 : vector<2x32xf32>
    %212 = arith.mulf %207, %211 : vector<2x32xf32>
    %213 = vector.extract_strided_slice %13 {offsets = [14, 0], sizes = [2, 128], strides = [1, 1]} : vector<16x128xf32> to vector<2x128xf32>
    %cst_42 = arith.constant dense<0.000000e+00> : vector<2x128xf32>
    %214 = tpu.matmul %212, %14, %cst_42 {dimension_numbers = #tpu.dot_dimension_numbers<[1], [0], [0], [1], [0, 0, 1, 1], [], []>} : vector<2x32xf32>, vector<32x128xf32>, vector<2x128xf32> -> vector<2x128xf32>
    %215 = arith.addf %213, %214 : vector<2x128xf32>
    %216 = vector.extract_strided_slice %215 {offsets = [0, 0], sizes = [2, 32], strides = [1, 1]} : vector<2x128xf32> to vector<2x32xf32>
    %217 = arith.negf %216 : vector<2x32xf32>
    %218 = math.exp %217 : vector<2x32xf32>
    %cst_43 = arith.constant 1.000000e+00 : f32
    %219 = vector.broadcast %cst_43 : f32 to vector<2x32xf32>
    %220 = arith.addf %219, %218 : vector<2x32xf32>
    %221 = arith.divf %219, %220 : vector<2x32xf32>
    %222 = vector.extract_strided_slice %215 {offsets = [0, 32], sizes = [2, 32], strides = [1, 1]} : vector<2x128xf32> to vector<2x32xf32>
    %223 = arith.negf %222 : vector<2x32xf32>
    %224 = math.exp %223 : vector<2x32xf32>
    %cst_44 = arith.constant 1.000000e+00 : f32
    %225 = vector.broadcast %cst_44 : f32 to vector<2x32xf32>
    %226 = arith.addf %225, %224 : vector<2x32xf32>
    %227 = arith.divf %225, %226 : vector<2x32xf32>
    %228 = vector.extract_strided_slice %215 {offsets = [0, 64], sizes = [2, 32], strides = [1, 1]} : vector<2x128xf32> to vector<2x32xf32>
    %229 = math.tanh %228 : vector<2x32xf32>
    %230 = vector.extract_strided_slice %215 {offsets = [0, 96], sizes = [2, 32], strides = [1, 1]} : vector<2x128xf32> to vector<2x32xf32>
    %231 = arith.negf %230 : vector<2x32xf32>
    %232 = math.exp %231 : vector<2x32xf32>
    %cst_45 = arith.constant 1.000000e+00 : f32
    %233 = vector.broadcast %cst_45 : f32 to vector<2x32xf32>
    %234 = arith.addf %233, %232 : vector<2x32xf32>
    %235 = arith.divf %233, %234 : vector<2x32xf32>
    %236 = arith.mulf %227, %210 : vector<2x32xf32>
    %237 = arith.mulf %221, %229 : vector<2x32xf32>
    %238 = arith.addf %236, %237 : vector<2x32xf32>
    %239 = math.tanh %238 : vector<2x32xf32>
    %240 = arith.mulf %235, %239 : vector<2x32xf32>
    %241 = tpu.concatenate %44, %72, %100, %128, %156, %184, %212, %240 in 0 : vector<2x32xf32>, vector<2x32xf32>, vector<2x32xf32>, vector<2x32xf32>, vector<2x32xf32>, vector<2x32xf32>, vector<2x32xf32>, vector<2x32xf32> -> vector<16x32xf32>
    %c0_46 = arith.constant 0 : index
    %c0_47 = arith.constant 0 : index
    %242 = vector.load %arg5[%c0_46, %c0_47] : memref<32x128xf32, #tpu.memory_space<vmem>>, vector<32x128xf32>
    %cst_48 = arith.constant dense<0.000000e+00> : vector<16x128xf32>
    %243 = tpu.matmul %241, %242, %cst_48 {dimension_numbers = #tpu.dot_dimension_numbers<[1], [0], [0], [1], [0, 0, 1, 1], [], []>} : vector<16x32xf32>, vector<32x128xf32>, vector<16x128xf32> -> vector<16x128xf32>
    %c0_49 = arith.constant 0 : index
    %c0_50 = arith.constant 0 : index
    %244 = vector.load %arg7[%c0_49, %c0_50] : memref<1x128xf32, #tpu.memory_space<vmem>>, vector<1x128xf32>
    %245 = vector.broadcast %244 : vector<1x128xf32> to vector<16x128xf32>
    %246 = arith.addf %243, %245 : vector<16x128xf32>
    %c0_51 = arith.constant 0 : index
    %c0_52 = arith.constant 0 : index
    %247 = vector.load %arg6[%c0_51, %c0_52] : memref<32x128xf32, #tpu.memory_space<vmem>>, vector<32x128xf32>
    %cst_53 = arith.constant 0.000000e+00 : f32
    %248 = vector.broadcast %cst_53 : f32 to vector<2x32xf32>
    %cst_54 = arith.constant 0.000000e+00 : f32
    %249 = vector.broadcast %cst_54 : f32 to vector<2x32xf32>
    %250 = vector.extract_strided_slice %246 {offsets = [0, 0], sizes = [2, 128], strides = [1, 1]} : vector<16x128xf32> to vector<2x128xf32>
    %cst_55 = arith.constant dense<0.000000e+00> : vector<2x128xf32>
    %251 = tpu.matmul %248, %247, %cst_55 {dimension_numbers = #tpu.dot_dimension_numbers<[1], [0], [0], [1], [0, 0, 1, 1], [], []>} : vector<2x32xf32>, vector<32x128xf32>, vector<2x128xf32> -> vector<2x128xf32>
    %252 = arith.addf %250, %251 : vector<2x128xf32>
    %253 = vector.extract_strided_slice %252 {offsets = [0, 0], sizes = [2, 32], strides = [1, 1]} : vector<2x128xf32> to vector<2x32xf32>
    %254 = arith.negf %253 : vector<2x32xf32>
    %255 = math.exp %254 : vector<2x32xf32>
    %cst_56 = arith.constant 1.000000e+00 : f32
    %256 = vector.broadcast %cst_56 : f32 to vector<2x32xf32>
    %257 = arith.addf %256, %255 : vector<2x32xf32>
    %258 = arith.divf %256, %257 : vector<2x32xf32>
    %259 = vector.extract_strided_slice %252 {offsets = [0, 32], sizes = [2, 32], strides = [1, 1]} : vector<2x128xf32> to vector<2x32xf32>
    %260 = arith.negf %259 : vector<2x32xf32>
    %261 = math.exp %260 : vector<2x32xf32>
    %cst_57 = arith.constant 1.000000e+00 : f32
    %262 = vector.broadcast %cst_57 : f32 to vector<2x32xf32>
    %263 = arith.addf %262, %261 : vector<2x32xf32>
    %264 = arith.divf %262, %263 : vector<2x32xf32>
    %265 = vector.extract_strided_slice %252 {offsets = [0, 64], sizes = [2, 32], strides = [1, 1]} : vector<2x128xf32> to vector<2x32xf32>
    %266 = math.tanh %265 : vector<2x32xf32>
    %267 = vector.extract_strided_slice %252 {offsets = [0, 96], sizes = [2, 32], strides = [1, 1]} : vector<2x128xf32> to vector<2x32xf32>
    %268 = arith.negf %267 : vector<2x32xf32>
    %269 = math.exp %268 : vector<2x32xf32>
    %cst_58 = arith.constant 1.000000e+00 : f32
    %270 = vector.broadcast %cst_58 : f32 to vector<2x32xf32>
    %271 = arith.addf %270, %269 : vector<2x32xf32>
    %272 = arith.divf %270, %271 : vector<2x32xf32>
    %273 = arith.mulf %264, %249 : vector<2x32xf32>
    %274 = arith.mulf %258, %266 : vector<2x32xf32>
    %275 = arith.addf %273, %274 : vector<2x32xf32>
    %276 = math.tanh %275 : vector<2x32xf32>
    %277 = arith.mulf %272, %276 : vector<2x32xf32>
    %278 = vector.extract_strided_slice %246 {offsets = [2, 0], sizes = [2, 128], strides = [1, 1]} : vector<16x128xf32> to vector<2x128xf32>
    %cst_59 = arith.constant dense<0.000000e+00> : vector<2x128xf32>
    %279 = tpu.matmul %277, %247, %cst_59 {dimension_numbers = #tpu.dot_dimension_numbers<[1], [0], [0], [1], [0, 0, 1, 1], [], []>} : vector<2x32xf32>, vector<32x128xf32>, vector<2x128xf32> -> vector<2x128xf32>
    %280 = arith.addf %278, %279 : vector<2x128xf32>
    %281 = vector.extract_strided_slice %280 {offsets = [0, 0], sizes = [2, 32], strides = [1, 1]} : vector<2x128xf32> to vector<2x32xf32>
    %282 = arith.negf %281 : vector<2x32xf32>
    %283 = math.exp %282 : vector<2x32xf32>
    %cst_60 = arith.constant 1.000000e+00 : f32
    %284 = vector.broadcast %cst_60 : f32 to vector<2x32xf32>
    %285 = arith.addf %284, %283 : vector<2x32xf32>
    %286 = arith.divf %284, %285 : vector<2x32xf32>
    %287 = vector.extract_strided_slice %280 {offsets = [0, 32], sizes = [2, 32], strides = [1, 1]} : vector<2x128xf32> to vector<2x32xf32>
    %288 = arith.negf %287 : vector<2x32xf32>
    %289 = math.exp %288 : vector<2x32xf32>
    %cst_61 = arith.constant 1.000000e+00 : f32
    %290 = vector.broadcast %cst_61 : f32 to vector<2x32xf32>
    %291 = arith.addf %290, %289 : vector<2x32xf32>
    %292 = arith.divf %290, %291 : vector<2x32xf32>
    %293 = vector.extract_strided_slice %280 {offsets = [0, 64], sizes = [2, 32], strides = [1, 1]} : vector<2x128xf32> to vector<2x32xf32>
    %294 = math.tanh %293 : vector<2x32xf32>
    %295 = vector.extract_strided_slice %280 {offsets = [0, 96], sizes = [2, 32], strides = [1, 1]} : vector<2x128xf32> to vector<2x32xf32>
    %296 = arith.negf %295 : vector<2x32xf32>
    %297 = math.exp %296 : vector<2x32xf32>
    %cst_62 = arith.constant 1.000000e+00 : f32
    %298 = vector.broadcast %cst_62 : f32 to vector<2x32xf32>
    %299 = arith.addf %298, %297 : vector<2x32xf32>
    %300 = arith.divf %298, %299 : vector<2x32xf32>
    %301 = arith.mulf %292, %275 : vector<2x32xf32>
    %302 = arith.mulf %286, %294 : vector<2x32xf32>
    %303 = arith.addf %301, %302 : vector<2x32xf32>
    %304 = math.tanh %303 : vector<2x32xf32>
    %305 = arith.mulf %300, %304 : vector<2x32xf32>
    %306 = vector.extract_strided_slice %246 {offsets = [4, 0], sizes = [2, 128], strides = [1, 1]} : vector<16x128xf32> to vector<2x128xf32>
    %cst_63 = arith.constant dense<0.000000e+00> : vector<2x128xf32>
    %307 = tpu.matmul %305, %247, %cst_63 {dimension_numbers = #tpu.dot_dimension_numbers<[1], [0], [0], [1], [0, 0, 1, 1], [], []>} : vector<2x32xf32>, vector<32x128xf32>, vector<2x128xf32> -> vector<2x128xf32>
    %308 = arith.addf %306, %307 : vector<2x128xf32>
    %309 = vector.extract_strided_slice %308 {offsets = [0, 0], sizes = [2, 32], strides = [1, 1]} : vector<2x128xf32> to vector<2x32xf32>
    %310 = arith.negf %309 : vector<2x32xf32>
    %311 = math.exp %310 : vector<2x32xf32>
    %cst_64 = arith.constant 1.000000e+00 : f32
    %312 = vector.broadcast %cst_64 : f32 to vector<2x32xf32>
    %313 = arith.addf %312, %311 : vector<2x32xf32>
    %314 = arith.divf %312, %313 : vector<2x32xf32>
    %315 = vector.extract_strided_slice %308 {offsets = [0, 32], sizes = [2, 32], strides = [1, 1]} : vector<2x128xf32> to vector<2x32xf32>
    %316 = arith.negf %315 : vector<2x32xf32>
    %317 = math.exp %316 : vector<2x32xf32>
    %cst_65 = arith.constant 1.000000e+00 : f32
    %318 = vector.broadcast %cst_65 : f32 to vector<2x32xf32>
    %319 = arith.addf %318, %317 : vector<2x32xf32>
    %320 = arith.divf %318, %319 : vector<2x32xf32>
    %321 = vector.extract_strided_slice %308 {offsets = [0, 64], sizes = [2, 32], strides = [1, 1]} : vector<2x128xf32> to vector<2x32xf32>
    %322 = math.tanh %321 : vector<2x32xf32>
    %323 = vector.extract_strided_slice %308 {offsets = [0, 96], sizes = [2, 32], strides = [1, 1]} : vector<2x128xf32> to vector<2x32xf32>
    %324 = arith.negf %323 : vector<2x32xf32>
    %325 = math.exp %324 : vector<2x32xf32>
    %cst_66 = arith.constant 1.000000e+00 : f32
    %326 = vector.broadcast %cst_66 : f32 to vector<2x32xf32>
    %327 = arith.addf %326, %325 : vector<2x32xf32>
    %328 = arith.divf %326, %327 : vector<2x32xf32>
    %329 = arith.mulf %320, %303 : vector<2x32xf32>
    %330 = arith.mulf %314, %322 : vector<2x32xf32>
    %331 = arith.addf %329, %330 : vector<2x32xf32>
    %332 = math.tanh %331 : vector<2x32xf32>
    %333 = arith.mulf %328, %332 : vector<2x32xf32>
    %334 = vector.extract_strided_slice %246 {offsets = [6, 0], sizes = [2, 128], strides = [1, 1]} : vector<16x128xf32> to vector<2x128xf32>
    %cst_67 = arith.constant dense<0.000000e+00> : vector<2x128xf32>
    %335 = tpu.matmul %333, %247, %cst_67 {dimension_numbers = #tpu.dot_dimension_numbers<[1], [0], [0], [1], [0, 0, 1, 1], [], []>} : vector<2x32xf32>, vector<32x128xf32>, vector<2x128xf32> -> vector<2x128xf32>
    %336 = arith.addf %334, %335 : vector<2x128xf32>
    %337 = vector.extract_strided_slice %336 {offsets = [0, 0], sizes = [2, 32], strides = [1, 1]} : vector<2x128xf32> to vector<2x32xf32>
    %338 = arith.negf %337 : vector<2x32xf32>
    %339 = math.exp %338 : vector<2x32xf32>
    %cst_68 = arith.constant 1.000000e+00 : f32
    %340 = vector.broadcast %cst_68 : f32 to vector<2x32xf32>
    %341 = arith.addf %340, %339 : vector<2x32xf32>
    %342 = arith.divf %340, %341 : vector<2x32xf32>
    %343 = vector.extract_strided_slice %336 {offsets = [0, 32], sizes = [2, 32], strides = [1, 1]} : vector<2x128xf32> to vector<2x32xf32>
    %344 = arith.negf %343 : vector<2x32xf32>
    %345 = math.exp %344 : vector<2x32xf32>
    %cst_69 = arith.constant 1.000000e+00 : f32
    %346 = vector.broadcast %cst_69 : f32 to vector<2x32xf32>
    %347 = arith.addf %346, %345 : vector<2x32xf32>
    %348 = arith.divf %346, %347 : vector<2x32xf32>
    %349 = vector.extract_strided_slice %336 {offsets = [0, 64], sizes = [2, 32], strides = [1, 1]} : vector<2x128xf32> to vector<2x32xf32>
    %350 = math.tanh %349 : vector<2x32xf32>
    %351 = vector.extract_strided_slice %336 {offsets = [0, 96], sizes = [2, 32], strides = [1, 1]} : vector<2x128xf32> to vector<2x32xf32>
    %352 = arith.negf %351 : vector<2x32xf32>
    %353 = math.exp %352 : vector<2x32xf32>
    %cst_70 = arith.constant 1.000000e+00 : f32
    %354 = vector.broadcast %cst_70 : f32 to vector<2x32xf32>
    %355 = arith.addf %354, %353 : vector<2x32xf32>
    %356 = arith.divf %354, %355 : vector<2x32xf32>
    %357 = arith.mulf %348, %331 : vector<2x32xf32>
    %358 = arith.mulf %342, %350 : vector<2x32xf32>
    %359 = arith.addf %357, %358 : vector<2x32xf32>
    %360 = math.tanh %359 : vector<2x32xf32>
    %361 = arith.mulf %356, %360 : vector<2x32xf32>
    %362 = vector.extract_strided_slice %246 {offsets = [8, 0], sizes = [2, 128], strides = [1, 1]} : vector<16x128xf32> to vector<2x128xf32>
    %cst_71 = arith.constant dense<0.000000e+00> : vector<2x128xf32>
    %363 = tpu.matmul %361, %247, %cst_71 {dimension_numbers = #tpu.dot_dimension_numbers<[1], [0], [0], [1], [0, 0, 1, 1], [], []>} : vector<2x32xf32>, vector<32x128xf32>, vector<2x128xf32> -> vector<2x128xf32>
    %364 = arith.addf %362, %363 : vector<2x128xf32>
    %365 = vector.extract_strided_slice %364 {offsets = [0, 0], sizes = [2, 32], strides = [1, 1]} : vector<2x128xf32> to vector<2x32xf32>
    %366 = arith.negf %365 : vector<2x32xf32>
    %367 = math.exp %366 : vector<2x32xf32>
    %cst_72 = arith.constant 1.000000e+00 : f32
    %368 = vector.broadcast %cst_72 : f32 to vector<2x32xf32>
    %369 = arith.addf %368, %367 : vector<2x32xf32>
    %370 = arith.divf %368, %369 : vector<2x32xf32>
    %371 = vector.extract_strided_slice %364 {offsets = [0, 32], sizes = [2, 32], strides = [1, 1]} : vector<2x128xf32> to vector<2x32xf32>
    %372 = arith.negf %371 : vector<2x32xf32>
    %373 = math.exp %372 : vector<2x32xf32>
    %cst_73 = arith.constant 1.000000e+00 : f32
    %374 = vector.broadcast %cst_73 : f32 to vector<2x32xf32>
    %375 = arith.addf %374, %373 : vector<2x32xf32>
    %376 = arith.divf %374, %375 : vector<2x32xf32>
    %377 = vector.extract_strided_slice %364 {offsets = [0, 64], sizes = [2, 32], strides = [1, 1]} : vector<2x128xf32> to vector<2x32xf32>
    %378 = math.tanh %377 : vector<2x32xf32>
    %379 = vector.extract_strided_slice %364 {offsets = [0, 96], sizes = [2, 32], strides = [1, 1]} : vector<2x128xf32> to vector<2x32xf32>
    %380 = arith.negf %379 : vector<2x32xf32>
    %381 = math.exp %380 : vector<2x32xf32>
    %cst_74 = arith.constant 1.000000e+00 : f32
    %382 = vector.broadcast %cst_74 : f32 to vector<2x32xf32>
    %383 = arith.addf %382, %381 : vector<2x32xf32>
    %384 = arith.divf %382, %383 : vector<2x32xf32>
    %385 = arith.mulf %376, %359 : vector<2x32xf32>
    %386 = arith.mulf %370, %378 : vector<2x32xf32>
    %387 = arith.addf %385, %386 : vector<2x32xf32>
    %388 = math.tanh %387 : vector<2x32xf32>
    %389 = arith.mulf %384, %388 : vector<2x32xf32>
    %390 = vector.extract_strided_slice %246 {offsets = [10, 0], sizes = [2, 128], strides = [1, 1]} : vector<16x128xf32> to vector<2x128xf32>
    %cst_75 = arith.constant dense<0.000000e+00> : vector<2x128xf32>
    %391 = tpu.matmul %389, %247, %cst_75 {dimension_numbers = #tpu.dot_dimension_numbers<[1], [0], [0], [1], [0, 0, 1, 1], [], []>} : vector<2x32xf32>, vector<32x128xf32>, vector<2x128xf32> -> vector<2x128xf32>
    %392 = arith.addf %390, %391 : vector<2x128xf32>
    %393 = vector.extract_strided_slice %392 {offsets = [0, 0], sizes = [2, 32], strides = [1, 1]} : vector<2x128xf32> to vector<2x32xf32>
    %394 = arith.negf %393 : vector<2x32xf32>
    %395 = math.exp %394 : vector<2x32xf32>
    %cst_76 = arith.constant 1.000000e+00 : f32
    %396 = vector.broadcast %cst_76 : f32 to vector<2x32xf32>
    %397 = arith.addf %396, %395 : vector<2x32xf32>
    %398 = arith.divf %396, %397 : vector<2x32xf32>
    %399 = vector.extract_strided_slice %392 {offsets = [0, 32], sizes = [2, 32], strides = [1, 1]} : vector<2x128xf32> to vector<2x32xf32>
    %400 = arith.negf %399 : vector<2x32xf32>
    %401 = math.exp %400 : vector<2x32xf32>
    %cst_77 = arith.constant 1.000000e+00 : f32
    %402 = vector.broadcast %cst_77 : f32 to vector<2x32xf32>
    %403 = arith.addf %402, %401 : vector<2x32xf32>
    %404 = arith.divf %402, %403 : vector<2x32xf32>
    %405 = vector.extract_strided_slice %392 {offsets = [0, 64], sizes = [2, 32], strides = [1, 1]} : vector<2x128xf32> to vector<2x32xf32>
    %406 = math.tanh %405 : vector<2x32xf32>
    %407 = vector.extract_strided_slice %392 {offsets = [0, 96], sizes = [2, 32], strides = [1, 1]} : vector<2x128xf32> to vector<2x32xf32>
    %408 = arith.negf %407 : vector<2x32xf32>
    %409 = math.exp %408 : vector<2x32xf32>
    %cst_78 = arith.constant 1.000000e+00 : f32
    %410 = vector.broadcast %cst_78 : f32 to vector<2x32xf32>
    %411 = arith.addf %410, %409 : vector<2x32xf32>
    %412 = arith.divf %410, %411 : vector<2x32xf32>
    %413 = arith.mulf %404, %387 : vector<2x32xf32>
    %414 = arith.mulf %398, %406 : vector<2x32xf32>
    %415 = arith.addf %413, %414 : vector<2x32xf32>
    %416 = math.tanh %415 : vector<2x32xf32>
    %417 = arith.mulf %412, %416 : vector<2x32xf32>
    %418 = vector.extract_strided_slice %246 {offsets = [12, 0], sizes = [2, 128], strides = [1, 1]} : vector<16x128xf32> to vector<2x128xf32>
    %cst_79 = arith.constant dense<0.000000e+00> : vector<2x128xf32>
    %419 = tpu.matmul %417, %247, %cst_79 {dimension_numbers = #tpu.dot_dimension_numbers<[1], [0], [0], [1], [0, 0, 1, 1], [], []>} : vector<2x32xf32>, vector<32x128xf32>, vector<2x128xf32> -> vector<2x128xf32>
    %420 = arith.addf %418, %419 : vector<2x128xf32>
    %421 = vector.extract_strided_slice %420 {offsets = [0, 0], sizes = [2, 32], strides = [1, 1]} : vector<2x128xf32> to vector<2x32xf32>
    %422 = arith.negf %421 : vector<2x32xf32>
    %423 = math.exp %422 : vector<2x32xf32>
    %cst_80 = arith.constant 1.000000e+00 : f32
    %424 = vector.broadcast %cst_80 : f32 to vector<2x32xf32>
    %425 = arith.addf %424, %423 : vector<2x32xf32>
    %426 = arith.divf %424, %425 : vector<2x32xf32>
    %427 = vector.extract_strided_slice %420 {offsets = [0, 32], sizes = [2, 32], strides = [1, 1]} : vector<2x128xf32> to vector<2x32xf32>
    %428 = arith.negf %427 : vector<2x32xf32>
    %429 = math.exp %428 : vector<2x32xf32>
    %cst_81 = arith.constant 1.000000e+00 : f32
    %430 = vector.broadcast %cst_81 : f32 to vector<2x32xf32>
    %431 = arith.addf %430, %429 : vector<2x32xf32>
    %432 = arith.divf %430, %431 : vector<2x32xf32>
    %433 = vector.extract_strided_slice %420 {offsets = [0, 64], sizes = [2, 32], strides = [1, 1]} : vector<2x128xf32> to vector<2x32xf32>
    %434 = math.tanh %433 : vector<2x32xf32>
    %435 = vector.extract_strided_slice %420 {offsets = [0, 96], sizes = [2, 32], strides = [1, 1]} : vector<2x128xf32> to vector<2x32xf32>
    %436 = arith.negf %435 : vector<2x32xf32>
    %437 = math.exp %436 : vector<2x32xf32>
    %cst_82 = arith.constant 1.000000e+00 : f32
    %438 = vector.broadcast %cst_82 : f32 to vector<2x32xf32>
    %439 = arith.addf %438, %437 : vector<2x32xf32>
    %440 = arith.divf %438, %439 : vector<2x32xf32>
    %441 = arith.mulf %432, %415 : vector<2x32xf32>
    %442 = arith.mulf %426, %434 : vector<2x32xf32>
    %443 = arith.addf %441, %442 : vector<2x32xf32>
    %444 = math.tanh %443 : vector<2x32xf32>
    %445 = arith.mulf %440, %444 : vector<2x32xf32>
    %446 = vector.extract_strided_slice %246 {offsets = [14, 0], sizes = [2, 128], strides = [1, 1]} : vector<16x128xf32> to vector<2x128xf32>
    %cst_83 = arith.constant dense<0.000000e+00> : vector<2x128xf32>
    %447 = tpu.matmul %445, %247, %cst_83 {dimension_numbers = #tpu.dot_dimension_numbers<[1], [0], [0], [1], [0, 0, 1, 1], [], []>} : vector<2x32xf32>, vector<32x128xf32>, vector<2x128xf32> -> vector<2x128xf32>
    %448 = arith.addf %446, %447 : vector<2x128xf32>
    %449 = vector.extract_strided_slice %448 {offsets = [0, 0], sizes = [2, 32], strides = [1, 1]} : vector<2x128xf32> to vector<2x32xf32>
    %450 = arith.negf %449 : vector<2x32xf32>
    %451 = math.exp %450 : vector<2x32xf32>
    %cst_84 = arith.constant 1.000000e+00 : f32
    %452 = vector.broadcast %cst_84 : f32 to vector<2x32xf32>
    %453 = arith.addf %452, %451 : vector<2x32xf32>
    %454 = arith.divf %452, %453 : vector<2x32xf32>
    %455 = vector.extract_strided_slice %448 {offsets = [0, 32], sizes = [2, 32], strides = [1, 1]} : vector<2x128xf32> to vector<2x32xf32>
    %456 = arith.negf %455 : vector<2x32xf32>
    %457 = math.exp %456 : vector<2x32xf32>
    %cst_85 = arith.constant 1.000000e+00 : f32
    %458 = vector.broadcast %cst_85 : f32 to vector<2x32xf32>
    %459 = arith.addf %458, %457 : vector<2x32xf32>
    %460 = arith.divf %458, %459 : vector<2x32xf32>
    %461 = vector.extract_strided_slice %448 {offsets = [0, 64], sizes = [2, 32], strides = [1, 1]} : vector<2x128xf32> to vector<2x32xf32>
    %462 = math.tanh %461 : vector<2x32xf32>
    %463 = vector.extract_strided_slice %448 {offsets = [0, 96], sizes = [2, 32], strides = [1, 1]} : vector<2x128xf32> to vector<2x32xf32>
    %464 = arith.negf %463 : vector<2x32xf32>
    %465 = math.exp %464 : vector<2x32xf32>
    %cst_86 = arith.constant 1.000000e+00 : f32
    %466 = vector.broadcast %cst_86 : f32 to vector<2x32xf32>
    %467 = arith.addf %466, %465 : vector<2x32xf32>
    %468 = arith.divf %466, %467 : vector<2x32xf32>
    %469 = arith.mulf %460, %443 : vector<2x32xf32>
    %470 = arith.mulf %454, %462 : vector<2x32xf32>
    %471 = arith.addf %469, %470 : vector<2x32xf32>
    %472 = math.tanh %471 : vector<2x32xf32>
    %473 = arith.mulf %468, %472 : vector<2x32xf32>
    %cst_87 = arith.constant 0.000000e+00 : f32
    %474 = vector.broadcast %cst_87 : f32 to vector<2x32xf32>
    %475 = tpu.concatenate %7, %474 in 1 : vector<2x32xf32>, vector<2x32xf32> -> vector<2x64xf32>
    %476 = tpu.concatenate %474, %473 in 1 : vector<2x32xf32>, vector<2x32xf32> -> vector<2x64xf32>
    %477 = tpu.concatenate %475, %476 in 0 : vector<2x64xf32>, vector<2x64xf32> -> vector<4x64xf32>
    %478 = arith.truncf %477 : vector<4x64xf32> to vector<4x64xbf16>
    %c0_i32_88 = arith.constant 0 : i32
    %479 = tpu.memref_slice %arg16[%c0_i32_88] : memref<2x!tpu.dma_semaphore, #tpu.memory_space<semaphore_mem>> -> memref<1x!tpu.dma_semaphore, #tpu.memory_space<semaphore_mem>>
    %480 = tpu.memref_squeeze %479 : memref<1x!tpu.dma_semaphore, #tpu.memory_space<semaphore_mem>> -> memref<!tpu.dma_semaphore, #tpu.memory_space<semaphore_mem>>
    tpu.wait_dma2 semaphore(%480 : memref<!tpu.dma_semaphore, #tpu.memory_space<semaphore_mem>>) src(%arg11 : memref<64x5120xbf16, #tpu.memory_space<any>>) dst(%arg14 : memref<64x5120xbf16, #tpu.memory_space<vmem>>)
    %c0_89 = arith.constant 0 : index
    %c0_90 = arith.constant 0 : index
    %481 = vector.load %arg14[%c0_89, %c0_90] : memref<64x5120xbf16, #tpu.memory_space<vmem>>, vector<64x5120xbf16>
    %cst_91 = arith.constant dense<0.000000e+00> : vector<4x5120xf32>
    %482 = tpu.matmul %478, %481, %cst_91 {dimension_numbers = #tpu.dot_dimension_numbers<[1], [0], [0], [1], [0, 0, 1, 1], [], []>} : vector<4x64xbf16>, vector<64x5120xbf16>, vector<4x5120xf32> -> vector<4x5120xf32>
    %483 = vector.extract_strided_slice %482 {offsets = [0, 0], sizes = [2, 5120], strides = [1, 1]} : vector<4x5120xf32> to vector<2x5120xf32>
    %c0_92 = arith.constant 0 : index
    %c0_93 = arith.constant 0 : index
    %484 = vector.load %arg8[%c0_92, %c0_93] : memref<1x5120xf32, #tpu.memory_space<vmem>>, vector<1x5120xf32>
    %485 = vector.broadcast %484 : vector<1x5120xf32> to vector<2x5120xf32>
    %486 = arith.addf %483, %485 : vector<2x5120xf32>
    %487 = math.tanh %486 : vector<2x5120xf32>
    %488 = vector.extract_strided_slice %482 {offsets = [2, 0], sizes = [2, 5120], strides = [1, 1]} : vector<4x5120xf32> to vector<2x5120xf32>
    %c0_94 = arith.constant 0 : index
    %c0_95 = arith.constant 0 : index
    %489 = vector.load %arg9[%c0_94, %c0_95] : memref<1x5120xf32, #tpu.memory_space<vmem>>, vector<1x5120xf32>
    %490 = vector.broadcast %489 : vector<1x5120xf32> to vector<2x5120xf32>
    %491 = arith.addf %488, %490 : vector<2x5120xf32>
    %492 = math.tanh %491 : vector<2x5120xf32>
    %493 = arith.mulf %487, %492 : vector<2x5120xf32>
    %494 = vector.extract_strided_slice %493 {offsets = [0, 0], sizes = [2, 1024], strides = [1, 1]} : vector<2x5120xf32> to vector<2x1024xf32>
    %495 = vector.extract_strided_slice %493 {offsets = [0, 1024], sizes = [2, 1024], strides = [1, 1]} : vector<2x5120xf32> to vector<2x1024xf32>
    %496 = arith.addf %494, %495 : vector<2x1024xf32>
    %497 = vector.extract_strided_slice %493 {offsets = [0, 2048], sizes = [2, 1024], strides = [1, 1]} : vector<2x5120xf32> to vector<2x1024xf32>
    %498 = arith.addf %496, %497 : vector<2x1024xf32>
    %499 = vector.extract_strided_slice %493 {offsets = [0, 3072], sizes = [2, 1024], strides = [1, 1]} : vector<2x5120xf32> to vector<2x1024xf32>
    %500 = arith.addf %498, %499 : vector<2x1024xf32>
    %501 = vector.extract_strided_slice %493 {offsets = [0, 4096], sizes = [2, 1024], strides = [1, 1]} : vector<2x5120xf32> to vector<2x1024xf32>
    %502 = arith.addf %500, %501 : vector<2x1024xf32>
    %503 = math.tanh %502 : vector<2x1024xf32>
    %cst_96 = arith.constant 0.000000e+00 : f32
    %504 = vector.broadcast %cst_96 : f32 to vector<2x1024xf32>
    %505 = arith.maximumf %503, %504 : vector<2x1024xf32>
    %506 = math.sqrt %505 : vector<2x1024xf32>
    %cst_97 = arith.constant 0.000000e+00 : f32
    %507 = vector.broadcast %cst_97 : f32 to vector<2x1024xf32>
    %508 = arith.subf %507, %503 : vector<2x1024xf32>
    %cst_98 = arith.constant 0.000000e+00 : f32
    %509 = vector.broadcast %cst_98 : f32 to vector<2x1024xf32>
    %510 = arith.maximumf %508, %509 : vector<2x1024xf32>
    %511 = math.sqrt %510 : vector<2x1024xf32>
    %512 = arith.subf %506, %511 : vector<2x1024xf32>
    %513 = arith.mulf %512, %512 : vector<2x1024xf32>
    %cst_99 = arith.constant dense<0.000000e+00> : vector<2xf32>
    %514 = vector.multi_reduction <add>, %513, %cst_99 [1] : vector<2x1024xf32> to vector<2xf32>
    %515 = vector.shape_cast %514 : vector<2xf32> to vector<2x1xf32>
    %cst_100 = arith.constant 1.000000e-24 : f32
    %516 = vector.broadcast %cst_100 : f32 to vector<2x1xf32>
    %517 = arith.maximumf %515, %516 : vector<2x1xf32>
    %518 = math.rsqrt %517 : vector<2x1xf32>
    %519 = vector.broadcast %518 : vector<2x1xf32> to vector<2x1024xf32>
    %520 = arith.mulf %512, %519 : vector<2x1024xf32>
    %c1_i32_101 = arith.constant 1 : i32
    %521 = tpu.memref_slice %arg16[%c1_i32_101] : memref<2x!tpu.dma_semaphore, #tpu.memory_space<semaphore_mem>> -> memref<1x!tpu.dma_semaphore, #tpu.memory_space<semaphore_mem>>
    %522 = tpu.memref_squeeze %521 : memref<1x!tpu.dma_semaphore, #tpu.memory_space<semaphore_mem>> -> memref<!tpu.dma_semaphore, #tpu.memory_space<semaphore_mem>>
    tpu.wait_dma2 semaphore(%522 : memref<!tpu.dma_semaphore, #tpu.memory_space<semaphore_mem>>) src(%arg12 : memref<1024x16xbf16, #tpu.memory_space<any>>) dst(%arg15 : memref<1024x16xbf16, #tpu.memory_space<vmem>>)
    %523 = arith.truncf %520 : vector<2x1024xf32> to vector<2x1024xbf16>
    %c0_102 = arith.constant 0 : index
    %c0_103 = arith.constant 0 : index
    %524 = vector.load %arg15[%c0_102, %c0_103] : memref<1024x16xbf16, #tpu.memory_space<vmem>>, vector<1024x16xbf16>
    %cst_104 = arith.constant dense<0.000000e+00> : vector<2x16xf32>
    %525 = tpu.matmul %523, %524, %cst_104 {dimension_numbers = #tpu.dot_dimension_numbers<[1], [0], [0], [1], [0, 0, 1, 1], [], []>} : vector<2x1024xbf16>, vector<1024x16xbf16>, vector<2x16xf32> -> vector<2x16xf32>
    %c0_105 = arith.constant 0 : index
    %c0_106 = arith.constant 0 : index
    %526 = vector.load %arg10[%c0_105, %c0_106] : memref<1x16xf32, #tpu.memory_space<vmem>>, vector<1x16xf32>
    %527 = vector.broadcast %526 : vector<1x16xf32> to vector<2x16xf32>
    %528 = arith.addf %525, %527 : vector<2x16xf32>
    %cst_107 = arith.constant dense<0xFF800000> : vector<2xf32>
    %529 = vector.multi_reduction <maximumf>, %528, %cst_107 [1] : vector<2x16xf32> to vector<2xf32>
    %530 = vector.shape_cast %529 : vector<2xf32> to vector<2x1xf32>
    %531 = vector.broadcast %530 : vector<2x1xf32> to vector<2x16xf32>
    %532 = arith.subf %528, %531 : vector<2x16xf32>
    %533 = math.exp %532 : vector<2x16xf32>
    %cst_108 = arith.constant dense<0.000000e+00> : vector<2xf32>
    %534 = vector.multi_reduction <add>, %533, %cst_108 [1] : vector<2x16xf32> to vector<2xf32>
    %535 = vector.shape_cast %534 : vector<2xf32> to vector<2x1xf32>
    %536 = tpu.reciprocal %535 {approx = true} : vector<2x1xf32> -> vector<2x1xf32>
    %537 = vector.broadcast %536 : vector<2x1xf32> to vector<2x16xf32>
    %538 = arith.mulf %533, %537 : vector<2x16xf32>
    %c0_109 = arith.constant 0 : index
    %c0_110 = arith.constant 0 : index
    %539 = vector.load %arg13[%c0_109, %c0_110] : memref<2x16xf32, #tpu.memory_space<vmem>>, vector<2x16xf32>
    tpu.vector_store %arg13[%c0_109, %c0_110], %538 {strides = array<i32>} : memref<2x16xf32, #tpu.memory_space<vmem>>, vector<2x16xf32>,
    return
  }
}

</mosaic_0001>

<bundles_post_ra>
// kernel: mutan_baseline_forward.1
= control target key start
LH: loop header
LB: loop body
LE: loop exit
PB: predicated region body
PF: predicated region fallthrough
CT: control target
= control target key end

     0   :  { %18 = vsyncpa [#allocation6], 0  ;;  %s6002_s15 = smov [#allocation2]   ;;  %s7203_s0 = inlined_call_operand.vmem [shape: f32[2,16,32], index: 0, kind: input, shape index: {}]   ;;  %s7204_s1 = inlined_call_operand.vmem [shape: f32[16,32], index: 1, kind: input, shape index: {}]   ;;  %s7205_s2 = inlined_call_operand.vmem [shape: f32[32,128], index: 2, kind: input, shape index: {}]   ;;  %s7206_s3 = inlined_call_operand.vmem [shape: f32[32,128], index: 3, kind: input, shape index: {}]   ;;  %s7207_s4 = inlined_call_operand.vmem [shape: f32[1,128], index: 4, kind: input, shape index: {}]   ;;  %s7208_s5 = inlined_call_operand.vmem [shape: f32[32,128], index: 5, kind: input, shape index: {}]   ;;  %s7209_s6 = inlined_call_operand.vmem [shape: f32[32,128], index: 6, kind: input, shape index: {}]   ;;  %s7210_s7 = inlined_call_operand.vmem [shape: f32[1,128], index: 7, kind: input, shape index: {}]   ;;  %s7211_s8 = inlined_call_operand.vmem [shape: f32[1,5120], index: 8, kind: input, shape index: {}]   ;;  %s7212_s9 = inlined_call_operand.vmem [shape: f32[1,5120], index: 9, kind: input, shape index: {}]   ;;  %s7213_s10 = inlined_call_operand.vmem [shape: f32[1,16], index: 10, kind: input, shape index: {}]   ;;  %s7214_s11 = inlined_call_operand.hbm [shape: bf16[64,5120], index: 11, kind: input, shape index: {}]   ;;  %s7215_s12 = inlined_call_operand.vmem [shape: bf16[1024,16], index: 12, kind: input, shape index: {}]   ;;  %s7216_s13 = inlined_call_operand.hbm [shape: f32[2,16], index: 13, kind: output, shape index: {}]  }
   0x1   :  { %s49_s27 = sshll.u32 %s7214_s11, 4  ;;  %v66_v0 = vld [vmem:[%s7215_s12] sm:$0xff]  ;;  %v68_v1 = vld [vmem:[%s7215_s12 + $0x8] sm:$0xff]  ;;  %s51_s16 = sshll.u32 %s6002_s15, 4  ;;  %v70_v2 = vld [vmem:[%s7215_s12 + $0x10] sm:$0xff]  ;;  %s50_s27 = int_to_ptr.hbm [resolvable:$true] %s49_s27  ;;  %s52_s16 = int_to_ptr.vmem [resolvable:$true] %s51_s16 }
   0x2   :  { %67 = vst [vmem:[#allocation3 + $0xb0] sm:$0xff] %v66_v0  ;;  %v72_v3 = vld [vmem:[%s7215_s12 + $0x18] sm:$0xff]  ;;  %v74_v4 = vld [vmem:[%s7215_s12 + $0x20] sm:$0xff]  ;;  %54 = dma.hbm_to_vmem [thread:$0]  %s50_s27, 20480, %s52_s16, [#allocation4]  ;;  %v76_v5 = vld [vmem:[%s7215_s12 + $0x28] sm:$0xff] }
   0x3   :  { %69 = vst [vmem:[#allocation3 + $0x1b0] sm:$0xff] %v68_v1  ;;  %v78_v6 = vld [vmem:[%s7215_s12 + $0x30] sm:$0xff]  ;;  %v80_v7 = vld [vmem:[%s7215_s12 + $0x38] sm:$0xff]  ;;  %v82_v8 = vld [vmem:[%s7215_s12 + $0x40] sm:$0xff] }
   0x4   :  { %71 = vst [vmem:[#allocation3 + $0xd8] sm:$0xff] %v70_v2  ;;  %v84_v9 = vld [vmem:[%s7215_s12 + $0x48] sm:$0xff]  ;;  %v86_v10 = vld [vmem:[%s7215_s12 + $0x50] sm:$0xff]  ;;  %v88_v11 = vld [vmem:[%s7215_s12 + $0x58] sm:$0xff] }
   0x5   :  { %73 = vst [vmem:[#allocation3 + $0x18] sm:$0xff] %v72_v3  ;;  %v90_v12 = vld [vmem:[%s7215_s12 + $0x60] sm:$0xff]  ;;  %v92_v13 = vld [vmem:[%s7215_s12 + $0x68] sm:$0xff]  ;;  %v94_v14 = vld [vmem:[%s7215_s12 + $0x70] sm:$0xff] }
   0x6   :  { %75 = vst [vmem:[#allocation3 + $0x50] sm:$0xff] %v74_v4  ;;  %v96_v15 = vld [vmem:[%s7215_s12 + $0x78] sm:$0xff]  ;;  %v98_v16 = vld [vmem:[%s7215_s12 + $0x80] sm:$0xff]  ;;  %v100_v17 = vld [vmem:[%s7215_s12 + $0x88] sm:$0xff] }
   0x7   :  { %77 = vst [vmem:[#allocation3 + $0x168] sm:$0xff] %v76_v5  ;;  %v102_v18 = vld [vmem:[%s7215_s12 + $0x90] sm:$0xff]  ;;  %v104_v19 = vld [vmem:[%s7215_s12 + $0x98] sm:$0xff]  ;;  %v106_v20 = vld [vmem:[%s7215_s12 + $0xa0] sm:$0xff] }
   0x8   :  { %79 = vst [vmem:[#allocation3 + $0x130] sm:$0xff] %v78_v6  ;;  %v108_v21 = vld [vmem:[%s7215_s12 + $0xa8] sm:$0xff]  ;;  %v110_v22 = vld [vmem:[%s7215_s12 + $0xb0] sm:$0xff]  ;;  %v112_v23 = vld [vmem:[%s7215_s12 + $0xb8] sm:$0xff] }
   0x9   :  { %81 = vst [vmem:[#allocation3 + $0x48] sm:$0xff] %v80_v7  ;;  %v114_v24 = vld [vmem:[%s7215_s12 + $0xc0] sm:$0xff]  ;;  %v116_v25 = vld [vmem:[%s7215_s12 + $0xc8] sm:$0xff]  ;;  %v118_v26 = vld [vmem:[%s7215_s12 + $0xd0] sm:$0xff] }
   0xa   :  { %83 = vst [vmem:[#allocation3 + $0x180] sm:$0xff] %v82_v8  ;;  %v120_v27 = vld [vmem:[%s7215_s12 + $0xd8] sm:$0xff]  ;;  %v122_v28 = vld [vmem:[%s7215_s12 + $0xe0] sm:$0xff]  ;;  %v124_v29 = vld [vmem:[%s7215_s12 + $0xe8] sm:$0xff] }
   0xb   :  { %85 = vst [vmem:[#allocation3 + $0x110] sm:$0xff] %v84_v9  ;;  %v126_v30 = vld [vmem:[%s7215_s12 + $0xf0] sm:$0xff]  ;;  %v128_v31 = vld [vmem:[%s7215_s12 + $0xf8] sm:$0xff]  ;;  %v130_v32 = vld [vmem:[%s7215_s12 + $0x100] sm:$0xff] }
   0xc   :  { %87 = vst [vmem:[#allocation3 + $0x118] sm:$0xff] %v86_v10  ;;  %v132_v33 = vld [vmem:[%s7215_s12 + $0x108] sm:$0xff]  ;;  %v134_v34 = vld [vmem:[%s7215_s12 + $0x110] sm:$0xff]  ;;  %v136_v35 = vld [vmem:[%s7215_s12 + $0x118] sm:$0xff] }
   0xd   :  { %89 = vst [vmem:[#allocation3 + $0x98] sm:$0xff] %v88_v11  ;;  %v138_v36 = vld [vmem:[%s7215_s12 + $0x120] sm:$0xff]  ;;  %v140_v37 = vld [vmem:[%s7215_s12 + $0x128] sm:$0xff]  ;;  %v142_v38 = vld [vmem:[%s7215_s12 + $0x130] sm:$0xff] }
   0xe   :  { %91 = vst [vmem:[#allocation3 + $0x120] sm:$0xff] %v90_v12  ;;  %v144_v39 = vld [vmem:[%s7215_s12 + $0x138] sm:$0xff]  ;;  %v146_v40 = vld [vmem:[%s7215_s12 + $0x140] sm:$0xff]  ;;  %v148_v41 = vld [vmem:[%s7215_s12 + $0x148] sm:$0xff] }
   0xf   :  { %93 = vst [vmem:[#allocation3 + $0x150] sm:$0xff] %v92_v13  ;;  %v150_v42 = vld [vmem:[%s7215_s12 + $0x150] sm:$0xff]  ;;  %v152_v43 = vld [vmem:[%s7215_s12 + $0x158] sm:$0xff]  ;;  %v154_v44 = vld [vmem:[%s7215_s12 + $0x160] sm:$0xff] }
  0x10   :  { %95 = vst [vmem:[#allocation3 + $0x108] sm:$0xff] %v94_v14  ;;  %v156_v45 = vld [vmem:[%s7215_s12 + $0x168] sm:$0xff]  ;;  %v158_v46 = vld [vmem:[%s7215_s12 + $0x170] sm:$0xff]  ;;  %v160_v47 = vld [vmem:[%s7215_s12 + $0x178] sm:$0xff] }
  0x11   :  { %97 = vst [vmem:[#allocation3 + $0x60] sm:$0xff] %v96_v15  ;;  %v162_v48 = vld [vmem:[%s7215_s12 + $0x180] sm:$0xff]  ;;  %v164_v49 = vld [vmem:[%s7215_s12 + $0x188] sm:$0xff]  ;;  %v166_v50 = vld [vmem:[%s7215_s12 + $0x190] sm:$0xff] }
  0x12   :  { %99 = vst [vmem:[#allocation3 + $0xe0] sm:$0xff] %v98_v16  ;;  %v168_v51 = vld [vmem:[%s7215_s12 + $0x198] sm:$0xff]  ;;  %v170_v52 = vld [vmem:[%s7215_s12 + $0x1a0] sm:$0xff]  ;;  %v172_v53 = vld [vmem:[%s7215_s12 + $0x1a8] sm:$0xff] }
  0x13   :  { %101 = vst [vmem:[#allocation3 + $0x188] sm:$0xff] %v100_v17  ;;  %v174_v54 = vld [vmem:[%s7215_s12 + $0x1b0] sm:$0xff]  ;;  %v176_v55 = vld [vmem:[%s7215_s12 + $0x1b8] sm:$0xff]  ;;  %v178_v56 = vld [vmem:[%s7215_s12 + $0x1c0] sm:$0xff] }
  0x14   :  { %103 = vst [vmem:[#allocation3 + $0x138] sm:$0xff] %v102_v18  ;;  %v180_v57 = vld [vmem:[%s7215_s12 + $0x1c8] sm:$0xff]  ;;  %v182_v58 = vld [vmem:[%s7215_s12 + $0x1d0] sm:$0xff]  ;;  %v184_v59 = vld [vmem:[%s7215_s12 + $0x1d8] sm:$0xff] }
  0x15   :  { %105 = vst [vmem:[#allocation3 + $0x140] sm:$0xff] %v104_v19  ;;  %v186_v60 = vld [vmem:[%s7215_s12 + $0x1e0] sm:$0xff]  ;;  %v188_v61 = vld [vmem:[%s7215_s12 + $0x1e8] sm:$0xff]  ;;  %v190_v62 = vld [vmem:[%s7215_s12 + $0x1f0] sm:$0xff] }
  0x16   :  { %107 = vst [vmem:[#allocation3 + $0x80] sm:$0xff] %v106_v20  ;;  %v192_v63 = vld [vmem:[%s7215_s12 + $0x1f8] sm:$0xff] }
  0x17   :  { %109 = vst [vmem:[#allocation3 + $0x1a8] sm:$0xff] %v108_v21 }
  0x18   :  { %111 = vst [vmem:[#allocation3 + $0x1b8] sm:$0xff] %v110_v22 }
  0x19   :  { %113 = vst [vmem:[#allocation3 + $0x28] sm:$0xff] %v112_v23 }
  0x1a   :  { %115 = vst [vmem:[#allocation3 + $0x1e8] sm:$0xff] %v114_v24 }
  0x1b   :  { %117 = vst [vmem:[#allocation3 + $0xf8] sm:$0xff] %v116_v25 }
  0x1c   :  { %119 = vst [vmem:[#allocation3 + $0x160] sm:$0xff] %v118_v26 }
  0x1d   :  { %121 = vst [vmem:[#allocation3 + $0x30] sm:$0xff] %v120_v27 }
  0x1e   :  { %123 = vst [vmem:[#allocation3 + $0x1e0] sm:$0xff] %v122_v28 }
  0x1f   :  { %125 = vst [vmem:[#allocation3] sm:$0xff] %v124_v29 }
  0x20   :  { %127 = vst [vmem:[#allocation3 + $0xf0] sm:$0xff] %v126_v30 }
  0x21   :  { %129 = vst [vmem:[#allocation3 + $0x8] sm:$0xff] %v128_v31 }
  0x22   :  { %131 = vst [vmem:[#allocation3 + $0x148] sm:$0xff] %v130_v32 }
  0x23   :  { %133 = vst [vmem:[#allocation3 + $0x1d0] sm:$0xff] %v132_v33 }
  0x24   :  { %135 = vst [vmem:[#allocation3 + $0x100] sm:$0xff] %v134_v34 }
  0x25   :  { %137 = vst [vmem:[#allocation3 + $0xc8] sm:$0xff] %v136_v35 }
  0x26   :  { %139 = vst [vmem:[#allocation3 + $0x40] sm:$0xff] %v138_v36 }
  0x27   :  { %141 = vst [vmem:[#allocation3 + $0x1f8] sm:$0xff] %v140_v37 }
  0x28   :  { %143 = vst [vmem:[#allocation3 + $0x20] sm:$0xff] %v142_v38 }
  0x29   :  { %145 = vst [vmem:[#allocation3 + $0x128] sm:$0xff] %v144_v39 }
  0x2a   :  { %147 = vst [vmem:[#allocation3 + $0x1a0] sm:$0xff] %v146_v40 }
  0x2b   :  { %149 = vst [vmem:[#allocation3 + $0x1f0] sm:$0xff] %v148_v41 }
  0x2c   :  { %151 = vst [vmem:[#allocation3 + $0xe8] sm:$0xff] %v150_v42 }
  0x2d   :  { %153 = vst [vmem:[#allocation3 + $0x78] sm:$0xff] %v152_v43 }
  0x2e   :  { %155 = vst [vmem:[#allocation3 + $0x70] sm:$0xff] %v154_v44 }
  0x2f   :  { %157 = vst [vmem:[#allocation3 + $0x90] sm:$0xff] %v156_v45 }
  0x30   :  { %159 = vst [vmem:[#allocation3 + $0x1d8] sm:$0xff] %v158_v46 }
  0x31   :  { %161 = vst [vmem:[#allocation3 + $0xd0] sm:$0xff] %v160_v47 }
  0x32   :  { %163 = vst [vmem:[#allocation3 + $0xb8] sm:$0xff] %v162_v48 }
  0x33   :  { %165 = vst [vmem:[#allocation3 + $0x88] sm:$0xff] %v164_v49 }
  0x34   :  { %167 = vst [vmem:[#allocation3 + $0xa8] sm:$0xff] %v166_v50 }
  0x35   :  { %169 = vst [vmem:[#allocation3 + $0x1c8] sm:$0xff] %v168_v51 }
  0x36   :  { %171 = vst [vmem:[#allocation3 + $0x170] sm:$0xff] %v170_v52 }
  0x37   :  { %173 = vst [vmem:[#allocation3 + $0x178] sm:$0xff] %v172_v53 }
  0x38   :  { %175 = vst [vmem:[#allocation3 + $0x68] sm:$0xff] %v174_v54 }
  0x39   :  { %177 = vst [vmem:[#allocation3 + $0x190] sm:$0xff] %v176_v55 }
  0x3a   :  { %179 = vst [vmem:[#allocation3 + $0x198] sm:$0xff] %v178_v56 }
  0x3b   :  { %181 = vst [vmem:[#allocation3 + $0x38] sm:$0xff] %v180_v57 }
  0x3c   :  { %183 = vst [vmem:[#allocation3 + $0xc0] sm:$0xff] %v182_v58 }
  0x3d   :  { %185 = vst [vmem:[#allocation3 + $0x1c0] sm:$0xff] %v184_v59 }
  0x3e   :  { %187 = vst [vmem:[#allocation3 + $0x158] sm:$0xff] %v186_v60 }
  0x3f   :  { %189 = vst [vmem:[#allocation3 + $0x10] sm:$0xff] %v188_v61 }
  0x40   :  { %191 = vst [vmem:[#allocation3 + $0x58] sm:$0xff] %v190_v62 }
  0x41   :  { %193 = vst [vmem:[#allocation3 + $0xa0] sm:$0xff] %v192_v63 }
  0x42   :  { %199 = vsyncadd [#allocation4 + $0x1], 8192  ;;  %v230_v0 = vld [vmem:[%s7205_s2 + $0x18] sm:$0xff]  ;;  %v229_v1 = vld [vmem:[%s7205_s2 + $0x10] sm:$0xff]  ;;  %vm204_vm0 = vcmask 261120   ;;  %v6003_v9 = vmov 0.0  }
  0x43   :  { %253 = vmatpush.msra.mxu0 %v230_v0  ;;  %v267_v2 = vld [vmem:[%s7206_s3 + $0x18] sm:$0xff]  ;;  %v266_v3 = vld [vmem:[%s7206_s3 + $0x10] sm:$0xff]  ;;  %v228_v4 = vld [vmem:[%s7205_s2 + $0x8] sm:$0xff]  ;;  %s6004_s14 = smov 64   ;;  %vm814_vm13 = vcmask 1041408   ;;  %vm816_vm14 = vcmask 1043456  }
  0x44   :  { %283 = vmatpush.msra.mxu1 %v267_v2  ;;  %346 = vmatpush.msra.mxu2 %v267_v2  ;;  %v265_v5 = vld [vmem:[%s7206_s3 + $0x8] sm:$0xff]  ;;  %v227_v6 = vld [vmem:[%s7205_s2] sm:$0xff] }
  0x45   :  { %254 = vmatpush.msra.mxu0 %v229_v1  ;;  %416 = vmatpush.msra.mxu3 %v267_v2  ;;  %v225_v7 = vld [vmem:[%s7204_s1] sm:$0xff] }
  0x46   :  { %284 = vmatpush.msra.mxu1 %v266_v3  ;;  %347 = vmatpush.msra.mxu2 %v266_v3  ;;  %v264_v8 = vld [vmem:[%s7206_s3] sm:$0xff] }
  0x47   :  { %255 = vmatpush.msra.mxu0 %v228_v4  ;;  %417 = vmatpush.msra.mxu3 %v266_v3  ;;  %v6304_v10 = vld [vmem:[%s7207_s4] ss:$0 sm:$0xff]  ;;  %s6005_s4 = smov 32  }
  0x48   :  { %285 = vmatpush.msra.mxu1 %v265_v5  ;;  %348 = vmatpush.msra.mxu2 %v265_v5 }
  0x49   :  { %256 = vmatpush.msra.mxu0 %v227_v6  ;;  %418 = vmatpush.msra.mxu3 %v265_v5 }
  0x4a   :  { %4402 = vmatmul.msk.f32.vlgmr.msra.gmra.mxu0 %vm204_vm0, %v225_v7  ;;  %286 = vmatpush.msra.mxu1 %v264_v8 }
  0x4b   :  { %287 = vmatmul.f32.vlgmr.msra.gmra.mxu1 %v6003_v9  ;;  %349 = vmatpush.msra.mxu2 %v264_v8 }
  0x4c   :  { %419 = vmatpush.msra.mxu3 %v264_v8  ;;  %486 = vmatpush.msrb.mxu1 %v267_v2 }
  0x4d   :  { %556 = vmatpush.msrb.mxu2 %v267_v2  ;;  %692 = vmatpush.msrb.mxu0 %v267_v2 }
  0x4e   :  { %622 = vmatpush.msrb.mxu3 %v267_v2  ;;  %487 = vmatpush.msrb.mxu1 %v266_v3 }
  0x4f   :  { %557 = vmatpush.msrb.mxu2 %v266_v3  ;;  %693 = vmatpush.msrb.mxu0 %v266_v3 }
  0x50   :  { %623 = vmatpush.msrb.mxu3 %v266_v3  ;;  %488 = vmatpush.msrb.mxu1 %v265_v5 }
  0x51   :  { %558 = vmatpush.msrb.mxu2 %v265_v5  ;;  %694 = vmatpush.msrb.mxu0 %v265_v5 }
  0x52   :  { %624 = vmatpush.msrb.mxu3 %v265_v5  ;;  %489 = vmatpush.msrb.mxu1 %v264_v8 }
  0x53   :  { %559 = vmatpush.msrb.mxu2 %v264_v8  ;;  %695 = vmatpush.msrb.mxu0 %v264_v8 }
  0x54   :  { %625 = vmatpush.msrb.mxu3 %v264_v8  ;;  %762 = vmatpush.msra.mxu1 %v267_v2 }
  0x56   :  { %763 = vmatpush.msra.mxu1 %v266_v3 }
  0x58   :  { %764 = vmatpush.msra.mxu1 %v265_v5 }
  0x5a   :  { %765 = vmatpush.msra.mxu1 %v264_v8 }
  0xc7   :  { %v258_v11 = vpop.f32.mrf.mxu0 }
  0xc8   :  { %v6307_v12 = vadd.f32 %v6304_v10, %v258_v11  ;;  %v288_v13 = vpop.f32.mrf.mxu1 }
  0xca   :  { %v291_v14 = vadd.f32 %v288_v13, %v6307_v12 }
  0xcc   :  { %5605 = vtanh.f32 %v291_v14  ;;  %v4404_v16 = vmul.f32 -1.442695, %v291_v14 }
  0xce   :  { %5607 = vpow2.f32 %v4404_v16 }
  0xd2   :  { %v5606_v15 = vpop.eup %5605 }
  0xd3   :  { %314 = vrot.lane.b32.xlu0 %v5606_v15, %s6004_s14 }
  0xd4   :  { %v5608_v17 = vpop.eup %5607 }
  0xd5   :  { %v295_v18 = vadd.f32 1.0, %v5608_v17 }
  0xd7   :  { %5609 = vrcp.f32 %v295_v18  ;;  %v307_v24 = vand.u32 2147483648, %v295_v18  ;;  %vm301_vm2 = vweird.f32 %v295_v18  ;;  %v305_v25 = vand.u32 2147483647, %v295_v18 }
  0xd9   :  { %v308_v27 = vor.u32 1.1754944e-38, %v307_v24  ;;  %vm306_vm4 = vcmp.eq.f32.partialorder %v305_v25, 8.507059e+37 }
  0xdd   :  { %v5610_v19 = vpop.eup %5609 }
  0xde   :  { %v297_v20 = vmul.f32 %v5610_v19, %v295_v18  ;;  %vm302_vm1 = vweird.f32 %v5610_v19 }
  0xdf   :  { %vm303_vm3 = vmor %vm301_vm2, %vm302_vm1 }
  0xe0   :  { %v298_v21 = vsub.f32 1.0, %v297_v20 }
  0xe2   :  { %v299_v22 = vmul.f32 %v5610_v19, %v298_v21 }
  0xe4   :  { %v300_v23 = vadd.f32 %v5610_v19, %v299_v22 }
  0xe6   :  { %v304_v26 = vsel %vm303_vm3, %v5610_v19, %v300_v23 }
  0xe7   :  { %v309_v29 = vsel %vm306_vm4, %v308_v27, %v304_v26  ;;  %vm818_vm4 = vcmask 1045504  }
  0xe8   :  { %v312_v31 = vmul.f32 0.0, %v309_v29 }
 0x145   :  { %v315_v28 = vpop.permute.xlu0 %314 }
 0x146   :  { %v317_v30 = vmul.f32 %v315_v28, %v309_v29 }
 0x148   :  { %319 = vrot.lane.b32.xlu0 %v317_v30, %s6005_s4 }
 0x1ba   :  { %v320_v32 = vpop.permute.xlu0 %319 }
 0x1bb   :  { %v322_v33 = vadd.f32 %v320_v32, %v312_v31 }
 0x1bd   :  { %5611 = vtanh.f32 %v322_v33  ;;  %v379_v57 = vrot.slane %v322_v33, 6 }
 0x1c3   :  { %v5612_v34 = vpop.eup %5611 }
 0x1c4   :  { %325 = vrot.lane.b32.xlu1 %v5612_v34, %s6004_s14 }
 0x236   :  { %v326_v35 = vpop.permute.xlu1 %325 }
 0x237   :  { %v6313_v36 = vmul.f32 %v326_v35, %v309_v29 }
 0x239   :  { %330 = vrot.lane.b32.xlu1 %v6313_v36, %s6005_s4 }
 0x2ab   :  { %v331_v37 = vpop.permute.xlu1 %330 }
 0x2ac   :  { %4405 = vmatmul.msk.f32.vlgmr.msra.gmra.mxu2 %vm204_vm0, %v331_v37 }
 0x32f   :  { %v351_v38 = vpop.f32.mrf.mxu2 }
 0x330   :  { %v355_v39 = vrot.slane %v351_v38, 6 }
 0x332   :  { %v357_v40 = vadd.f32 %v355_v39, %v6307_v12 }
 0x334   :  { %5613 = vtanh.f32 %v357_v40  ;;  %v4406_v42 = vmul.f32 -1.442695, %v357_v40 }
 0x336   :  { %5615 = vpow2.f32 %v4406_v42 }
 0x33a   :  { %v5614_v41 = vpop.eup %5613 }
 0x33b   :  { %383 = vrot.lane.b32.xlu2 %v5614_v41, %s6004_s14 }
 0x33c   :  { %v5616_v43 = vpop.eup %5615 }
 0x33d   :  { %v361_v44 = vadd.f32 1.0, %v5616_v43 }
 0x33f   :  { %5617 = vrcp.f32 %v361_v44  ;;  %v373_v50 = vand.u32 2147483648, %v361_v44  ;;  %vm367_vm6 = vweird.f32 %v361_v44  ;;  %v371_v51 = vand.u32 2147483647, %v361_v44 }
 0x341   :  { %v374_v53 = vor.u32 1.1754944e-38, %v373_v50  ;;  %vm372_vm8 = vcmp.eq.f32.partialorder %v371_v51, 8.507059e+37 }
 0x345   :  { %v5618_v45 = vpop.eup %5617 }
 0x346   :  { %v363_v46 = vmul.f32 %v5618_v45, %v361_v44  ;;  %vm368_vm5 = vweird.f32 %v5618_v45 }
 0x347   :  { %vm369_vm7 = vmor %vm367_vm6, %vm368_vm5 }
 0x348   :  { %v364_v47 = vsub.f32 1.0, %v363_v46 }
 0x34a   :  { %v365_v48 = vmul.f32 %v5618_v45, %v364_v47 }
 0x34c   :  { %v366_v49 = vadd.f32 %v5618_v45, %v365_v48 }
 0x34e   :  { %v370_v52 = vsel %vm369_vm7, %v5618_v45, %v366_v49 }
 0x34f   :  { %v375_v55 = vsel %vm372_vm8, %v374_v53, %v370_v52 }
 0x350   :  { %v381_v58 = vmul.f32 %v379_v57, %v375_v55 }
 0x395   :  { %v384_v54 = vpop.permute.xlu2 %383 }
 0x396   :  { %v386_v56 = vmul.f32 %v384_v54, %v375_v55 }
 0x398   :  { %388 = vrot.lane.b32.xlu2 %v386_v56, %s6005_s4 }
 0x3f2   :  { %v389_v59 = vpop.permute.xlu2 %388 }
 0x3f3   :  { %v391_v60 = vadd.f32 %v389_v59, %v381_v58 }
 0x3f5   :  { %5619 = vtanh.f32 %v391_v60  ;;  %v449_v24 = vrot.slane %v391_v60, 6 }
 0x3fb   :  { %v5620_v61 = vpop.eup %5619 }
 0x3fc   :  { %394 = vrot.lane.b32.xlu0 %v5620_v61, %s6004_s14 }
 0x46e   :  { %v395_v62 = vpop.permute.xlu0 %394 }
 0x46f   :  { %v397_v63 = vmul.f32 %v395_v62, %v375_v55  ;;  %v226_v62 = vld [vmem:[%s7204_s1 + $0x8] sm:$0xff] }
 0x470   :  { %4403 = vmatmul.msk.f32.gmra.mxu0 %vm204_vm0, %v226_v62 }
 0x471   :  { %v399_v0 = vrot.slane %v397_v63, 2  ;;  %v815_v31 = vsel %vm814_vm13, %v6313_v36, %v397_v63 }
 0x473   :  { %400 = vrot.lane.b32.xlu1 %v399_v0, %s6005_s4 }
 0x4e5   :  { %v401_v1 = vpop.permute.xlu1 %400 }
 0x4e6   :  { %4407 = vmatmul.msk.f32.vlgmr.msra.gmra.mxu3 %vm204_vm0, %v401_v1 }
 0x4ed   :  { %v261_v0 = vpop.f32.mrf.mxu0 }
 0x4ee   :  { %v6345_v1 = vadd.f32 %v6304_v10, %v261_v0 }
 0x569   :  { %v421_v2 = vpop.f32.mrf.mxu3 }
 0x56a   :  { %v425_v3 = vrot.slane %v421_v2, 4 }
 0x56c   :  { %v427_v4 = vadd.f32 %v425_v3, %v6307_v12 }
 0x56e   :  { %5621 = vtanh.f32 %v427_v4  ;;  %v4408_v6 = vmul.f32 -1.442695, %v427_v4 }
 0x570   :  { %5623 = vpow2.f32 %v4408_v6 }
 0x574   :  { %v5622_v5 = vpop.eup %5621 }
 0x575   :  { %453 = vrot.lane.b32.xlu2 %v5622_v5, %s6004_s14 }
 0x576   :  { %v5624_v7 = vpop.eup %5623 }
 0x577   :  { %v431_v8 = vadd.f32 1.0, %v5624_v7 }
 0x579   :  { %5625 = vrcp.f32 %v431_v8  ;;  %v443_v17 = vand.u32 2147483648, %v431_v8  ;;  %vm437_vm10 = vweird.f32 %v431_v8  ;;  %v441_v18 = vand.u32 2147483647, %v431_v8 }
 0x57b   :  { %v444_v20 = vor.u32 1.1754944e-38, %v443_v17  ;;  %vm442_vm12 = vcmp.eq.f32.partialorder %v441_v18, 8.507059e+37 }
 0x57f   :  { %v5626_v11 = vpop.eup %5625 }
 0x580   :  { %v433_v13 = vmul.f32 %v5626_v11, %v431_v8  ;;  %vm438_vm9 = vweird.f32 %v5626_v11 }
 0x581   :  { %vm439_vm11 = vmor %vm437_vm10, %vm438_vm9 }
 0x582   :  { %v434_v14 = vsub.f32 1.0, %v433_v13 }
 0x584   :  { %v435_v15 = vmul.f32 %v5626_v11, %v434_v14 }
 0x586   :  { %v436_v16 = vadd.f32 %v5626_v11, %v435_v15 }
 0x588   :  { %v440_v19 = vsel %vm439_vm11, %v5626_v11, %v436_v16 }
 0x589   :  { %v445_v22 = vsel %vm442_vm12, %v444_v20, %v440_v19 }
 0x58a   :  { %v451_v25 = vmul.f32 %v449_v24, %v445_v22  ;;  %v824_v24 = vld [vmem:[%s7208_s5 + $0x8] sm:$0xff] }
 0x5cf   :  { %v454_v21 = vpop.permute.xlu2 %453 }
 0x5d0   :  { %v456_v23 = vmul.f32 %v454_v21, %v445_v22 }
 0x5d2   :  { %458 = vrot.lane.b32.xlu0 %v456_v23, %s6005_s4  ;;  %v825_v23 = vld [vmem:[%s7208_s5 + $0x10] sm:$0xff] }
 0x644   :  { %v459_v26 = vpop.permute.xlu0 %458 }
 0x645   :  { %v461_v27 = vadd.f32 %v459_v26, %v451_v25  ;;  %v823_v25 = vld [vmem:[%s7208_s5] sm:$0xff] }
 0x647   :  { %5627 = vtanh.f32 %v461_v27  ;;  %v519_v53 = vrot.slane %v461_v27, 6 }
 0x64d   :  { %v5628_v28 = vpop.eup %5627 }
 0x64e   :  { %464 = vrot.lane.b32.xlu1 %v5628_v28, %s6004_s14 }
 0x6c0   :  { %v465_v29 = vpop.permute.xlu1 %464 }
 0x6c1   :  { %v467_v30 = vmul.f32 %v465_v29, %v445_v22  ;;  %v826_v22 = vld [vmem:[%s7208_s5 + $0x18] sm:$0xff] }
 0x6c2   :  { %853 = vmatpush.msra.mxu2 %v826_v22 }
 0x6c3   :  { %v469_v32 = vrot.slane %v467_v30, 4  ;;  %v817_v33 = vsel %vm816_vm14, %v815_v31, %v467_v30 }
 0x6c4   :  { %854 = vmatpush.msra.mxu2 %v825_v23 }
 0x6c5   :  { %470 = vrot.lane.b32.xlu2 %v469_v32, %s6005_s4 }
 0x6c6   :  { %855 = vmatpush.msra.mxu2 %v824_v24 }
 0x6c8   :  { %856 = vmatpush.msra.mxu2 %v823_v25 }
 0x71f   :  { %v471_v34 = vpop.permute.xlu2 %470 }
 0x720   :  { %4409 = vmatmul.msk.f32.vlgmr.msrb.gmra.mxu1 %vm204_vm0, %v471_v34  ;;  %v6375_v34 = vld [vmem:[%s7209_s6 + $0x18] sm:$0xff] }
 0x721   :  { %880 = vmatpush.msra.mxu3 %v6375_v34  ;;  %943 = vmatpush.msra.mxu0 %v6375_v34 }
 0x722   :  { %1013 = vmatpush.msrb.mxu1 %v6375_v34 }
 0x79d   :  { %v491_v35 = vpop.f32.mrf.mxu1 }
 0x79e   :  { %v495_v37 = vrot.slane %v491_v35, 2  ;;  %v6380_v35 = vld [vmem:[%s7209_s6 + $0x10] sm:$0xff] }
 0x79f   :  { %881 = vmatpush.msra.mxu3 %v6380_v35  ;;  %944 = vmatpush.msra.mxu0 %v6380_v35 }
 0x7a0   :  { %v497_v38 = vadd.f32 %v495_v37, %v6307_v12  ;;  %v6387_v37 = vld [vmem:[%s7209_s6 + $0x8] sm:$0xff]  ;;  %1014 = vmatpush.msrb.mxu1 %v6380_v35 }
 0x7a1   :  { %882 = vmatpush.msra.mxu3 %v6387_v37  ;;  %945 = vmatpush.msra.mxu0 %v6387_v37 }
 0x7a2   :  { %5629 = vtanh.f32 %v497_v38  ;;  %v4410_v40 = vmul.f32 -1.442695, %v497_v38  ;;  %v6396_v38 = vld [vmem:[%s7209_s6] sm:$0xff]  ;;  %1015 = vmatpush.msrb.mxu1 %v6387_v37 }
 0x7a3   :  { %883 = vmatpush.msra.mxu3 %v6396_v38  ;;  %946 = vmatpush.msra.mxu0 %v6396_v38 }
 0x7a4   :  { %5631 = vpow2.f32 %v4410_v40  ;;  %1016 = vmatpush.msrb.mxu1 %v6396_v38 }
 0x7a8   :  { %v5630_v39 = vpop.eup %5629 }
 0x7a9   :  { %523 = vrot.lane.b32.xlu0 %v5630_v39, %s6004_s14 }
 0x7aa   :  { %v5632_v41 = vpop.eup %5631 }
 0x7ab   :  { %v501_v36 = vadd.f32 1.0, %v5632_v41 }
 0x7ad   :  { %5633 = vrcp.f32 %v501_v36  ;;  %v513_v47 = vand.u32 2147483648, %v501_v36  ;;  %vm507_vm1 = vweird.f32 %v501_v36  ;;  %v511_v48 = vand.u32 2147483647, %v501_v36 }
 0x7af   :  { %v514_v49 = vor.u32 1.1754944e-38, %v513_v47  ;;  %vm512_vm3 = vcmp.eq.f32.partialorder %v511_v48, 8.507059e+37 }
 0x7b3   :  { %v5634_v42 = vpop.eup %5633 }
 0x7b4   :  { %v503_v43 = vmul.f32 %v5634_v42, %v501_v36  ;;  %vm508_vm15 = vweird.f32 %v5634_v42  ;;  %v6421_v36 = vld [vmem:[%s7210_s7] ss:$0 sm:$0xff] }
 0x7b5   :  { %vm509_vm2 = vmor %vm507_vm1, %vm508_vm15 }
 0x7b6   :  { %v504_v44 = vsub.f32 1.0, %v503_v43 }
 0x7b8   :  { %v505_v45 = vmul.f32 %v5634_v42, %v504_v44 }
 0x7ba   :  { %v506_v46 = vadd.f32 %v5634_v42, %v505_v45 }
 0x7bc   :  { %v510_v12 = vsel %vm509_vm2, %v5634_v42, %v506_v46 }
 0x7bd   :  { %v515_v51 = vsel %vm512_vm3, %v514_v49, %v510_v12 }
 0x7be   :  { %v521_v54 = vmul.f32 %v519_v53, %v515_v51 }
 0x81b   :  { %v524_v50 = vpop.permute.xlu0 %523 }
 0x81c   :  { %v526_v52 = vmul.f32 %v524_v50, %v515_v51 }
 0x81e   :  { %528 = vrot.lane.b32.xlu1 %v526_v52, %s6005_s4 }
 0x890   :  { %v529_v55 = vpop.permute.xlu1 %528 }
 0x891   :  { %v531_v56 = vadd.f32 %v529_v55, %v521_v54 }
 0x893   :  { %5635 = vtanh.f32 %v531_v56  ;;  %v586_v26 = vrot.slane %v531_v56, 6 }
 0x899   :  { %v5636_v57 = vpop.eup %5635 }
 0x89a   :  { %534 = vrot.lane.b32.xlu2 %v5636_v57, %s6004_s14 }
 0x8f4   :  { %v535_v58 = vpop.permute.xlu2 %534 }
 0x8f5   :  { %v537_v59 = vmul.f32 %v535_v58, %v515_v51 }
 0x8f7   :  { %v539_v60 = vrot.slane %v537_v59, 6  ;;  %v819_v61 = vsel %vm818_vm4, %v817_v33, %v537_v59 }
 0x8f9   :  { %540 = vrot.lane.b32.xlu0 %v539_v60, %s6005_s4 }
 0x96b   :  { %v541_v63 = vpop.permute.xlu0 %540 }
 0x96c   :  { %4411 = vmatmul.msk.f32.vlgmr.msrb.gmra.mxu2 %vm204_vm0, %v541_v63 }
 0x96d   :  { %1289 = vmatpush.msrb.mxu2 %v6375_v34 }
 0x96f   :  { %1290 = vmatpush.msrb.mxu2 %v6380_v35 }
 0x971   :  { %1291 = vmatpush.msrb.mxu2 %v6387_v37 }
 0x973   :  { %1292 = vmatpush.msrb.mxu2 %v6396_v38 }
 0x9ef   :  { %v561_v2 = vpop.f32.mrf.mxu2 }
 0x9f0   :  { %v564_v3 = vadd.f32 %v561_v2, %v6345_v1 }
 0x9f2   :  { %5637 = vtanh.f32 %v564_v3  ;;  %v4412_v5 = vmul.f32 -1.442695, %v564_v3 }
 0x9f4   :  { %5639 = vpow2.f32 %v4412_v5 }
 0x9f8   :  { %v5638_v4 = vpop.eup %5637 }
 0x9f9   :  { %590 = vrot.lane.b32.xlu1 %v5638_v4, %s6004_s14 }
 0x9fa   :  { %v5640_v6 = vpop.eup %5639 }
 0x9fb   :  { %v568_v7 = vadd.f32 1.0, %v5640_v6 }
 0x9fd   :  { %5641 = vrcp.f32 %v568_v7  ;;  %v580_v10 = vand.u32 2147483648, %v568_v7  ;;  %vm574_vm6 = vweird.f32 %v568_v7  ;;  %v578_v16 = vand.u32 2147483647, %v568_v7 }
 0x9ff   :  { %v581_v18 = vor.u32 1.1754944e-38, %v580_v10  ;;  %vm579_vm8 = vcmp.eq.f32.partialorder %v578_v16, 8.507059e+37 }
 0xa03   :  { %v5642_v8 = vpop.eup %5641 }
 0xa04   :  { %v570_v11 = vmul.f32 %v5642_v8, %v568_v7  ;;  %vm575_vm5 = vweird.f32 %v5642_v8 }
 0xa05   :  { %vm576_vm7 = vmor %vm574_vm6, %vm575_vm5 }
 0xa06   :  { %v571_v13 = vsub.f32 1.0, %v570_v11 }
 0xa08   :  { %v572_v14 = vmul.f32 %v5642_v8, %v571_v13 }
 0xa0a   :  { %v573_v15 = vadd.f32 %v5642_v8, %v572_v14 }
 0xa0c   :  { %v577_v17 = vsel %vm576_vm7, %v5642_v8, %v573_v15 }
 0xa0d   :  { %v582_v20 = vsel %vm579_vm8, %v581_v18, %v577_v17 }
 0xa0e   :  { %v588_v27 = vmul.f32 %v586_v26, %v582_v20 }
 0xa6b   :  { %v591_v19 = vpop.permute.xlu1 %590 }
 0xa6c   :  { %v593_v21 = vmul.f32 %v591_v19, %v582_v20 }
 0xa6e   :  { %595 = vrot.lane.b32.xlu2 %v593_v21, %s6005_s4 }
 0xa76   :  { %833 = vrot.lane.b32.xlu2 %v819_v61, %s6005_s4 }
 0xac8   :  { %v596_v28 = vpop.permute.xlu2 %595 }
 0xac9   :  { %v6363_v29 = vadd.f32 %v596_v28, %v588_v27 }
 0xacb   :  { %5643 = vtanh.f32 %v6363_v29  ;;  %v655_v16 = vrot.slane %v6363_v29, 6 }
 0xad0   :  { %v834_v30 = vpop.permute.xlu2 %833 }
 0xad1   :  { %v5644_v31 = vpop.eup %5643  ;;  %4419 = vmatmul.msk.f32.vlgmr.msra.gmra.mxu2 %vm204_vm0, %v834_v30 }
 0xad2   :  { %601 = vrot.lane.b32.xlu0 %v5644_v31, %s6004_s14 }
 0xb44   :  { %v602_v32 = vpop.permute.xlu0 %601 }
 0xb45   :  { %v6368_v33 = vmul.f32 %v602_v32, %v582_v20 }
 0xb47   :  { %606 = vrot.lane.b32.xlu1 %v6368_v33, %s6005_s4 }
 0xb54   :  { %v858_v43 = vpop.f32.mrf.mxu2 }
 0xbb9   :  { %v607_v39 = vpop.permute.xlu1 %606 }
 0xbba   :  { %4413 = vmatmul.msk.f32.vlgmr.msrb.gmra.mxu3 %vm204_vm0, %v607_v39 }
 0xbbb   :  { %1083 = vmatpush.msrb.mxu3 %v6375_v34 }
 0xbbd   :  { %1084 = vmatpush.msrb.mxu3 %v6380_v35 }
 0xbbf   :  { %1085 = vmatpush.msrb.mxu3 %v6387_v37 }
 0xbc1   :  { %1086 = vmatpush.msrb.mxu3 %v6396_v38 }
 0xbc2   :  { %884 = vmatmul.f32.vlgmr.msra.gmra.mxu3 %v6003_v9  ;;  %v6425_v9 = vadd.f32 %v6421_v36, %v858_v43 }
 0xbc3   :  { %1359 = vmatpush.msra.mxu3 %v6375_v34 }
 0xbc5   :  { %1360 = vmatpush.msra.mxu3 %v6380_v35 }
 0xbc7   :  { %1361 = vmatpush.msra.mxu3 %v6387_v37 }
 0xbc9   :  { %1362 = vmatpush.msra.mxu3 %v6396_v38 }
 0xc3d   :  { %v627_v40 = vpop.f32.mrf.mxu3 }
 0xc3e   :  { %v631_v41 = vrot.slane %v627_v40, 6 }
 0xc40   :  { %v633_v42 = vadd.f32 %v631_v41, %v6345_v1 }
 0xc42   :  { %5645 = vtanh.f32 %v633_v42  ;;  %v4414_v48 = vmul.f32 -1.442695, %v633_v42 }
 0xc45   :  { %v885_v44 = vpop.f32.mrf.mxu3 }
 0xc46   :  { %v888_v45 = vadd.f32 %v885_v44, %v6425_v9 }
 0xc48   :  { %v5646_v46 = vpop.eup %5645  ;;  %5647 = vtanh.f32 %v888_v45  ;;  %v4421_v12 = vmul.f32 -1.442695, %v888_v45 }
 0xc49   :  { %659 = vrot.lane.b32.xlu0 %v5646_v46, %s6004_s14  ;;  %5649 = vpow2.f32 %v4414_v48 }
 0xc4a   :  { %5651 = vpow2.f32 %v4421_v12 }
 0xc4e   :  { %v5648_v47 = vpop.eup %5647 }
 0xc4f   :  { %911 = vrot.lane.b32.xlu1 %v5648_v47, %s6004_s14  ;;  %v5650_v49 = vpop.eup %5649 }
 0xc50   :  { %v637_v50 = vadd.f32 1.0, %v5650_v49  ;;  %v5652_v51 = vpop.eup %5651 }
 0xc51   :  { %v892_v52 = vadd.f32 1.0, %v5652_v51 }
 0xc52   :  { %5653 = vrcp.f32 %v637_v50  ;;  %v649_v61 = vand.u32 2147483648, %v637_v50  ;;  %vm643_vm10 = vweird.f32 %v637_v50  ;;  %v647_v62 = vand.u32 2147483647, %v637_v50 }
 0xc53   :  { %5655 = vrcp.f32 %v892_v52  ;;  %v904_v6 = vand.u32 2147483648, %v892_v52  ;;  %vm898_vm1 = vweird.f32 %v892_v52  ;;  %v902_v8 = vand.u32 2147483647, %v892_v52 }
 0xc54   :  { %v650_v2 = vor.u32 1.1754944e-38, %v649_v61  ;;  %vm648_vm12 = vcmp.eq.f32.partialorder %v647_v62, 8.507059e+37 }
 0xc55   :  { %v905_v13 = vor.u32 1.1754944e-38, %v904_v6  ;;  %vm903_vm3 = vcmp.eq.f32.partialorder %v902_v8, 8.507059e+37 }
 0xc58   :  { %v5654_v53 = vpop.eup %5653 }
 0xc59   :  { %v639_v54 = vmul.f32 %v5654_v53, %v637_v50  ;;  %v5656_v55 = vpop.eup %5655  ;;  %vm644_vm9 = vweird.f32 %v5654_v53 }
 0xc5a   :  { %v894_v57 = vmul.f32 %v5656_v55, %v892_v52  ;;  %vm645_vm11 = vmor %vm643_vm10, %vm644_vm9  ;;  %vm899_vm15 = vweird.f32 %v5656_v55 }
 0xc5b   :  { %v640_v56 = vsub.f32 1.0, %v639_v54  ;;  %vm900_vm2 = vmor %vm898_vm1, %vm899_vm15 }
 0xc5c   :  { %v895_v59 = vsub.f32 1.0, %v894_v57 }
 0xc5d   :  { %v641_v58 = vmul.f32 %v5654_v53, %v640_v56 }
 0xc5e   :  { %v896_v63 = vmul.f32 %v5656_v55, %v895_v59 }
 0xc5f   :  { %v642_v60 = vadd.f32 %v5654_v53, %v641_v58 }
 0xc60   :  { %v897_v3 = vadd.f32 %v5656_v55, %v896_v63 }
 0xc61   :  { %v646_v0 = vsel %vm645_vm11, %v5654_v53, %v642_v60 }
 0xc62   :  { %v651_v5 = vsel %vm648_vm12, %v650_v2, %v646_v0  ;;  %v901_v11 = vsel %vm900_vm2, %v5656_v55, %v897_v3 }
 0xc63   :  { %v906_v15 = vsel %vm903_vm3, %v905_v13, %v901_v11  ;;  %v657_v17 = vmul.f32 %v655_v16, %v651_v5 }
 0xc64   :  { %v909_v21 = vmul.f32 0.0, %v906_v15 }
 0xcbb   :  { %v660_v4 = vpop.permute.xlu0 %659 }
 0xcbc   :  { %v662_v7 = vmul.f32 %v660_v4, %v651_v5 }
 0xcbe   :  { %664 = vrot.lane.b32.xlu2 %v662_v7, %s6005_s4 }
 0xcc1   :  { %v912_v14 = vpop.permute.xlu1 %911 }
 0xcc2   :  { %v914_v10 = vmul.f32 %v912_v14, %v906_v15 }
 0xcc4   :  { %916 = vrot.lane.b32.xlu0 %v914_v10, %s6005_s4 }
 0xd18   :  { %v665_v18 = vpop.permute.xlu2 %664 }
 0xd19   :  { %v6433_v19 = vadd.f32 %v665_v18, %v657_v17 }
 0xd1b   :  { %5657 = vtanh.f32 %v6433_v19 }
 0xd21   :  { %v5658_v20 = vpop.eup %5657 }
 0xd22   :  { %670 = vrot.lane.b32.xlu1 %v5658_v20, %s6004_s14 }
 0xd36   :  { %v917_v22 = vpop.permute.xlu0 %916 }
 0xd37   :  { %v6437_v23 = vadd.f32 %v917_v22, %v909_v21 }
 0xd39   :  { %5659 = vtanh.f32 %v6437_v23  ;;  %v976_v18 = vrot.slane %v6437_v23, 6 }
 0xd3f   :  { %v5660_v24 = vpop.eup %5659 }
 0xd40   :  { %922 = vrot.lane.b32.xlu2 %v5660_v24, %s6004_s14 }
 0xd94   :  { %v671_v25 = vpop.permute.xlu1 %670 }
 0xd95   :  { %v6441_v26 = vmul.f32 %v671_v25, %v651_v5 }
 0xd97   :  { %v675_v27 = vrot.slane %v6441_v26, 2 }
 0xd99   :  { %676 = vrot.lane.b32.xlu0 %v675_v27, %s6005_s4 }
 0xd9a   :  { %v923_v28 = vpop.permute.xlu2 %922 }
 0xd9b   :  { %v925_v29 = vmul.f32 %v923_v28, %v906_v15  ;;  %v725_v15 = vrot.slane %v6433_v19, 6  ;;  %v820_v28 = vsel %vm814_vm13, %v6368_v33, %v6441_v26 }
 0xd9d   :  { %927 = vrot.lane.b32.xlu1 %v925_v29, %s6005_s4 }
 0xe0b   :  { %v677_v30 = vpop.permute.xlu0 %676 }
 0xe0c   :  { %4415 = vmatmul.msk.f32.vlgmr.msrb.gmra.mxu0 %vm204_vm0, %v677_v30 }
 0xe0d   :  { %1153 = vmatpush.msrb.mxu0 %v6375_v34 }
 0xe0f   :  { %1154 = vmatpush.msrb.mxu0 %v6380_v35  ;;  %v928_v31 = vpop.permute.xlu1 %927 }
 0xe11   :  { %1155 = vmatpush.msrb.mxu0 %v6387_v37 }
 0xe13   :  { %1156 = vmatpush.msrb.mxu0 %v6396_v38 }
 0xe14   :  { %4422 = vmatmul.msk.f32.vlgmr.msra.gmra.mxu0 %vm204_vm0, %v928_v31 }
 0xe89   :  { %v697_v32 = vpop.f32.mrf.mxu0 }
 0xe8a   :  { %v701_v39 = vrot.slane %v697_v32, 4 }
 0xe8c   :  { %v703_v40 = vadd.f32 %v701_v39, %v6345_v1 }
 0xe8e   :  { %5661 = vtanh.f32 %v703_v40  ;;  %v4416_v46 = vmul.f32 -1.442695, %v703_v40 }
 0xe91   :  { %v948_v41 = vpop.f32.mrf.mxu0 }
 0xe92   :  { %v952_v42 = vrot.slane %v948_v41, 6 }
 0xe94   :  { %v5662_v43 = vpop.eup %5661  ;;  %v954_v44 = vadd.f32 %v952_v42, %v6425_v9 }
 0xe95   :  { %729 = vrot.lane.b32.xlu2 %v5662_v43, %s6004_s14 }
 0xe96   :  { %5663 = vtanh.f32 %v954_v44  ;;  %v4423_v51 = vmul.f32 -1.442695, %v954_v44 }
 0xe97   :  { %5665 = vpow2.f32 %v4416_v46 }
 0xe9c   :  { %v5664_v45 = vpop.eup %5663 }
 0xe9d   :  { %980 = vrot.lane.b32.xlu0 %v5664_v45, %s6004_s14  ;;  %v5666_v47 = vpop.eup %5665 }
 0xe9e   :  { %v707_v48 = vadd.f32 1.0, %v5666_v47 }
 0xea0   :  { %5667 = vrcp.f32 %v707_v48  ;;  %v719_v54 = vand.u32 2147483648, %v707_v48  ;;  %vm713_vm6 = vweird.f32 %v707_v48  ;;  %v717_v55 = vand.u32 2147483647, %v707_v48 }
 0xea1   :  { %5669 = vpow2.f32 %v4423_v51 }
 0xea2   :  { %v720_v58 = vor.u32 1.1754944e-38, %v719_v54  ;;  %vm718_vm8 = vcmp.eq.f32.partialorder %v717_v55, 8.507059e+37 }
 0xea6   :  { %v5668_v12 = vpop.eup %5667 }
 0xea7   :  { %v709_v49 = vmul.f32 %v5668_v12, %v707_v48  ;;  %vm714_vm5 = vweird.f32 %v5668_v12  ;;  %v5670_v56 = vpop.eup %5669 }
 0xea8   :  { %vm715_vm7 = vmor %vm713_vm6, %vm714_vm5  ;;  %v958_v59 = vadd.f32 1.0, %v5670_v56 }
 0xea9   :  { %v710_v50 = vsub.f32 1.0, %v709_v49 }
 0xeaa   :  { %5671 = vrcp.f32 %v958_v59  ;;  %v970_v5 = vand.u32 2147483648, %v958_v59  ;;  %vm964_vm10 = vweird.f32 %v958_v59  ;;  %v968_v6 = vand.u32 2147483647, %v958_v59 }
 0xeab   :  { %v711_v52 = vmul.f32 %v5668_v12, %v710_v50 }
 0xeac   :  { %v971_v8 = vor.u32 1.1754944e-38, %v970_v5  ;;  %vm969_vm12 = vcmp.eq.f32.partialorder %v968_v6, 8.507059e+37 }
 0xead   :  { %v712_v53 = vadd.f32 %v5668_v12, %v711_v52 }
 0xeaf   :  { %v716_v57 = vsel %vm715_vm7, %v5668_v12, %v712_v53 }
 0xeb0   :  { %v721_v61 = vsel %vm718_vm8, %v720_v58, %v716_v57  ;;  %v5672_v63 = vpop.eup %5671 }
 0xeb1   :  { %v960_v0 = vmul.f32 %v5672_v63, %v958_v59  ;;  %vm965_vm9 = vweird.f32 %v5672_v63  ;;  %v727_v10 = vmul.f32 %v725_v15, %v721_v61 }
 0xeb2   :  { %vm966_vm11 = vmor %vm964_vm10, %vm965_vm9 }
 0xeb3   :  { %v961_v2 = vsub.f32 1.0, %v960_v0 }
 0xeb5   :  { %v962_v3 = vmul.f32 %v5672_v63, %v961_v2 }
 0xeb7   :  { %v963_v4 = vadd.f32 %v5672_v63, %v962_v3 }
 0xeb9   :  { %v967_v7 = vsel %vm966_vm11, %v5672_v63, %v963_v4 }
 0xeba   :  { %v972_v13 = vsel %vm969_vm12, %v971_v8, %v967_v7 }
 0xebb   :  { %v978_v20 = vmul.f32 %v976_v18, %v972_v13 }
 0xeef   :  { %v730_v60 = vpop.permute.xlu2 %729 }
 0xef0   :  { %v732_v62 = vmul.f32 %v730_v60, %v721_v61 }
 0xef2   :  { %734 = vrot.lane.b32.xlu1 %v732_v62, %s6005_s4 }
 0xf0f   :  { %v981_v11 = vpop.permute.xlu0 %980 }
 0xf10   :  { %v983_v14 = vmul.f32 %v981_v11, %v972_v13 }
 0xf12   :  { %985 = vrot.lane.b32.xlu2 %v983_v14, %s6005_s4 }
 0xf64   :  { %v735_v16 = vpop.permute.xlu1 %734 }
 0xf65   :  { %v6459_v17 = vadd.f32 %v735_v16, %v727_v10 }
 0xf67   :  { %5673 = vtanh.f32 %v6459_v17 }
 0xf6c   :  { %v986_v21 = vpop.permute.xlu2 %985 }
 0xf6d   :  { %v5674_v22 = vpop.eup %5673  ;;  %v988_v24 = vadd.f32 %v986_v21, %v978_v20 }
 0xf6e   :  { %740 = vrot.lane.b32.xlu0 %v5674_v22, %s6004_s14 }
 0xf6f   :  { %5675 = vtanh.f32 %v988_v24  ;;  %v1046_v57 = vrot.slane %v988_v24, 6 }
 0xf75   :  { %v5676_v25 = vpop.eup %5675 }
 0xf76   :  { %991 = vrot.lane.b32.xlu1 %v5676_v25, %s6004_s14  ;;  %v795_v25 = vrot.slane %v6459_v17, 6 }
 0xfe0   :  { %v741_v27 = vpop.permute.xlu0 %740 }
 0xfe1   :  { %v743_v19 = vmul.f32 %v741_v27, %v721_v61 }
 0xfe3   :  { %v745_v29 = vrot.slane %v743_v19, 4  ;;  %v6469_v30 = vsel %vm816_vm14, %v820_v28, %v743_v19 }
 0xfe5   :  { %746 = vrot.lane.b32.xlu2 %v745_v29, %s6005_s4 }
 0xfe8   :  { %v992_v23 = vpop.permute.xlu1 %991 }
 0xfe9   :  { %v994_v31 = vmul.f32 %v992_v23, %v972_v13 }
 0xfeb   :  { %v996_v32 = vrot.slane %v994_v31, 2 }
 0xfed   :  { %997 = vrot.lane.b32.xlu0 %v996_v32, %s6005_s4 }
0x103f   :  { %v747_v39 = vpop.permute.xlu2 %746 }
0x1040   :  { %4417 = vmatmul.msk.f32.vlgmr.msra.gmra.mxu1 %vm204_vm0, %v747_v39 }
0x1041   :  { %1219 = vmatpush.msra.mxu1 %v6375_v34 }
0x1043   :  { %1220 = vmatpush.msra.mxu1 %v6380_v35 }
0x1045   :  { %1221 = vmatpush.msra.mxu1 %v6387_v37 }
0x1047   :  { %1222 = vmatpush.msra.mxu1 %v6396_v38 }
0x105f   :  { %v998_v33 = vpop.permute.xlu0 %997 }
0x1060   :  { %4424 = vmatmul.msk.f32.vlgmr.msrb.gmra.mxu1 %vm204_vm0, %v998_v33 }
0x10bd   :  { %v767_v26 = vpop.f32.mrf.mxu1 }
0x10be   :  { %v771_v49 = vrot.slane %v767_v26, 2 }
0x10c0   :  { %v773_v52 = vadd.f32 %v771_v49, %v6345_v1 }
0x10c2   :  { %v4418_v1 = vmul.f32 -1.442695, %v773_v52 }
0x10dd   :  { %v1018_v40 = vpop.f32.mrf.mxu1 }
0x10de   :  { %v1022_v41 = vrot.slane %v1018_v40, 4 }
0x10e0   :  { %v1024_v42 = vadd.f32 %v1022_v41, %v6425_v9 }
0x10e2   :  { %5677 = vtanh.f32 %v1024_v42  ;;  %v4425_v44 = vmul.f32 -1.442695, %v1024_v42 }
0x10e4   :  { %5679 = vpow2.f32 %v4425_v44 }
0x10e8   :  { %v5678_v43 = vpop.eup %5677 }
0x10e9   :  { %1050 = vrot.lane.b32.xlu1 %v5678_v43, %s6004_s14 }
0x10ea   :  { %v5680_v34 = vpop.eup %5679 }
0x10eb   :  { %v1028_v35 = vadd.f32 1.0, %v5680_v34 }
0x10ed   :  { %5681 = vrcp.f32 %v1028_v35  ;;  %v1040_v48 = vand.u32 2147483648, %v1028_v35  ;;  %vm1034_vm15 = vweird.f32 %v1028_v35  ;;  %v1038_v12 = vand.u32 2147483647, %v1028_v35 }
0x10ee   :  { %5683 = vtanh.f32 %v773_v52 }
0x10ef   :  { %v1041_v51 = vor.u32 1.1754944e-38, %v1040_v48  ;;  %vm1039_vm2 = vcmp.eq.f32.partialorder %v1038_v12, 8.507059e+37 }
0x10f3   :  { %v5682_v37 = vpop.eup %5681 }
0x10f4   :  { %v1030_v45 = vmul.f32 %v5682_v37, %v1028_v35  ;;  %vm1035_vm14 = vweird.f32 %v5682_v37  ;;  %v5684_v56 = vpop.eup %5683 }
0x10f5   :  { %vm1036_vm1 = vmor %vm1034_vm15, %vm1035_vm14 }
0x10f6   :  { %v1031_v38 = vsub.f32 1.0, %v1030_v45 }
0x10f8   :  { %v1032_v46 = vmul.f32 %v5682_v37, %v1031_v38 }
0x10fa   :  { %v1033_v47 = vadd.f32 %v5682_v37, %v1032_v46 }
0x10fc   :  { %v1037_v50 = vsel %vm1036_vm1, %v5682_v37, %v1033_v47 }
0x10fd   :  { %v1042_v54 = vsel %vm1039_vm2, %v1041_v51, %v1037_v50 }
0x10fe   :  { %v1048_v58 = vmul.f32 %v1046_v57, %v1042_v54 }
0x115b   :  { %v1051_v53 = vpop.permute.xlu1 %1050 }
0x115c   :  { %v1053_v55 = vmul.f32 %v1051_v53, %v1042_v54 }
0x115e   :  { %1055 = vrot.lane.b32.xlu2 %v1053_v55, %s6005_s4 }
0x1166   :  { %799 = vrot.lane.b32.xlu2 %v5684_v56, %s6004_s14 }
0x11b8   :  { %v1056_v59 = vpop.permute.xlu2 %1055 }
0x11b9   :  { %v6484_v60 = vadd.f32 %v1056_v59, %v1048_v58 }
0x11bb   :  { %5685 = vtanh.f32 %v6484_v60  ;;  %v1116_v47 = vrot.slane %v6484_v60, 6 }
0x11bc   :  { %5687 = vpow2.f32 %v4418_v1 }
0x11c0   :  { %v800_v10 = vpop.permute.xlu2 %799 }
0x11c1   :  { %v5686_v61 = vpop.eup %5685 }
0x11c2   :  { %1061 = vrot.lane.b32.xlu0 %v5686_v61, %s6004_s14  ;;  %v5688_v62 = vpop.eup %5687 }
0x11c3   :  { %v777_v63 = vadd.f32 1.0, %v5688_v62 }
0x11c5   :  { %5689 = vrcp.f32 %v777_v63  ;;  %v789_v11 = vand.u32 2147483648, %v777_v63  ;;  %vm783_vm5 = vweird.f32 %v777_v63  ;;  %v787_v13 = vand.u32 2147483647, %v777_v63 }
0x11c7   :  { %v790_v15 = vor.u32 1.1754944e-38, %v789_v11  ;;  %vm788_vm7 = vcmp.eq.f32.partialorder %v787_v13, 8.507059e+37 }
0x11cb   :  { %v5690_v0 = vpop.eup %5689 }
0x11cc   :  { %v779_v2 = vmul.f32 %v5690_v0, %v777_v63  ;;  %vm784_vm3 = vweird.f32 %v5690_v0 }
0x11cd   :  { %vm785_vm6 = vmor %vm783_vm5, %vm784_vm3 }
0x11ce   :  { %v780_v3 = vsub.f32 1.0, %v779_v2 }
0x11d0   :  { %v781_v4 = vmul.f32 %v5690_v0, %v780_v3 }
0x11d2   :  { %v782_v7 = vadd.f32 %v5690_v0, %v781_v4 }
0x11d4   :  { %v786_v14 = vsel %vm785_vm6, %v5690_v0, %v782_v7 }
0x11d5   :  { %v791_v16 = vsel %vm788_vm7, %v790_v15, %v786_v14 }
0x11d6   :  { %v802_v18 = vmul.f32 %v800_v10, %v791_v16  ;;  %v797_v19 = vmul.f32 %v795_v25, %v791_v16 }
0x1234   :  { %v1062_v5 = vpop.permute.xlu0 %1061 }
0x1235   :  { %v1064_v6 = vmul.f32 %v1062_v5, %v1042_v54 }
0x1237   :  { %v1066_v8 = vrot.slane %v1064_v6, 4 }
0x1239   :  { %1067 = vrot.lane.b32.xlu1 %v1066_v8, %s6005_s4 }
0x1241   :  { %804 = vrot.lane.b32.xlu1 %v802_v18, %s6005_s4 }
0x12ab   :  { %v1068_v20 = vpop.permute.xlu1 %1067 }
0x12ac   :  { %4426 = vmatmul.msk.f32.vlgmr.msrb.gmra.mxu3 %vm204_vm0, %v1068_v20 }
0x12b3   :  { %v805_v27 = vpop.permute.xlu1 %804 }
0x12b4   :  { %v807_v28 = vadd.f32 %v805_v27, %v797_v19 }
0x132f   :  { %v1088_v21 = vpop.f32.mrf.mxu3 }
0x1330   :  { %v1092_v22 = vrot.slane %v1088_v21, 2 }
0x1332   :  { %v1094_v24 = vadd.f32 %v1092_v22, %v6425_v9 }
0x1334   :  { %5691 = vtanh.f32 %v1094_v24  ;;  %v4427_v31 = vmul.f32 -1.442695, %v1094_v24 }
0x1335   :  { %5693 = vtanh.f32 %v807_v28 }
0x1336   :  { %5695 = vpow2.f32 %v4427_v31 }
0x133a   :  { %v5692_v29 = vpop.eup %5691 }
0x133b   :  { %1120 = vrot.lane.b32.xlu0 %v5692_v29, %s6004_s14  ;;  %v5694_v23 = vpop.eup %5693 }
0x133c   :  { %v5696_v32 = vpop.eup %5695 }
0x133d   :  { %v1098_v39 = vadd.f32 1.0, %v5696_v32 }
0x133f   :  { %5697 = vrcp.f32 %v1098_v39  ;;  %v1110_v41 = vand.u32 2147483648, %v1098_v39  ;;  %vm1104_vm9 = vweird.f32 %v1098_v39  ;;  %v1108_v42 = vand.u32 2147483647, %v1098_v39 }
0x1341   :  { %v1111_v44 = vor.u32 1.1754944e-38, %v1110_v41  ;;  %vm1109_vm11 = vcmp.eq.f32.partialorder %v1108_v42, 8.507059e+37 }
0x1343   :  { %810 = vrot.lane.b32.xlu0 %v5694_v23, %s6004_s14 }
0x1345   :  { %v5698_v33 = vpop.eup %5697 }
0x1346   :  { %v1100_v9 = vmul.f32 %v5698_v33, %v1098_v39  ;;  %vm1105_vm8 = vweird.f32 %v5698_v33 }
0x1347   :  { %vm1106_vm10 = vmor %vm1104_vm9, %vm1105_vm8 }
0x1348   :  { %v1101_v26 = vsub.f32 1.0, %v1100_v9 }
0x134a   :  { %v1102_v17 = vmul.f32 %v5698_v33, %v1101_v26 }
0x134c   :  { %v1103_v40 = vadd.f32 %v5698_v33, %v1102_v17 }
0x134e   :  { %v1107_v43 = vsel %vm1106_vm10, %v5698_v33, %v1103_v40 }
0x134f   :  { %v1112_v35 = vsel %vm1109_vm11, %v1111_v44, %v1107_v43 }
0x1350   :  { %v1118_v48 = vmul.f32 %v1116_v47, %v1112_v35 }
0x13ad   :  { %v1121_v34 = vpop.permute.xlu0 %1120 }
0x13ae   :  { %v1123_v37 = vmul.f32 %v1121_v34, %v1112_v35 }
0x13b0   :  { %1125 = vrot.lane.b32.xlu2 %v1123_v37, %s6005_s4 }
0x13b5   :  { %v811_v45 = vpop.permute.xlu0 %810 }
0x13b6   :  { %v813_v38 = vmul.f32 %v811_v45, %v791_v16 }
0x13b8   :  { %v822_v46 = vsel %vm818_vm4, %v6469_v30, %v813_v38 }
0x13b9   :  { %835 = vrot.lane.b32.xlu2 %v822_v46, %s6005_s4 }
0x140a   :  { %v1126_v12 = vpop.permute.xlu2 %1125 }
0x140b   :  { %v1128_v49 = vadd.f32 %v1126_v12, %v1118_v48 }
0x140d   :  { %5699 = vtanh.f32 %v1128_v49  ;;  %v1183_v13 = vrot.slane %v1128_v49, 6 }
0x1413   :  { %v5700_v50 = vpop.eup %5699  ;;  %v836_v51 = vpop.permute.xlu2 %835 }
0x1414   :  { %1131 = vrot.lane.b32.xlu1 %v5700_v50, %s6004_s14  ;;  %4420 = vmatmul.msk.f32.gmra.mxu2 %vm204_vm0, %v836_v51 }
0x1486   :  { %v1132_v52 = vpop.permute.xlu1 %1131 }
0x1487   :  { %v1134_v53 = vmul.f32 %v1132_v52, %v1112_v35 }
0x1489   :  { %v1136_v54 = vrot.slane %v1134_v53, 6 }
0x148b   :  { %1137 = vrot.lane.b32.xlu0 %v1136_v54, %s6005_s4 }
0x1497   :  { %v861_v55 = vpop.f32.mrf.mxu2 }
0x1498   :  { %v6505_v56 = vadd.f32 %v6421_v36, %v861_v55 }
0x14fd   :  { %v1138_v30 = vpop.permute.xlu0 %1137 }
0x14fe   :  { %4428 = vmatmul.msk.f32.vlgmr.msrb.gmra.mxu0 %vm204_vm0, %v1138_v30 }
0x157b   :  { %v1158_v57 = vpop.f32.mrf.mxu0 }
0x157c   :  { %v1161_v58 = vadd.f32 %v1158_v57, %v6505_v56 }
0x157e   :  { %5701 = vtanh.f32 %v1161_v58  ;;  %v4429_v60 = vmul.f32 -1.442695, %v1161_v58 }
0x1580   :  { %5703 = vpow2.f32 %v4429_v60 }
0x1584   :  { %v5702_v59 = vpop.eup %5701 }
0x1585   :  { %1187 = vrot.lane.b32.xlu1 %v5702_v59, %s6004_s14 }
0x1586   :  { %v5704_v61 = vpop.eup %5703 }
0x1587   :  { %v1165_v1 = vadd.f32 1.0, %v5704_v61 }
0x1589   :  { %5705 = vrcp.f32 %v1165_v1  ;;  %v1177_v36 = vand.u32 2147483648, %v1165_v1  ;;  %vm1171_vm12 = vweird.f32 %v1165_v1  ;;  %v1175_v4 = vand.u32 2147483647, %v1165_v1 }
0x158b   :  { %v1178_v6 = vor.u32 1.1754944e-38, %v1177_v36  ;;  %vm1176_vm15 = vcmp.eq.f32.partialorder %v1175_v4, 8.507059e+37 }
0x158f   :  { %v5706_v62 = vpop.eup %5705 }
0x1590   :  { %v1167_v63 = vmul.f32 %v5706_v62, %v1165_v1  ;;  %vm1172_vm4 = vweird.f32 %v5706_v62 }
0x1591   :  { %vm1173_vm14 = vmor %vm1171_vm12, %vm1172_vm4 }
0x1592   :  { %v1168_v0 = vsub.f32 1.0, %v1167_v63 }
0x1594   :  { %v1169_v2 = vmul.f32 %v5706_v62, %v1168_v0 }
0x1596   :  { %v1170_v3 = vadd.f32 %v5706_v62, %v1169_v2 }
0x1598   :  { %v1174_v5 = vsel %vm1173_vm14, %v5706_v62, %v1170_v3  ;;  %vm1413_vm14 = vcmask 1041409  }
0x1599   :  { %v1179_v8 = vsel %vm1176_vm15, %v1178_v6, %v1174_v5 }
0x159a   :  { %v1185_v14 = vmul.f32 %v1183_v13, %v1179_v8 }
0x15f7   :  { %v1188_v7 = vpop.permute.xlu1 %1187 }
0x15f8   :  { %v1190_v11 = vmul.f32 %v1188_v7, %v1179_v8 }
0x15fa   :  { %1192 = vrot.lane.b32.xlu2 %v1190_v11, %s6005_s4 }
0x1654   :  { %v1193_v15 = vpop.permute.xlu2 %1192 }
0x1655   :  { %v1195_v10 = vadd.f32 %v1193_v15, %v1185_v14 }
0x1657   :  { %5707 = vtanh.f32 %v1195_v10  ;;  %v1252_v44 = vrot.slane %v1195_v10, 6 }
0x165d   :  { %v5708_v16 = vpop.eup %5707 }
0x165e   :  { %1198 = vrot.lane.b32.xlu0 %v5708_v16, %s6004_s14 }
0x16d0   :  { %v1199_v18 = vpop.permute.xlu0 %1198 }
0x16d1   :  { %v1201_v20 = vmul.f32 %v1199_v18, %v1179_v8 }
0x16d3   :  { %1203 = vrot.lane.b32.xlu1 %v1201_v20, %s6005_s4 }
0x1745   :  { %v1204_v21 = vpop.permute.xlu1 %1203 }
0x1746   :  { %4430 = vmatmul.msk.f32.vlgmr.msra.gmra.mxu1 %vm204_vm0, %v1204_v21 }
0x17c3   :  { %v1224_v22 = vpop.f32.mrf.mxu1 }
0x17c4   :  { %v1228_v24 = vrot.slane %v1224_v22, 6 }
0x17c6   :  { %v1230_v25 = vadd.f32 %v1228_v24, %v6505_v56 }
0x17c8   :  { %5709 = vtanh.f32 %v1230_v25  ;;  %v4431_v19 = vmul.f32 -1.442695, %v1230_v25 }
0x17ca   :  { %5711 = vpow2.f32 %v4431_v19 }
0x17ce   :  { %v5710_v27 = vpop.eup %5709 }
0x17cf   :  { %1256 = vrot.lane.b32.xlu2 %v5710_v27, %s6004_s14 }
0x17d0   :  { %v5712_v28 = vpop.eup %5711 }
0x17d1   :  { %v1234_v29 = vadd.f32 1.0, %v5712_v28 }
0x17d3   :  { %5713 = vrcp.f32 %v1234_v29  ;;  %v1246_v9 = vand.u32 2147483648, %v1234_v29  ;;  %vm1240_vm2 = vweird.f32 %v1234_v29  ;;  %v1244_v26 = vand.u32 2147483647, %v1234_v29 }
0x17d5   :  { %v1247_v40 = vor.u32 1.1754944e-38, %v1246_v9  ;;  %vm1245_vm5 = vcmp.eq.f32.partialorder %v1244_v26, 8.507059e+37 }
0x17d9   :  { %v5714_v23 = vpop.eup %5713 }
0x17da   :  { %v1236_v31 = vmul.f32 %v5714_v23, %v1234_v29  ;;  %vm1241_vm1 = vweird.f32 %v5714_v23 }
0x17db   :  { %vm1242_vm3 = vmor %vm1240_vm2, %vm1241_vm1 }
0x17dc   :  { %v1237_v32 = vsub.f32 1.0, %v1236_v31 }
0x17de   :  { %v1238_v39 = vmul.f32 %v5714_v23, %v1237_v32 }
0x17e0   :  { %v1239_v33 = vadd.f32 %v5714_v23, %v1238_v39 }
0x17e2   :  { %v1243_v17 = vsel %vm1242_vm3, %v5714_v23, %v1239_v33 }
0x17e3   :  { %v1248_v42 = vsel %vm1245_vm5, %v1247_v40, %v1243_v17 }
0x17e4   :  { %v1254_v34 = vmul.f32 %v1252_v44, %v1248_v42  ;;  %v200_v44 = vld [vmem:[%s7203_s0] sm:$0xff] }
0x1829   :  { %v1257_v41 = vpop.permute.xlu2 %1256 }
0x182a   :  { %v1259_v43 = vmul.f32 %v1257_v41, %v1248_v42 }
0x182c   :  { %1261 = vrot.lane.b32.xlu0 %v1259_v43, %s6005_s4 }
0x189e   :  { %v1262_v35 = vpop.permute.xlu0 %1261 }
0x189f   :  { %v1264_v37 = vadd.f32 %v1262_v35, %v1254_v34  ;;  %v201_v34 = vld [vmem:[%s7203_s0 + $0x8] sm:$0xff]  ;;  %v202_v35 = vld [vmem:[%s7203_s0 + $0x10] sm:$0xff] }
0x18a1   :  { %5715 = vtanh.f32 %v1264_v37  ;;  %v1322_v3 = vrot.slane %v1264_v37, 6  ;;  %v203_v37 = vld [vmem:[%s7203_s0 + $0x18] sm:$0xff] }
0x18a7   :  { %v5716_v45 = vpop.eup %5715 }
0x18a8   :  { %1267 = vrot.lane.b32.xlu1 %v5716_v45, %s6004_s14  ;;  %v205_v45 = vsel %vm204_vm0, %v200_v44, 0.0 }
0x191a   :  { %v1268_v38 = vpop.permute.xlu1 %1267 }
0x191b   :  { %v1270_v46 = vmul.f32 %v1268_v38, %v1248_v42  ;;  %v206_v38 = vsel %vm204_vm0, %v201_v34, 0.0 }
0x191d   :  { %v1272_v47 = vrot.slane %v1270_v46, 2  ;;  %v214_v46 = vsel %vm204_vm0, %v202_v35, 0.0 }
0x191f   :  { %1273 = vrot.lane.b32.xlu2 %v1272_v47, %s6005_s4  ;;  %v215_v47 = vsel %vm204_vm0, %v203_v37, 0.0 }
0x1979   :  { %v1274_v48 = vpop.permute.xlu2 %1273 }
0x197a   :  { %4432 = vmatmul.msk.f32.vlgmr.msrb.gmra.mxu2 %vm204_vm0, %v1274_v48  ;;  %v207_v48 = vadd.f32 %v206_v38, %v205_v45 }
0x19fd   :  { %v1294_v12 = vpop.f32.mrf.mxu2 }
0x19fe   :  { %v1298_v49 = vrot.slane %v1294_v12, 4  ;;  %v216_v12 = vadd.f32 %v215_v47, %v214_v46 }
0x1a00   :  { %v1300_v50 = vadd.f32 %v1298_v49, %v6505_v56  ;;  %v208_v49 = vrot.slane %v207_v48, 4 }
0x1a02   :  { %5717 = vtanh.f32 %v1300_v50  ;;  %v4433_v52 = vmul.f32 -1.442695, %v1300_v50  ;;  %v217_v50 = vrot.slane %v216_v12, 4 }
0x1a04   :  { %5719 = vpow2.f32 %v4433_v52  ;;  %v218_v52 = vadd.f32 %v217_v50, %v216_v12 }
0x1a08   :  { %v5718_v51 = vpop.eup %5717 }
0x1a09   :  { %1326 = vrot.lane.b32.xlu0 %v5718_v51, %s6004_s14  ;;  %v209_v51 = vadd.f32 %v208_v49, %v207_v48 }
0x1a0a   :  { %v5720_v53 = vpop.eup %5719 }
0x1a0b   :  { %v1304_v54 = vadd.f32 1.0, %v5720_v53  ;;  %v210_v53 = vrot.slane %v209_v51, 2 }
0x1a0d   :  { %5721 = vrcp.f32 %v1304_v54  ;;  %v1316_v60 = vand.u32 2147483648, %v1304_v54  ;;  %vm1310_vm7 = vweird.f32 %v1304_v54  ;;  %v1314_v61 = vand.u32 2147483647, %v1304_v54 }
0x1a0f   :  { %v1317_v62 = vor.u32 1.1754944e-38, %v1316_v60  ;;  %vm1315_vm9 = vcmp.eq.f32.partialorder %v1314_v61, 8.507059e+37 }
0x1a13   :  { %v5722_v30 = vpop.eup %5721 }
0x1a14   :  { %v1306_v55 = vmul.f32 %v5722_v30, %v1304_v54  ;;  %vm1311_vm6 = vweird.f32 %v5722_v30  ;;  %v219_v54 = vrot.slane %v218_v52, 2 }
0x1a15   :  { %vm1312_vm8 = vmor %vm1310_vm7, %vm1311_vm6 }
0x1a16   :  { %v1307_v57 = vsub.f32 1.0, %v1306_v55  ;;  %v220_v55 = vadd.f32 %v219_v54, %v218_v52 }
0x1a18   :  { %v1308_v58 = vmul.f32 %v5722_v30, %v1307_v57 }
0x1a1a   :  { %v1309_v59 = vadd.f32 %v5722_v30, %v1308_v58  ;;  %v221_v58 = vrot.slane %v220_v55, 1 }
0x1a1c   :  { %v1313_v1 = vsel %vm1312_vm8, %v5722_v30, %v1309_v59  ;;  %v211_v30 = vadd.f32 %v210_v53, %v209_v51  ;;  %v222_v60 = vadd.f32 %v221_v58, %v220_v55 }
0x1a1d   :  { %v1318_v0 = vsel %vm1315_vm9, %v1317_v62, %v1313_v1 }
0x1a1e   :  { %v1324_v36 = vmul.f32 %v1322_v3, %v1318_v0  ;;  %v212_v57 = vrot.slane %v211_v30, 1  ;;  %v224_v1 = vmul.f32 0.0625, %v222_v60 }
0x1a20   :  { %v213_v59 = vadd.f32 %v212_v57, %v211_v30 }
0x1a22   :  { %v223_v61 = vmul.f32 0.0625, %v213_v59 }
0x1a24   :  { %v1414_v62 = vsel %vm1413_vm14, %v224_v1, %v223_v61 }
0x1a7b   :  { %v1327_v63 = vpop.permute.xlu0 %1326 }
0x1a7c   :  { %v1329_v2 = vmul.f32 %v1327_v63, %v1318_v0 }
0x1a7e   :  { %1331 = vrot.lane.b32.xlu1 %v1329_v2, %s6005_s4 }
0x1af0   :  { %v1332_v4 = vpop.permute.xlu1 %1331 }
0x1af1   :  { %v1334_v5 = vadd.f32 %v1332_v4, %v1324_v36 }
0x1af3   :  { %5723 = vtanh.f32 %v1334_v5  ;;  %v1392_v33 = vrot.slane %v1334_v5, 6 }
0x1af9   :  { %v5724_v6 = vpop.eup %5723 }
0x1afa   :  { %1337 = vrot.lane.b32.xlu2 %v5724_v6, %s6004_s14 }
0x1b54   :  { %v1338_v7 = vpop.permute.xlu2 %1337 }
0x1b55   :  { %v1340_v8 = vmul.f32 %v1338_v7, %v1318_v0  ;;  %v1416_v0 = vsel %vm204_vm0, %v1414_v62, 0.0 }
0x1b57   :  { %v1342_v11 = vrot.slane %v1340_v8, 4 }
0x1b59   :  { %1343 = vrot.lane.b32.xlu0 %v1342_v11, %s6005_s4 }
0x1bcb   :  { %v1344_v13 = vpop.permute.xlu0 %1343 }
0x1bcc   :  { %4434 = vmatmul.msk.f32.vlgmr.msra.gmra.mxu3 %vm204_vm0, %v1344_v13 }
0x1c4f   :  { %v1364_v14 = vpop.f32.mrf.mxu3 }
0x1c50   :  { %v1368_v15 = vrot.slane %v1364_v14, 2 }
0x1c52   :  { %v1370_v10 = vadd.f32 %v1368_v15, %v6505_v56 }
0x1c54   :  { %5725 = vtanh.f32 %v1370_v10  ;;  %v4435_v18 = vmul.f32 -1.442695, %v1370_v10 }
0x1c56   :  { %5727 = vpow2.f32 %v4435_v18 }
0x1c5a   :  { %v5726_v16 = vpop.eup %5725 }
0x1c5b   :  { %1396 = vrot.lane.b32.xlu1 %v5726_v16, %s6004_s14 }
0x1c5c   :  { %v5728_v20 = vpop.eup %5727 }
0x1c5d   :  { %v1374_v21 = vadd.f32 1.0, %v5728_v20 }
0x1c5f   :  { %5729 = vrcp.f32 %v1374_v21  ;;  %v1386_v28 = vand.u32 2147483648, %v1374_v21  ;;  %vm1380_vm11 = vweird.f32 %v1374_v21  ;;  %v1384_v29 = vand.u32 2147483647, %v1374_v21 }
0x1c61   :  { %v1387_v23 = vor.u32 1.1754944e-38, %v1386_v28  ;;  %vm1385_vm12 = vcmp.eq.f32.partialorder %v1384_v29, 8.507059e+37 }
0x1c65   :  { %v5730_v22 = vpop.eup %5729 }
0x1c66   :  { %v1376_v24 = vmul.f32 %v5730_v22, %v1374_v21  ;;  %vm1381_vm10 = vweird.f32 %v5730_v22 }
0x1c67   :  { %vm1382_vm4 = vmor %vm1380_vm11, %vm1381_vm10 }
0x1c68   :  { %v1377_v25 = vsub.f32 1.0, %v1376_v24 }
0x1c6a   :  { %v1378_v27 = vmul.f32 %v5730_v22, %v1377_v25 }
0x1c6c   :  { %v1379_v19 = vadd.f32 %v5730_v22, %v1378_v27 }
0x1c6e   :  { %v1383_v56 = vsel %vm1382_vm4, %v5730_v22, %v1379_v19 }
0x1c6f   :  { %v1388_v32 = vsel %vm1385_vm12, %v1387_v23, %v1383_v56 }
0x1c70   :  { %v1394_v9 = vmul.f32 %v1392_v33, %v1388_v32 }
0x1ccd   :  { %v1397_v31 = vpop.permute.xlu1 %1396 }
0x1cce   :  { %v1399_v39 = vmul.f32 %v1397_v31, %v1388_v32 }
0x1cd0   :  { %1401 = vrot.lane.b32.xlu2 %v1399_v39, %s6005_s4 }
0x1d2a   :  { %v1402_v26 = vpop.permute.xlu2 %1401 }
0x1d2b   :  { %v1404_v17 = vadd.f32 %v1402_v26, %v1394_v9 }
0x1d2d   :  { %5731 = vtanh.f32 %v1404_v17 }
0x1d33   :  { %v5732_v40 = vpop.eup %5731 }
0x1d34   :  { %1407 = vrot.lane.b32.xlu0 %v5732_v40, %s6004_s14 }
0x1da6   :  { %v1408_v41 = vpop.permute.xlu0 %1407 }
0x1da7   :  { %v1410_v42 = vmul.f32 %v1408_v41, %v1388_v32 }
0x1da9   :  { %v1418_v43 = vrot.slane %v1410_v42, 6 }
0x1dab   :  { %1419 = vrot.lane.b32.xlu1 %v1418_v43, %s6004_s14 }
0x1e1d   :  { %v1420_v63 = vpop.permute.xlu1 %1419 }
0x1e1e   :  { %v1422_v2 = vsel %vm204_vm0, 0.0, %v1420_v63 }
0x1e1f   :  { %v1424_v3 = vrot.slane %v1422_v2, 6 }
0x1e21   :  { %v1426_v36 = vsel %vm814_vm13, %v1416_v0, %v1424_v3 }
0x1e22   :  { %v6549_v4 = vpack.c.bf16 %v1426_v36, %v1426_v36 }
0x1e23   :  { %5996 = dma.done.wait [#allocation4], 20480 }
0x1e24   :  { %5997 = vsyncadd [#allocation4], 4294946816  ;;  %v4918_v5 = vld [vmem:[#allocation2 + $0x3c0] sm:$0xf]  ;;  %v5494_v7 = vld [vmem:[#allocation2 + $0x3c4] sm:$0xf] }
0x1e25   :  { %v5514_v6 = vld [vmem:[#allocation2 + $0x45c] sm:$0xf0]  ;;  %v4920_v11 = vld [vmem:[#allocation2 + $0x460] sm:$0xf0]  ;;  %v4926_v13 = vld [vmem:[#allocation2 + $0x3c8] sm:$0xf] }
0x1e26   :  { %v4919_v8 = vor.u32 %v5514_v6, %v4918_v5  ;;  %v5515_v14 = vld [vmem:[#allocation2 + $0x464] sm:$0xf0]  ;;  %v4923_v15 = vor.u32 %v5494_v7, %v4920_v11  ;;  %v5495_v16 = vld [vmem:[#allocation2 + $0x3cc] sm:$0xf]  ;;  %v4758_v20 = vld [vmem:[#allocation2 + $0x280] sm:$0xf] }
0x1e27   :  { %v4927_v10 = vor.u32 %v5515_v14, %v4926_v13  ;;  %v4928_v18 = vld [vmem:[#allocation2 + $0x468] sm:$0xf0]  ;;  %v5474_v22 = vld [vmem:[#allocation2 + $0x31c] sm:$0xf0]  ;;  %v5454_v24 = vld [vmem:[#allocation2 + $0x284] sm:$0xf] }
0x1e28   :  { %2400 = vmatpush.bf16.msra.mxu0 %v4919_v8  ;;  %v4931_v21 = vor.u32 %v5495_v16, %v4928_v18  ;;  %v4760_v25 = vld [vmem:[#allocation2 + $0x320] sm:$0xf0]  ;;  %2413 = vmatpush.bf16.msrb.mxu1 %v4923_v15  ;;  %v4759_v27 = vor.u32 %v5474_v22, %v4758_v20  ;;  %v4766_v28 = vld [vmem:[#allocation2 + $0x288] sm:$0xf]  ;;  %v5455_v56 = vld [vmem:[#allocation2 + $0x28c] sm:$0xf] }
0x1e29   :  { %2426 = vmatpush.bf16.msra.mxu2 %v4927_v10  ;;  %v4763_v19 = vor.u32 %v5454_v24, %v4760_v25  ;;  %v5475_v29 = vld [vmem:[#allocation2 + $0x324] sm:$0xf0]  ;;  %v4768_v31 = vld [vmem:[#allocation2 + $0x328] sm:$0xf0]  ;;  %v4598_v32 = vld [vmem:[#allocation2 + $0x140] sm:$0xf] }
0x1e2a   :  { %2439 = vmatpush.bf16.msrb.mxu3 %v4931_v21  ;;  %v4767_v23 = vor.u32 %v5475_v29, %v4766_v28  ;;  %v5434_v39 = vld [vmem:[#allocation2 + $0x1dc] sm:$0xf0]  ;;  %v4771_v33 = vor.u32 %v5455_v56, %v4768_v31  ;;  %v5414_v9 = vld [vmem:[#allocation2 + $0x144] sm:$0xf]  ;;  %v4606_v17 = vld [vmem:[#allocation2 + $0x148] sm:$0xf] }
0x1e2b   :  { %v4600_v26 = vld [vmem:[#allocation2 + $0x1e0] sm:$0xf0]  ;;  %v4599_v40 = vor.u32 %v5434_v39, %v4598_v32  ;;  %v5435_v41 = vld [vmem:[#allocation2 + $0x1e4] sm:$0xf0]  ;;  %v5415_v42 = vld [vmem:[#allocation2 + $0x14c] sm:$0xf] }
0x1e2c   :  { %2401 = vmatpush.bf16.msra.mxu0 %v4759_v27  ;;  %v4608_v43 = vld [vmem:[#allocation2 + $0x1e8] sm:$0xf0]  ;;  %2414 = vmatpush.bf16.msrb.mxu1 %v4763_v19  ;;  %v4603_v44 = vor.u32 %v5414_v9, %v4600_v26  ;;  %v4607_v34 = vor.u32 %v5435_v41, %v4606_v17  ;;  %v4438_v35 = vld [vmem:[#allocation2] sm:$0xf]  ;;  %v5374_v45 = vld [vmem:[#allocation2 + $0x4] sm:$0xf] }
0x1e2d   :  { %2427 = vmatpush.bf16.msra.mxu2 %v4767_v23  ;;  %v5394_v37 = vld [vmem:[#allocation2 + $0x9c] sm:$0xf0]  ;;  %v4611_v38 = vor.u32 %v5415_v42, %v4608_v43  ;;  %v4440_v46 = vld [vmem:[#allocation2 + $0xa0] sm:$0xf0]  ;;  %v4446_v47 = vld [vmem:[#allocation2 + $0x8] sm:$0xf] }
0x1e2e   :  { %2440 = vmatpush.bf16.msrb.mxu3 %v4771_v33  ;;  %v5395_v48 = vld [vmem:[#allocation2 + $0xa4] sm:$0xf0]  ;;  %v5375_v12 = vld [vmem:[#allocation2 + $0xc] sm:$0xf]  ;;  %v4942_v50 = vld [vmem:[#allocation2 + $0x3d8] sm:$0xf]  ;;  %v4439_v51 = vor.u32 %v5394_v37, %v4438_v35  ;;  %v4443_v53 = vor.u32 %v5374_v45, %v4440_v46 }
0x1e2f   :  { %v4448_v49 = vld [vmem:[#allocation2 + $0xa8] sm:$0xf0]  ;;  %v5517_v52 = vld [vmem:[#allocation2 + $0x474] sm:$0xf0]  ;;  %v4447_v54 = vor.u32 %v5395_v48, %v4446_v47  ;;  %v5496_v30 = vld [vmem:[#allocation2 + $0x3d4] sm:$0xf] }
0x1e30   :  { %2402 = vmatpush.bf16.msra.mxu0 %v4599_v40  ;;  %2415 = vmatpush.bf16.msrb.mxu1 %v4603_v44  ;;  %v4936_v55 = vld [vmem:[#allocation2 + $0x470] sm:$0xf0]  ;;  %v4451_v57 = vor.u32 %v5375_v12, %v4448_v49  ;;  %v4943_v58 = vor.u32 %v5517_v52, %v4942_v50  ;;  %v4934_v59 = vld [vmem:[#allocation2 + $0x3d0] sm:$0xf]  ;;  %v5497_v61 = vld [vmem:[#allocation2 + $0x3dc] sm:$0xf] }
0x1e31   :  { %2428 = vmatpush.bf16.msra.mxu2 %v4607_v34  ;;  %v5516_v60 = vld [vmem:[#allocation2 + $0x46c] sm:$0xf0]  ;;  %v4939_v1 = vor.u32 %v5496_v30, %v4936_v55  ;;  %v4944_v62 = vld [vmem:[#allocation2 + $0x478] sm:$0xf0]  ;;  %v4782_v63 = vld [vmem:[#allocation2 + $0x298] sm:$0xf] }
0x1e32   :  { %2441 = vmatpush.bf16.msrb.mxu3 %v4611_v38  ;;  %v5477_v0 = vld [vmem:[#allocation2 + $0x334] sm:$0xf0]  ;;  %vm2392_vm0 = vcmask 523264   ;;  %v5456_v2 = vld [vmem:[#allocation2 + $0x294] sm:$0xf]  ;;  %v4935_v36 = vor.u32 %v5516_v60, %v4934_v59  ;;  %v4947_v5 = vor.u32 %v5497_v61, %v4944_v62 }
0x1e33   :  { %v4776_v3 = vld [vmem:[#allocation2 + $0x330] sm:$0xf0]  ;;  %v4783_v6 = vor.u32 %v5477_v0, %v4782_v63  ;;  %v4774_v7 = vld [vmem:[#allocation2 + $0x290] sm:$0xf]  ;;  %v5457_v11 = vld [vmem:[#allocation2 + $0x29c] sm:$0xf] }
0x1e34   :  { %2403 = vmatpush.bf16.msra.mxu0 %v4439_v51  ;;  %2416 = vmatpush.bf16.msrb.mxu1 %v4443_v53  ;;  %v5476_v8 = vld [vmem:[#allocation2 + $0x32c] sm:$0xf0]  ;;  %v4779_v13 = vor.u32 %v5456_v2, %v4776_v3  ;;  %v4784_v14 = vld [vmem:[#allocation2 + $0x338] sm:$0xf0]  ;;  %v4622_v15 = vld [vmem:[#allocation2 + $0x158] sm:$0xf] }
0x1e35   :  { %2429 = vmatpush.bf16.msra.mxu2 %v4447_v54  ;;  %v5437_v10 = vld [vmem:[#allocation2 + $0x1f4] sm:$0xf0]  ;;  %v5416_v16 = vld [vmem:[#allocation2 + $0x154] sm:$0xf]  ;;  %v4775_v20 = vor.u32 %v5476_v8, %v4774_v7  ;;  %v4614_v21 = vld [vmem:[#allocation2 + $0x150] sm:$0xf]  ;;  %v4787_v22 = vor.u32 %v5457_v11, %v4784_v14 }
0x1e36   :  { %2442 = vmatpush.bf16.msrb.mxu3 %v4451_v57  ;;  %v4616_v18 = vld [vmem:[#allocation2 + $0x1f0] sm:$0xf0]  ;;  %v4623_v24 = vor.u32 %v5437_v10, %v4622_v15  ;;  %v5436_v25 = vld [vmem:[#allocation2 + $0x1ec] sm:$0xf0]  ;;  %v5417_v27 = vld [vmem:[#allocation2 + $0x15c] sm:$0xf] }
0x1e37   :  { %5076 = vmatmul.msk.bf16.vlgmr.msra.gmra.mxu0 %vm2392_vm0, %v6549_v4  ;;  %5077 = vmatmul.msk.bf16.vlgmr.msrb.gmra.mxu1 %vm2392_vm0, %v6549_v4  ;;  %v4624_v19 = vld [vmem:[#allocation2 + $0x1f8] sm:$0xf0]  ;;  %v4619_v28 = vor.u32 %v5416_v16, %v4616_v18  ;;  %v4462_v29 = vld [vmem:[#allocation2 + $0x18] sm:$0xf]  ;;  %v5376_v23 = vld [vmem:[#allocation2 + $0x14] sm:$0xf]  ;;  %v4615_v33 = vor.u32 %v5436_v25, %v4614_v21 }
0x1e38   :  { %2465 = vmatpush.bf16.msra.mxu1 %v4939_v1  ;;  %5078 = vmatmul.msk.bf16.vlgmr.msra.gmra.mxu2 %vm2392_vm0, %v6549_v4  ;;  %v5397_v56 = vld [vmem:[#allocation2 + $0xb4] sm:$0xf0]  ;;  %v4456_v31 = vld [vmem:[#allocation2 + $0xb0] sm:$0xf0]  ;;  %v4958_v32 = vld [vmem:[#allocation2 + $0x3e8] sm:$0xf]  ;;  %v4627_v40 = vor.u32 %v5417_v27, %v4624_v19 }
0x1e39   :  { %2478 = vmatpush.bf16.msrb.mxu2 %v4943_v58  ;;  %5079 = vmatmul.msk.bf16.vlgmr.msrb.gmra.mxu3 %vm2392_vm0, %v6549_v4  ;;  %v5519_v39 = vld [vmem:[#allocation2 + $0x484] sm:$0xf0]  ;;  %v4454_v9 = vld [vmem:[#allocation2 + $0x10] sm:$0xf]  ;;  %v5498_v26 = vld [vmem:[#allocation2 + $0x3e4] sm:$0xf]  ;;  %v4463_v41 = vor.u32 %v5397_v56, %v4462_v29  ;;  %v4459_v34 = vor.u32 %v5376_v23, %v4456_v31 }
0x1e3a   :  { %2452 = vmatpush.bf16.msrb.mxu0 %v4935_v36  ;;  %2491 = vmatpush.bf16.msra.mxu3 %v4947_v5  ;;  %v4952_v17 = vld [vmem:[#allocation2 + $0x480] sm:$0xf0]  ;;  %v5396_v42 = vld [vmem:[#allocation2 + $0xac] sm:$0xf0]  ;;  %v5377_v43 = vld [vmem:[#allocation2 + $0x1c] sm:$0xf]  ;;  %v4959_v35 = vor.u32 %v5519_v39, %v4958_v32 }
0x1e3b   :  { %v4464_v44 = vld [vmem:[#allocation2 + $0xb8] sm:$0xf0]  ;;  %v4950_v37 = vld [vmem:[#allocation2 + $0x3e0] sm:$0xf]  ;;  %v5499_v38 = vld [vmem:[#allocation2 + $0x3ec] sm:$0xf]  ;;  %v4955_v46 = vor.u32 %v5498_v26, %v4952_v17  ;;  %v4455_v49 = vor.u32 %v5396_v42, %v4454_v9 }
0x1e3c   :  { %2466 = vmatpush.bf16.msra.mxu1 %v4779_v13  ;;  %v5518_v45 = vld [vmem:[#allocation2 + $0x47c] sm:$0xf0]  ;;  %v4960_v47 = vld [vmem:[#allocation2 + $0x488] sm:$0xf0]  ;;  %v4798_v48 = vld [vmem:[#allocation2 + $0x2a8] sm:$0xf]  ;;  %v4467_v50 = vor.u32 %v5377_v43, %v4464_v44 }
0x1e3d   :  { %2479 = vmatpush.bf16.msrb.mxu2 %v4783_v6  ;;  %v5479_v12 = vld [vmem:[#allocation2 + $0x344] sm:$0xf0]  ;;  %v4951_v51 = vor.u32 %v5518_v45, %v4950_v37  ;;  %v4790_v52 = vld [vmem:[#allocation2 + $0x2a0] sm:$0xf]  ;;  %v4963_v54 = vor.u32 %v5499_v38, %v4960_v47  ;;  %v5458_v55 = vld [vmem:[#allocation2 + $0x2a4] sm:$0xf] }
0x1e3e   :  { %2453 = vmatpush.bf16.msrb.mxu0 %v4775_v20  ;;  %2492 = vmatpush.bf16.msra.mxu3 %v4787_v22  ;;  %v5478_v53 = vld [vmem:[#allocation2 + $0x33c] sm:$0xf0]  ;;  %v4799_v30 = vor.u32 %v5479_v12, %v4798_v48  ;;  %v4792_v57 = vld [vmem:[#allocation2 + $0x340] sm:$0xf0]  ;;  %v5459_v58 = vld [vmem:[#allocation2 + $0x2ac] sm:$0xf] }
0x1e3f   :  { %v4800_v59 = vld [vmem:[#allocation2 + $0x348] sm:$0xf0]  ;;  %v4638_v60 = vld [vmem:[#allocation2 + $0x168] sm:$0xf]  ;;  %v4791_v1 = vor.u32 %v5478_v53, %v4790_v52  ;;  %v4795_v62 = vor.u32 %v5458_v55, %v4792_v57  ;;  %v4630_v63 = vld [vmem:[#allocation2 + $0x160] sm:$0xf] }
0x1e40   :  { %2467 = vmatpush.bf16.msra.mxu1 %v4619_v28  ;;  %v5439_v61 = vld [vmem:[#allocation2 + $0x204] sm:$0xf0]  ;;  %v5438_v0 = vld [vmem:[#allocation2 + $0x1fc] sm:$0xf0]  ;;  %v4803_v2 = vor.u32 %v5459_v58, %v4800_v59  ;;  %v5418_v36 = vld [vmem:[#allocation2 + $0x164] sm:$0xf] }
0x1e41   :  { %2480 = vmatpush.bf16.msrb.mxu2 %v4623_v24  ;;  %v4639_v3 = vor.u32 %v5439_v61, %v4638_v60  ;;  %v4632_v5 = vld [vmem:[#allocation2 + $0x200] sm:$0xf0]  ;;  %v5419_v6 = vld [vmem:[#allocation2 + $0x16c] sm:$0xf]  ;;  %v4478_v8 = vld [vmem:[#allocation2 + $0x28] sm:$0xf]  ;;  %v4631_v15 = vor.u32 %v5438_v0, %v4630_v63 }
0x1e42   :  { %2454 = vmatpush.bf16.msrb.mxu0 %v4615_v33  ;;  %2493 = vmatpush.bf16.msra.mxu3 %v4627_v40  ;;  %v4640_v7 = vld [vmem:[#allocation2 + $0x208] sm:$0xf0]  ;;  %v5399_v11 = vld [vmem:[#allocation2 + $0xc4] sm:$0xf0]  ;;  %v4974_v13 = vld [vmem:[#allocation2 + $0x3f8] sm:$0xf]  ;;  %v4635_v10 = vor.u32 %v5418_v36, %v4632_v5 }
0x1e43   :  { %v5521_v14 = vld [vmem:[#allocation2 + $0x494] sm:$0xf0]  ;;  %v4470_v16 = vld [vmem:[#allocation2 + $0x20] sm:$0xf]  ;;  %v5378_v20 = vld [vmem:[#allocation2 + $0x24] sm:$0xf]  ;;  %v4643_v21 = vor.u32 %v5419_v6, %v4640_v7  ;;  %v4479_v22 = vor.u32 %v5399_v11, %v4478_v8 }
0x1e44   :  { %2468 = vmatpush.bf16.msra.mxu1 %v4459_v34  ;;  %v5398_v18 = vld [vmem:[#allocation2 + $0xbc] sm:$0xf0]  ;;  %v4472_v24 = vld [vmem:[#allocation2 + $0xc0] sm:$0xf0]  ;;  %v5379_v25 = vld [vmem:[#allocation2 + $0x2c] sm:$0xf]  ;;  %v4975_v19 = vor.u32 %v5521_v14, %v4974_v13 }
0x1e45   :  { %2481 = vmatpush.bf16.msrb.mxu2 %v4463_v41  ;;  %v4480_v27 = vld [vmem:[#allocation2 + $0xc8] sm:$0xf0]  ;;  %v4966_v28 = vld [vmem:[#allocation2 + $0x3f0] sm:$0xf]  ;;  %v5500_v56 = vld [vmem:[#allocation2 + $0x3f4] sm:$0xf]  ;;  %v4471_v39 = vor.u32 %v5398_v18, %v4470_v16  ;;  %v4475_v33 = vor.u32 %v5378_v20, %v4472_v24 }
0x1e46   :  { %2455 = vmatpush.bf16.msrb.mxu0 %v4455_v49  ;;  %2494 = vmatpush.bf16.msra.mxu3 %v4467_v50  ;;  %v5520_v29 = vld [vmem:[#allocation2 + $0x48c] sm:$0xf0]  ;;  %v4968_v23 = vld [vmem:[#allocation2 + $0x490] sm:$0xf0]  ;;  %v5501_v31 = vld [vmem:[#allocation2 + $0x3fc] sm:$0xf]  ;;  %v4483_v17 = vor.u32 %v5379_v25, %v4480_v27 }
0x1e47   :  { %5081 = vmatmul.msk.bf16.vlgmr.msra.gmra.mxu1 %vm2392_vm0, %v6549_v4  ;;  %v4976_v32 = vld [vmem:[#allocation2 + $0x498] sm:$0xf0]  ;;  %v4814_v9 = vld [vmem:[#allocation2 + $0x2b8] sm:$0xf]  ;;  %v4967_v40 = vor.u32 %v5520_v29, %v4966_v28  ;;  %v4971_v41 = vor.u32 %v5500_v56, %v4968_v23  ;;  %v4806_v43 = vld [vmem:[#allocation2 + $0x2b0] sm:$0xf] }
0x1e48   :  { %2517 = vmatpush.bf16.msrb.mxu1 %v4955_v46  ;;  %5082 = vmatmul.msk.bf16.vlgmr.msrb.gmra.mxu2 %vm2392_vm0, %v6549_v4  ;;  %v5481_v26 = vld [vmem:[#allocation2 + $0x354] sm:$0xf0]  ;;  %v4979_v42 = vor.u32 %v5501_v31, %v4976_v32  ;;  %v5480_v44 = vld [vmem:[#allocation2 + $0x34c] sm:$0xf0]  ;;  %v4808_v37 = vld [vmem:[#allocation2 + $0x350] sm:$0xf0] }
0x1e49   :  { %2530 = vmatpush.bf16.msra.mxu2 %v4959_v35  ;;  %5080 = vmatmul.msk.bf16.vlgmr.msrb.gmra.mxu0 %vm2392_vm0, %v6549_v4  ;;  %v4815_v34 = vor.u32 %v5481_v26, %v4814_v9  ;;  %v5460_v35 = vld [vmem:[#allocation2 + $0x2b4] sm:$0xf]  ;;  %v4807_v45 = vor.u32 %v5480_v44, %v4806_v43  ;;  %v5461_v38 = vld [vmem:[#allocation2 + $0x2bc] sm:$0xf]  ;;  %v4654_v47 = vld [vmem:[#allocation2 + $0x178] sm:$0xf] }
0x1e4a   :  { %2504 = vmatpush.bf16.msra.mxu0 %v4951_v51  ;;  %2543 = vmatpush.bf16.msrb.mxu3 %v4963_v54  ;;  %v4816_v46 = vld [vmem:[#allocation2 + $0x358] sm:$0xf0]  ;;  %v5441_v48 = vld [vmem:[#allocation2 + $0x214] sm:$0xf0]  ;;  %v4646_v12 = vld [vmem:[#allocation2 + $0x170] sm:$0xf]  ;;  %v4811_v50 = vor.u32 %v5460_v35, %v4808_v37 }
0x1e4b   :  { %5083 = vmatmul.msk.bf16.vlgmr.msra.gmra.mxu3 %vm2392_vm0, %v6549_v4  ;;  %v5440_v49 = vld [vmem:[#allocation2 + $0x20c] sm:$0xf0]  ;;  %v4819_v51 = vor.u32 %v5461_v38, %v4816_v46  ;;  %v5420_v52 = vld [vmem:[#allocation2 + $0x174] sm:$0xf]  ;;  %v5421_v54 = vld [vmem:[#allocation2 + $0x17c] sm:$0xf] }
0x1e4c   :  { %2518 = vmatpush.bf16.msrb.mxu1 %v4795_v62  ;;  %v4648_v53 = vld [vmem:[#allocation2 + $0x210] sm:$0xf0]  ;;  %v4647_v55 = vor.u32 %v5440_v49, %v4646_v12  ;;  %v4656_v57 = vld [vmem:[#allocation2 + $0x218] sm:$0xf0]  ;;  %v4494_v58 = vld [vmem:[#allocation2 + $0x38] sm:$0xf] }
0x1e4d   :  { %2531 = vmatpush.bf16.msra.mxu2 %v4799_v30  ;;  %v4655_v30 = vor.u32 %v5441_v48, %v4654_v47  ;;  %v5401_v59 = vld [vmem:[#allocation2 + $0xd4] sm:$0xf0]  ;;  %v4486_v60 = vld [vmem:[#allocation2 + $0x30] sm:$0xf]  ;;  %v5523_v62 = vld [vmem:[#allocation2 + $0x4a4] sm:$0xf0] }
0x1e4e   :  { %2505 = vmatpush.bf16.msra.mxu0 %v4791_v1  ;;  %2544 = vmatpush.bf16.msrb.mxu3 %v4803_v2  ;;  %v5400_v61 = vld [vmem:[#allocation2 + $0xcc] sm:$0xf0]  ;;  %v4990_v1 = vld [vmem:[#allocation2 + $0x408] sm:$0xf]  ;;  %v4982_v63 = vld [vmem:[#allocation2 + $0x400] sm:$0xf]  ;;  %v4651_v2 = vor.u32 %v5420_v52, %v4648_v53  ;;  %v4495_v7 = vor.u32 %v5401_v59, %v4494_v58 }
0x1e4f   :  { %v5522_v0 = vld [vmem:[#allocation2 + $0x49c] sm:$0xf0]  ;;  %v5380_v36 = vld [vmem:[#allocation2 + $0x34] sm:$0xf]  ;;  %v5381_v6 = vld [vmem:[#allocation2 + $0x3c] sm:$0xf]  ;;  %v4487_v8 = vor.u32 %v5400_v61, %v4486_v60 }
0x1e50   :  { %2519 = vmatpush.bf16.msrb.mxu1 %v4635_v10  ;;  %v4488_v5 = vld [vmem:[#allocation2 + $0xd0] sm:$0xf0]  ;;  %v4496_v11 = vld [vmem:[#allocation2 + $0xd8] sm:$0xf0]  ;;  %v5502_v13 = vld [vmem:[#allocation2 + $0x404] sm:$0xf]  ;;  %v4983_v10 = vor.u32 %v5522_v0, %v4982_v63 }
0x1e51   :  { %2532 = vmatpush.bf16.msra.mxu2 %v4639_v3  ;;  %v4659_v3 = vor.u32 %v5421_v54, %v4656_v57  ;;  %v4984_v14 = vld [vmem:[#allocation2 + $0x4a0] sm:$0xf0]  ;;  %v5503_v16 = vld [vmem:[#allocation2 + $0x40c] sm:$0xf]  ;;  %v4830_v20 = vld [vmem:[#allocation2 + $0x2c8] sm:$0xf]  ;;  %v4491_v25 = vor.u32 %v5380_v36, %v4488_v5  ;;  %v4499_v27 = vor.u32 %v5381_v6, %v4496_v11 }
0x1e52   :  { %2506 = vmatpush.bf16.msra.mxu0 %v4631_v15  ;;  %2545 = vmatpush.bf16.msrb.mxu3 %v4643_v21  ;;  %v4991_v15 = vor.u32 %v5523_v62, %v4990_v1  ;;  %v4992_v18 = vld [vmem:[#allocation2 + $0x4a8] sm:$0xf0]  ;;  %v5483_v21 = vld [vmem:[#allocation2 + $0x364] sm:$0xf0]  ;;  %v5482_v24 = vld [vmem:[#allocation2 + $0x35c] sm:$0xf0] }
0x1e53   :  { %v4995_v28 = vor.u32 %v5503_v16, %v4992_v18  ;;  %v5462_v29 = vld [vmem:[#allocation2 + $0x2c4] sm:$0xf]  ;;  %v4831_v56 = vor.u32 %v5483_v21, %v4830_v20  ;;  %v5463_v32 = vld [vmem:[#allocation2 + $0x2cc] sm:$0xf]  ;;  %v5443_v9 = vld [vmem:[#allocation2 + $0x224] sm:$0xf0] }
0x1e54   :  { %2520 = vmatpush.bf16.msrb.mxu1 %v4475_v33  ;;  %v4824_v31 = vld [vmem:[#allocation2 + $0x360] sm:$0xf0]  ;;  %v4670_v33 = vld [vmem:[#allocation2 + $0x188] sm:$0xf]  ;;  %v5423_v44 = vld [vmem:[#allocation2 + $0x18c] sm:$0xf] }
0x1e55   :  { %2533 = vmatpush.bf16.msra.mxu2 %v4479_v22  ;;  %v4822_v22 = vld [vmem:[#allocation2 + $0x2c0] sm:$0xf]  ;;  %v4827_v26 = vor.u32 %v5462_v29, %v4824_v31  ;;  %v4664_v43 = vld [vmem:[#allocation2 + $0x220] sm:$0xf0]  ;;  %v4510_v35 = vld [vmem:[#allocation2 + $0x48] sm:$0xf]  ;;  %v4671_v37 = vor.u32 %v5443_v9, %v4670_v33 }
0x1e56   :  { %2507 = vmatpush.bf16.msra.mxu0 %v4471_v39  ;;  %2546 = vmatpush.bf16.msrb.mxu3 %v4483_v17  ;;  %v4823_v23 = vor.u32 %v5482_v24, %v4822_v22  ;;  %v4832_v39 = vld [vmem:[#allocation2 + $0x368] sm:$0xf0]  ;;  %v5403_v38 = vld [vmem:[#allocation2 + $0xe4] sm:$0xf0]  ;;  %v4502_v46 = vld [vmem:[#allocation2 + $0x40] sm:$0xf] }
0x1e57   :  { %5085 = vmatmul.msk.bf16.vlgmr.msrb.gmra.mxu1 %vm2392_vm0, %v6549_v4  ;;  %v4835_v17 = vor.u32 %v5463_v32, %v4832_v39  ;;  %v5402_v47 = vld [vmem:[#allocation2 + $0xdc] sm:$0xf0]  ;;  %v5382_v49 = vld [vmem:[#allocation2 + $0x44] sm:$0xf]  ;;  %v4512_v52 = vld [vmem:[#allocation2 + $0xe8] sm:$0xf0]  ;;  %v4511_v58 = vor.u32 %v5403_v38, %v4510_v35 }
0x1e58   :  { %2569 = vmatpush.bf16.msra.mxu1 %v4971_v41  ;;  %5086 = vmatmul.msk.bf16.vlgmr.msra.gmra.mxu2 %vm2392_vm0, %v6549_v4  ;;  %v5442_v41 = vld [vmem:[#allocation2 + $0x21c] sm:$0xf0]  ;;  %v5006_v53 = vld [vmem:[#allocation2 + $0x418] sm:$0xf]  ;;  %v5504_v57 = vld [vmem:[#allocation2 + $0x414] sm:$0xf]  ;;  %v4503_v59 = vor.u32 %v5402_v47, %v4502_v46 }
0x1e59   :  { %2582 = vmatpush.bf16.msrb.mxu2 %v4975_v19  ;;  %5084 = vmatmul.msk.bf16.vlgmr.msra.gmra.mxu0 %vm2392_vm0, %v6549_v4  ;;  %v4987_v19 = vor.u32 %v5502_v13, %v4984_v14  ;;  %v5525_v54 = vld [vmem:[#allocation2 + $0x4b4] sm:$0xf0]  ;;  %v5000_v60 = vld [vmem:[#allocation2 + $0x4b0] sm:$0xf0]  ;;  %v5505_v61 = vld [vmem:[#allocation2 + $0x41c] sm:$0xf] }
0x1e5a   :  { %2556 = vmatpush.bf16.msrb.mxu0 %v4967_v40  ;;  %2595 = vmatpush.bf16.msra.mxu3 %v4979_v42  ;;  %v4662_v40 = vld [vmem:[#allocation2 + $0x180] sm:$0xf]  ;;  %v5422_v42 = vld [vmem:[#allocation2 + $0x184] sm:$0xf]  ;;  %v5008_v1 = vld [vmem:[#allocation2 + $0x4b8] sm:$0xf0]  ;;  %v5007_v0 = vor.u32 %v5525_v54, %v5006_v53  ;;  %v5003_v5 = vor.u32 %v5504_v57, %v5000_v60 }
0x1e5b   :  { %5087 = vmatmul.msk.bf16.vlgmr.msrb.gmra.mxu3 %vm2392_vm0, %v6549_v4  ;;  %v4667_v48 = vor.u32 %v5422_v42, %v4664_v43  ;;  %v5485_v36 = vld [vmem:[#allocation2 + $0x374] sm:$0xf0]  ;;  %v5011_v6 = vor.u32 %v5505_v61, %v5008_v1  ;;  %v5464_v11 = vld [vmem:[#allocation2 + $0x2d4] sm:$0xf]  ;;  %v5465_v14 = vld [vmem:[#allocation2 + $0x2dc] sm:$0xf] }
0x1e5c   :  { %2570 = vmatpush.bf16.msra.mxu1 %v4811_v50  ;;  %v4504_v50 = vld [vmem:[#allocation2 + $0xe0] sm:$0xf0]  ;;  %v4840_v13 = vld [vmem:[#allocation2 + $0x370] sm:$0xf0]  ;;  %v4686_v21 = vld [vmem:[#allocation2 + $0x198] sm:$0xf] }
0x1e5d   :  { %2583 = vmatpush.bf16.msrb.mxu2 %v4815_v34  ;;  %v4672_v34 = vld [vmem:[#allocation2 + $0x228] sm:$0xf0]  ;;  %v4507_v62 = vor.u32 %v5382_v49, %v4504_v50  ;;  %v4843_v18 = vor.u32 %v5464_v11, %v4840_v13  ;;  %v5445_v22 = vld [vmem:[#allocation2 + $0x234] sm:$0xf0]  ;;  %v4678_v24 = vld [vmem:[#allocation2 + $0x190] sm:$0xf] }
0x1e5e   :  { %2557 = vmatpush.bf16.msrb.mxu0 %v4807_v45  ;;  %2596 = vmatpush.bf16.msra.mxu3 %v4819_v51  ;;  %v4663_v45 = vor.u32 %v5442_v41, %v4662_v40  ;;  %v4675_v12 = vor.u32 %v5423_v44, %v4672_v34  ;;  %v5383_v51 = vld [vmem:[#allocation2 + $0x4c] sm:$0xf]  ;;  %v4688_v29 = vld [vmem:[#allocation2 + $0x238] sm:$0xf0]  ;;  %v5405_v32 = vld [vmem:[#allocation2 + $0xf4] sm:$0xf0] }
0x1e5f   :  { %v4515_v63 = vor.u32 %v5383_v51, %v4512_v52  ;;  %v4518_v39 = vld [vmem:[#allocation2 + $0x50] sm:$0xf]  ;;  %v4520_v40 = vld [vmem:[#allocation2 + $0xf0] sm:$0xf0]  ;;  %v5385_v41 = vld [vmem:[#allocation2 + $0x5c] sm:$0xf] }
0x1e60   :  { %2571 = vmatpush.bf16.msra.mxu1 %v4651_v2  ;;  %v5404_v33 = vld [vmem:[#allocation2 + $0xec] sm:$0xf0]  ;;  %v4528_v42 = vld [vmem:[#allocation2 + $0xf8] sm:$0xf0]  ;;  %v5022_v43 = vld [vmem:[#allocation2 + $0x428] sm:$0xf] }
0x1e61   :  { %2584 = vmatpush.bf16.msrb.mxu2 %v4655_v30  ;;  %v4998_v30 = vld [vmem:[#allocation2 + $0x410] sm:$0xf]  ;;  %v5527_v44 = vld [vmem:[#allocation2 + $0x4c4] sm:$0xf0]  ;;  %v5014_v34 = vld [vmem:[#allocation2 + $0x420] sm:$0xf]  ;;  %v4519_v38 = vor.u32 %v5404_v33, %v4518_v39  ;;  %v4531_v49 = vor.u32 %v5385_v41, %v4528_v42 }
0x1e62   :  { %2558 = vmatpush.bf16.msrb.mxu0 %v4647_v55  ;;  %2597 = vmatpush.bf16.msra.mxu3 %v4659_v3  ;;  %v5524_v55 = vld [vmem:[#allocation2 + $0x4ac] sm:$0xf0]  ;;  %v4846_v3 = vld [vmem:[#allocation2 + $0x2d8] sm:$0xf]  ;;  %v5526_v35 = vld [vmem:[#allocation2 + $0x4bc] sm:$0xf0]  ;;  %v5023_v50 = vor.u32 %v5527_v44, %v5022_v43 }
0x1e63   :  { %v4999_v2 = vor.u32 %v5524_v55, %v4998_v30  ;;  %v5016_v46 = vld [vmem:[#allocation2 + $0x4c0] sm:$0xf0]  ;;  %v5507_v47 = vld [vmem:[#allocation2 + $0x42c] sm:$0xf]  ;;  %v5015_v51 = vor.u32 %v5526_v35, %v5014_v34  ;;  %v4862_v52 = vld [vmem:[#allocation2 + $0x2e8] sm:$0xf] }
0x1e64   :  { %2572 = vmatpush.bf16.msra.mxu1 %v4491_v25  ;;  %v5444_v25 = vld [vmem:[#allocation2 + $0x22c] sm:$0xf0]  ;;  %v5487_v53 = vld [vmem:[#allocation2 + $0x384] sm:$0xf0]  ;;  %v4854_v55 = vld [vmem:[#allocation2 + $0x2e0] sm:$0xf] }
0x1e65   :  { %2585 = vmatpush.bf16.msrb.mxu2 %v4495_v7  ;;  %v4838_v7 = vld [vmem:[#allocation2 + $0x2d0] sm:$0xf]  ;;  %v4679_v31 = vor.u32 %v5444_v25, %v4678_v24  ;;  %v5486_v57 = vld [vmem:[#allocation2 + $0x37c] sm:$0xf0]  ;;  %v5467_v60 = vld [vmem:[#allocation2 + $0x2ec] sm:$0xf]  ;;  %v4863_v1 = vor.u32 %v5487_v53, %v4862_v52 }
0x1e66   :  { %2559 = vmatpush.bf16.msrb.mxu0 %v4487_v8  ;;  %2598 = vmatpush.bf16.msra.mxu3 %v4499_v27  ;;  %v5484_v8 = vld [vmem:[#allocation2 + $0x36c] sm:$0xf0]  ;;  %v5424_v27 = vld [vmem:[#allocation2 + $0x194] sm:$0xf]  ;;  %v4864_v61 = vld [vmem:[#allocation2 + $0x388] sm:$0xf0] }
0x1e67   :  { %5089 = vmatmul.msk.bf16.vlgmr.msra.gmra.mxu1 %vm2392_vm0, %v6549_v4  ;;  %v4839_v16 = vor.u32 %v5484_v8, %v4838_v7  ;;  %v4696_v7 = vld [vmem:[#allocation2 + $0x240] sm:$0xf0]  ;;  %v5427_v8 = vld [vmem:[#allocation2 + $0x1ac] sm:$0xf]  ;;  %v4542_v13 = vld [vmem:[#allocation2 + $0x68] sm:$0xf] }
0x1e68   :  { %2621 = vmatpush.bf16.msrb.mxu1 %v4987_v19  ;;  %5090 = vmatmul.msk.bf16.vlgmr.msrb.gmra.mxu2 %vm2392_vm0, %v6549_v4  ;;  %v4680_v19 = vld [vmem:[#allocation2 + $0x230] sm:$0xf0]  ;;  %v4704_v11 = vld [vmem:[#allocation2 + $0x248] sm:$0xf0]  ;;  %v4536_v24 = vld [vmem:[#allocation2 + $0x100] sm:$0xf0] }
0x1e69   :  { %2634 = vmatpush.bf16.msra.mxu2 %v4991_v15  ;;  %5088 = vmatmul.msk.bf16.vlgmr.msrb.gmra.mxu0 %vm2392_vm0, %v6549_v4  ;;  %v4848_v15 = vld [vmem:[#allocation2 + $0x378] sm:$0xf0]  ;;  %v4683_v9 = vor.u32 %v5424_v27, %v4680_v19  ;;  %v5387_v25 = vld [vmem:[#allocation2 + $0x6c] sm:$0xf]  ;;  %v5038_v19 = vld [vmem:[#allocation2 + $0x438] sm:$0xf] }
0x1e6a   :  { %2608 = vmatpush.bf16.msra.mxu0 %v4983_v10  ;;  %2647 = vmatpush.bf16.msrb.mxu3 %v4995_v28  ;;  %v4847_v10 = vor.u32 %v5485_v36, %v4846_v3  ;;  %v4851_v20 = vor.u32 %v5465_v14, %v4848_v15  ;;  %v5425_v28 = vld [vmem:[#allocation2 + $0x19c] sm:$0xf]  ;;  %v5447_v3 = vld [vmem:[#allocation2 + $0x244] sm:$0xf0]  ;;  %v4694_v36 = vld [vmem:[#allocation2 + $0x1a0] sm:$0xf] }
0x1e6b   :  { %5091 = vmatmul.msk.bf16.vlgmr.msra.gmra.mxu3 %vm2392_vm0, %v6549_v4  ;;  %v4544_v27 = vld [vmem:[#allocation2 + $0x108] sm:$0xf0]  ;;  %v5032_v39 = vld [vmem:[#allocation2 + $0x4d0] sm:$0xf0]  ;;  %v5509_v33 = vld [vmem:[#allocation2 + $0x43c] sm:$0xf] }
0x1e6c   :  { %2622 = vmatpush.bf16.msrb.mxu1 %v4827_v26  ;;  %v4691_v26 = vor.u32 %v5425_v28, %v4688_v29  ;;  %v5529_v28 = vld [vmem:[#allocation2 + $0x4d4] sm:$0xf0]  ;;  %v5030_v29 = vld [vmem:[#allocation2 + $0x430] sm:$0xf] }
0x1e6d   :  { %2635 = vmatpush.bf16.msra.mxu2 %v4831_v56  ;;  %v4526_v56 = vld [vmem:[#allocation2 + $0x58] sm:$0xf]  ;;  %v4870_v35 = vld [vmem:[#allocation2 + $0x2f0] sm:$0xf] }
0x1e6e   :  { %2609 = vmatpush.bf16.msra.mxu0 %v4823_v23  ;;  %2648 = vmatpush.bf16.msrb.mxu3 %v4835_v17  ;;  %v4687_v23 = vor.u32 %v5445_v22, %v4686_v21  ;;  %v5384_v17 = vld [vmem:[#allocation2 + $0x54] sm:$0xf]  ;;  %v4707_v21 = vor.u32 %v5427_v8, %v4704_v11  ;;  %v5386_v22 = vld [vmem:[#allocation2 + $0x64] sm:$0xf]  ;;  %v4878_v42 = vld [vmem:[#allocation2 + $0x2f8] sm:$0xf] }
0x1e6f   :  { %v5489_v43 = vld [vmem:[#allocation2 + $0x394] sm:$0xf0]  ;;  %v4710_v53 = vld [vmem:[#allocation2 + $0x1b0] sm:$0xf]  ;;  %v5531_v8 = vld [vmem:[#allocation2 + $0x4e4] sm:$0xf0] }
0x1e70   :  { %2623 = vmatpush.bf16.msrb.mxu1 %v4667_v48  ;;  %v5024_v48 = vld [vmem:[#allocation2 + $0x4c8] sm:$0xf0]  ;;  %v5449_v52 = vld [vmem:[#allocation2 + $0x254] sm:$0xf0]  ;;  %v5046_v11 = vld [vmem:[#allocation2 + $0x440] sm:$0xf] }
0x1e71   :  { %2636 = vmatpush.bf16.msra.mxu2 %v4671_v37  ;;  %v5506_v37 = vld [vmem:[#allocation2 + $0x424] sm:$0xf]  ;;  %v5027_v30 = vor.u32 %v5507_v47, %v5024_v48  ;;  %v4880_v47 = vld [vmem:[#allocation2 + $0x398] sm:$0xf0]  ;;  %v4879_v48 = vor.u32 %v5489_v43, %v4878_v42  ;;  %v5451_v42 = vld [vmem:[#allocation2 + $0x264] sm:$0xf0] }
0x1e72   :  { %2610 = vmatpush.bf16.msra.mxu0 %v4663_v45  ;;  %2649 = vmatpush.bf16.msrb.mxu3 %v4675_v12  ;;  %v4527_v45 = vor.u32 %v5405_v32, %v4526_v56  ;;  %v4523_v12 = vor.u32 %v5384_v17, %v4520_v40  ;;  %v5019_v54 = vor.u32 %v5506_v37, %v5016_v46  ;;  %v5528_v56 = vld [vmem:[#allocation2 + $0x4cc] sm:$0xf0]  ;;  %v5469_v46 = vld [vmem:[#allocation2 + $0x2fc] sm:$0xf]  ;;  %v4726_v43 = vld [vmem:[#allocation2 + $0x1c0] sm:$0xf] }
0x1e73   :  { %v4547_v17 = vor.u32 %v5387_v25, %v4544_v27  ;;  %v5039_v40 = vor.u32 %v5529_v28, %v5038_v19  ;;  %v5031_v41 = vor.u32 %v5528_v56, %v5030_v29  ;;  %v5488_v37 = vld [vmem:[#allocation2 + $0x38c] sm:$0xf0]  ;;  %v4894_v27 = vld [vmem:[#allocation2 + $0x308] sm:$0xf]  ;;  %v4886_v56 = vld [vmem:[#allocation2 + $0x300] sm:$0xf] }
0x1e74   :  { %2624 = vmatpush.bf16.msrb.mxu1 %v4507_v62  ;;  %v4855_v62 = vor.u32 %v5486_v57, %v4854_v55  ;;  %v4712_v55 = vld [vmem:[#allocation2 + $0x250] sm:$0xf0]  ;;  %v5429_v57 = vld [vmem:[#allocation2 + $0x1bc] sm:$0xf]  ;;  %v5491_v19 = vld [vmem:[#allocation2 + $0x3a4] sm:$0xf0] }
0x1e75   :  { %2637 = vmatpush.bf16.msra.mxu2 %v4511_v58  ;;  %v5466_v58 = vld [vmem:[#allocation2 + $0x2e4] sm:$0xf] }
0x1e76   :  { %2611 = vmatpush.bf16.msra.mxu0 %v4503_v59  ;;  %2650 = vmatpush.bf16.msrb.mxu3 %v4515_v63  ;;  %v4856_v59 = vld [vmem:[#allocation2 + $0x380] sm:$0xf0] }
0x1e77   :  { %5093 = vmatmul.msk.bf16.vlgmr.msrb.gmra.mxu1 %vm2392_vm0, %v6549_v4  ;;  %v4859_v63 = vor.u32 %v5466_v58, %v4856_v59  ;;  %v4720_v58 = vld [vmem:[#allocation2 + $0x258] sm:$0xf0]  ;;  %v4558_v59 = vld [vmem:[#allocation2 + $0x78] sm:$0xf] }
0x1e78   :  { %2673 = vmatpush.bf16.msra.mxu1 %v5003_v5  ;;  %5094 = vmatmul.msk.bf16.vlgmr.msra.gmra.mxu2 %vm2392_vm0, %v6549_v4  ;;  %v5446_v5 = vld [vmem:[#allocation2 + $0x23c] sm:$0xf0] }
0x1e79   :  { %2686 = vmatpush.bf16.msrb.mxu2 %v5007_v0  ;;  %5092 = vmatmul.msk.bf16.vlgmr.msra.gmra.mxu0 %vm2392_vm0, %v6549_v4  ;;  %v4867_v0 = vor.u32 %v5467_v60, %v4864_v61  ;;  %v4695_v15 = vor.u32 %v5446_v5, %v4694_v36  ;;  %v4552_v36 = vld [vmem:[#allocation2 + $0x110] sm:$0xf0]  ;;  %v5389_v5 = vld [vmem:[#allocation2 + $0x7c] sm:$0xf] }
0x1e7a   :  { %2660 = vmatpush.bf16.msrb.mxu0 %v4999_v2  ;;  %2699 = vmatpush.bf16.msra.mxu3 %v5011_v6  ;;  %v4702_v2 = vld [vmem:[#allocation2 + $0x1a8] sm:$0xf]  ;;  %v5426_v6 = vld [vmem:[#allocation2 + $0x1a4] sm:$0xf] }
0x1e7b   :  { %5095 = vmatmul.msk.bf16.vlgmr.msrb.gmra.mxu3 %vm2392_vm0, %v6549_v4  ;;  %v4703_v14 = vor.u32 %v5447_v3, %v4702_v2  ;;  %v4723_v2 = vor.u32 %v5429_v57, %v4720_v58  ;;  %v5388_v3 = vld [vmem:[#allocation2 + $0x74] sm:$0xf]  ;;  %v5533_v57 = vld [vmem:[#allocation2 + $0x4f4] sm:$0xf0]  ;;  %v5062_v58 = vld [vmem:[#allocation2 + $0x450] sm:$0xf] }
0x1e7c   :  { %2674 = vmatpush.bf16.msra.mxu1 %v4843_v18  ;;  %v5406_v18 = vld [vmem:[#allocation2 + $0xfc] sm:$0xf0] }
0x1e7d   :  { %2687 = vmatpush.bf16.msrb.mxu2 %v4847_v10  ;;  %v5407_v10 = vld [vmem:[#allocation2 + $0x104] sm:$0xf0] }
0x1e7e   :  { %2661 = vmatpush.bf16.msrb.mxu0 %v4839_v16  ;;  %2700 = vmatpush.bf16.msra.mxu3 %v4851_v20  ;;  %v4534_v16 = vld [vmem:[#allocation2 + $0x60] sm:$0xf]  ;;  %v4699_v20 = vor.u32 %v5426_v6, %v4696_v7  ;;  %v4560_v6 = vld [vmem:[#allocation2 + $0x118] sm:$0xf0]  ;;  %v5054_v7 = vld [vmem:[#allocation2 + $0x448] sm:$0xf] }
0x1e7f   :  { %v4535_v32 = vor.u32 %v5406_v18, %v4534_v16  ;;  %v5048_v16 = vld [vmem:[#allocation2 + $0x4e0] sm:$0xf0]  ;;  %v5511_v18 = vld [vmem:[#allocation2 + $0x44c] sm:$0xf] }
0x1e80   :  { %2675 = vmatpush.bf16.msra.mxu1 %v4683_v9  ;;  %v5040_v9 = vld [vmem:[#allocation2 + $0x4d8] sm:$0xf0] }
0x1e81   :  { %2688 = vmatpush.bf16.msrb.mxu2 %v4687_v23  ;;  %v5508_v23 = vld [vmem:[#allocation2 + $0x434] sm:$0xf]  ;;  %v5043_v34 = vor.u32 %v5509_v33, %v5040_v9  ;;  %v4896_v33 = vld [vmem:[#allocation2 + $0x3a8] sm:$0xf0]  ;;  %v4895_v9 = vor.u32 %v5491_v19, %v4894_v27  ;;  %v5453_v27 = vld [vmem:[#allocation2 + $0x274] sm:$0xf0] }
0x1e82   :  { %2662 = vmatpush.bf16.msrb.mxu0 %v4679_v31  ;;  %2701 = vmatpush.bf16.msra.mxu3 %v4691_v26  ;;  %v4543_v31 = vor.u32 %v5407_v10, %v4542_v13  ;;  %v4539_v26 = vor.u32 %v5386_v22, %v4536_v24  ;;  %v5035_v44 = vor.u32 %v5508_v23, %v5032_v39  ;;  %v5530_v13 = vld [vmem:[#allocation2 + $0x4dc] sm:$0xf0]  ;;  %v5471_v39 = vld [vmem:[#allocation2 + $0x30c] sm:$0xf]  ;;  %v4742_v19 = vld [vmem:[#allocation2 + $0x1d0] sm:$0xf] }
0x1e83   :  { %v4563_v22 = vor.u32 %v5389_v5, %v4560_v6  ;;  %v5055_v24 = vor.u32 %v5531_v8, %v5054_v7  ;;  %v5047_v25 = vor.u32 %v5530_v13, %v5046_v11  ;;  %v5490_v23 = vld [vmem:[#allocation2 + $0x39c] sm:$0xf0]  ;;  %v4910_v6 = vld [vmem:[#allocation2 + $0x318] sm:$0xf]  ;;  %v4902_v13 = vld [vmem:[#allocation2 + $0x310] sm:$0xf] }
0x1e84   :  { %2676 = vmatpush.bf16.msra.mxu1 %v4523_v12  ;;  %v4871_v12 = vor.u32 %v5488_v37, %v4870_v35  ;;  %v4728_v35 = vld [vmem:[#allocation2 + $0x260] sm:$0xf0]  ;;  %v5431_v37 = vld [vmem:[#allocation2 + $0x1cc] sm:$0xf]  ;;  %v5493_v7 = vld [vmem:[#allocation2 + $0x3b4] sm:$0xf0] }
0x1e85   :  { %2689 = vmatpush.bf16.msrb.mxu2 %v4527_v45  ;;  %v5468_v45 = vld [vmem:[#allocation2 + $0x2f4] sm:$0xf] }
0x1e86   :  { %2663 = vmatpush.bf16.msrb.mxu0 %v4519_v38  ;;  %2702 = vmatpush.bf16.msra.mxu3 %v4531_v49  ;;  %v4872_v38 = vld [vmem:[#allocation2 + $0x390] sm:$0xf0] }
0x1e87   :  { %5097 = vmatmul.msk.bf16.vlgmr.msra.gmra.mxu1 %vm2392_vm0, %v6549_v4  ;;  %v4875_v49 = vor.u32 %v5468_v45, %v4872_v38  ;;  %v4736_v45 = vld [vmem:[#allocation2 + $0x268] sm:$0xf0]  ;;  %v4574_v38 = vld [vmem:[#allocation2 + $0x88] sm:$0xf] }
0x1e88   :  { %2725 = vmatpush.bf16.msrb.mxu1 %v5019_v54  ;;  %5098 = vmatmul.msk.bf16.vlgmr.msrb.gmra.mxu2 %vm2392_vm0, %v6549_v4  ;;  %v5448_v54 = vld [vmem:[#allocation2 + $0x24c] sm:$0xf0] }
0x1e89   :  { %2738 = vmatpush.bf16.msra.mxu2 %v5023_v50  ;;  %5096 = vmatmul.msk.bf16.vlgmr.msrb.gmra.mxu0 %vm2392_vm0, %v6549_v4  ;;  %v4883_v50 = vor.u32 %v5469_v46, %v4880_v47  ;;  %v4711_v61 = vor.u32 %v5448_v54, %v4710_v53  ;;  %v4568_v53 = vld [vmem:[#allocation2 + $0x120] sm:$0xf0]  ;;  %v5391_v54 = vld [vmem:[#allocation2 + $0x8c] sm:$0xf] }
0x1e8a   :  { %2712 = vmatpush.bf16.msra.mxu0 %v5015_v51  ;;  %2751 = vmatpush.bf16.msrb.mxu3 %v5027_v30  ;;  %v4718_v51 = vld [vmem:[#allocation2 + $0x1b8] sm:$0xf]  ;;  %v5428_v30 = vld [vmem:[#allocation2 + $0x1b4] sm:$0xf] }
0x1e8b   :  { %5099 = vmatmul.msk.bf16.vlgmr.msra.gmra.mxu3 %vm2392_vm0, %v6549_v4  ;;  %v4719_v60 = vor.u32 %v5449_v52, %v4718_v51  ;;  %v4739_v51 = vor.u32 %v5431_v37, %v4736_v45  ;;  %v5390_v52 = vld [vmem:[#allocation2 + $0x84] sm:$0xf]  ;;  %v4592_v37 = vld [vmem:[#allocation2 + $0x138] sm:$0xf0] }
0x1e8c   :  { %2726 = vmatpush.bf16.msrb.mxu1 %v4859_v63  ;;  %v5408_v63 = vld [vmem:[#allocation2 + $0x10c] sm:$0xf0] }
0x1e8d   :  { %2739 = vmatpush.bf16.msra.mxu2 %v4863_v1  ;;  %v5409_v1 = vld [vmem:[#allocation2 + $0x114] sm:$0xf0] }
0x1e8e   :  { %2713 = vmatpush.bf16.msra.mxu0 %v4855_v62  ;;  %2752 = vmatpush.bf16.msrb.mxu3 %v4867_v0  ;;  %v4550_v62 = vld [vmem:[#allocation2 + $0x70] sm:$0xf]  ;;  %v4715_v0 = vor.u32 %v5428_v30, %v4712_v55  ;;  %v4576_v30 = vld [vmem:[#allocation2 + $0x128] sm:$0xf0]  ;;  %v5070_v55 = vld [vmem:[#allocation2 + $0x458] sm:$0xf] }
0x1e8f   :  { %v4551_v10 = vor.u32 %v5408_v63, %v4550_v62  ;;  %v5064_v62 = vld [vmem:[#allocation2 + $0x4f0] sm:$0xf0]  ;;  %v5513_v63 = vld [vmem:[#allocation2 + $0x45c] sm:$0xf] }
0x1e90   :  { %2727 = vmatpush.bf16.msrb.mxu1 %v4699_v20  ;;  %v5056_v20 = vld [vmem:[#allocation2 + $0x4e8] sm:$0xf0] }
0x1e91   :  { %2740 = vmatpush.bf16.msra.mxu2 %v4703_v14  ;;  %v5510_v14 = vld [vmem:[#allocation2 + $0x444] sm:$0xf]  ;;  %v5059_v29 = vor.u32 %v5511_v18, %v5056_v20  ;;  %v4912_v18 = vld [vmem:[#allocation2 + $0x3b8] sm:$0xf0]  ;;  %v4911_v20 = vor.u32 %v5493_v7, %v4910_v6  ;;  %v6662_v7 = vld [vmem:[%s7212_s9 + $0x8] sm:$0xff] }
0x1e92   :  { %2714 = vmatpush.bf16.msra.mxu0 %v4695_v15  ;;  %2753 = vmatpush.bf16.msrb.mxu3 %v4707_v21  ;;  %v4559_v15 = vor.u32 %v5409_v1, %v4558_v59  ;;  %v4555_v21 = vor.u32 %v5388_v3, %v4552_v36  ;;  %v5051_v28 = vor.u32 %v5510_v14, %v5048_v16  ;;  %v5532_v59 = vld [vmem:[#allocation2 + $0x4ec] sm:$0xf0]  ;;  %v5473_v16 = vld [vmem:[#allocation2 + $0x31c] sm:$0xf] }
0x1e93   :  { %v4579_v3 = vor.u32 %v5391_v54, %v4576_v30  ;;  %v5071_v36 = vor.u32 %v5533_v57, %v5070_v55  ;;  %v5063_v5 = vor.u32 %v5532_v59, %v5062_v58  ;;  %v5492_v14 = vld [vmem:[#allocation2 + $0x3ac] sm:$0xf0]  ;;  %v6633_v55 = vld [vmem:[%s7212_s9] sm:$0xff] }
0x1e94   :  { %2728 = vmatpush.bf16.msrb.mxu1 %v4539_v26  ;;  %v4887_v26 = vor.u32 %v5490_v23, %v4886_v56  ;;  %v4744_v23 = vld [vmem:[#allocation2 + $0x270] sm:$0xf0]  ;;  %v3096_v58 = vperm.slane %v6633_v55, 0 }
0x1e95   :  { %2741 = vmatpush.bf16.msra.mxu2 %v4543_v31  ;;  %v5470_v31 = vld [vmem:[#allocation2 + $0x304] sm:$0xf] }
0x1e96   :  { %2715 = vmatpush.bf16.msra.mxu0 %v4535_v32  ;;  %2754 = vmatpush.bf16.msrb.mxu3 %v4547_v17  ;;  %v4888_v32 = vld [vmem:[#allocation2 + $0x3a0] sm:$0xf0] }
0x1e97   :  { %5101 = vmatmul.msk.bf16.vlgmr.msrb.gmra.mxu1 %vm2392_vm0, %v6549_v4  ;;  %v4891_v17 = vor.u32 %v5470_v31, %v4888_v32  ;;  %v5433_v31 = vld [vmem:[#allocation2 + $0x1dc] sm:$0xf] }
0x1e98   :  { %2777 = vmatpush.bf16.msra.mxu1 %v5035_v44  ;;  %5102 = vmatmul.msk.bf16.vlgmr.msra.gmra.mxu2 %vm2392_vm0, %v6549_v4  ;;  %v5450_v44 = vld [vmem:[#allocation2 + $0x25c] sm:$0xf0]  ;;  %v4752_v32 = vld [vmem:[#allocation2 + $0x278] sm:$0xf0] }
0x1e99   :  { %2790 = vmatpush.bf16.msrb.mxu2 %v5039_v40  ;;  %5100 = vmatmul.msk.bf16.vlgmr.msra.gmra.mxu0 %vm2392_vm0, %v6549_v4  ;;  %v4899_v40 = vor.u32 %v5471_v39, %v4896_v33  ;;  %v4727_v47 = vor.u32 %v5450_v44, %v4726_v43  ;;  %v5412_v43 = vld [vmem:[#allocation2 + $0x12c] sm:$0xf0]  ;;  %v5392_v44 = vld [vmem:[#allocation2 + $0x94] sm:$0xf] }
0x1e9a   :  { %2764 = vmatpush.bf16.msrb.mxu0 %v5031_v41  ;;  %2803 = vmatpush.bf16.msra.mxu3 %v5043_v34  ;;  %v4734_v41 = vld [vmem:[#allocation2 + $0x1c8] sm:$0xf]  ;;  %v5430_v34 = vld [vmem:[#allocation2 + $0x1c4] sm:$0xf] }
0x1e9b   :  { %5103 = vmatmul.msk.bf16.vlgmr.msrb.gmra.mxu3 %vm2392_vm0, %v6549_v4  ;;  %v4735_v46 = vor.u32 %v5451_v42, %v4734_v41  ;;  %v4755_v41 = vor.u32 %v5433_v31, %v4752_v32  ;;  %v4582_v42 = vld [vmem:[#allocation2 + $0x90] sm:$0xf] }
0x1e9c   :  { %2778 = vmatpush.bf16.msra.mxu1 %v4875_v49  ;;  %v5410_v49 = vld [vmem:[#allocation2 + $0x11c] sm:$0xf0] }
0x1e9d   :  { %2791 = vmatpush.bf16.msrb.mxu2 %v4879_v48  ;;  %v5411_v48 = vld [vmem:[#allocation2 + $0x124] sm:$0xf0] }
0x1e9e   :  { %2765 = vmatpush.bf16.msrb.mxu0 %v4871_v12  ;;  %2804 = vmatpush.bf16.msra.mxu3 %v4883_v50  ;;  %v4566_v12 = vld [vmem:[#allocation2 + $0x80] sm:$0xf]  ;;  %v4731_v50 = vor.u32 %v5430_v34, %v4728_v35  ;;  %v4584_v34 = vld [vmem:[#allocation2 + $0x130] sm:$0xf0]  ;;  %v5393_v35 = vld [vmem:[#allocation2 + $0x9c] sm:$0xf] }
0x1e9f   :  { %v4567_v1 = vor.u32 %v5410_v49, %v4566_v12 }
0x1ea0   :  { %2779 = vmatpush.bf16.msra.mxu1 %v4715_v0  ;;  %v5072_v0 = vld [vmem:[#allocation2 + $0x4f8] sm:$0xf0] }
0x1ea1   :  { %2792 = vmatpush.bf16.msrb.mxu2 %v4719_v60  ;;  %v5512_v60 = vld [vmem:[#allocation2 + $0x454] sm:$0xf]  ;;  %v5075_v11 = vor.u32 %v5513_v63, %v5072_v0 }
0x1ea2   :  { %2766 = vmatpush.bf16.msrb.mxu0 %v4711_v61  ;;  %2805 = vmatpush.bf16.msra.mxu3 %v4723_v2  ;;  %v4575_v61 = vor.u32 %v5411_v48, %v4574_v38  ;;  %v4571_v2 = vor.u32 %v5390_v52, %v4568_v53  ;;  %v5067_v8 = vor.u32 %v5512_v60, %v5064_v62  ;;  %v6626_v53 = vld [vmem:[%s7211_s8] sm:$0xff] }
0x1ea3   :  { %v4583_v38 = vor.u32 %v5412_v43, %v4582_v42  ;;  %v4595_v48 = vor.u32 %v5393_v35, %v4592_v37  ;;  %v2926_v57 = vperm.slane %v6626_v53, 0  ;;  %v2927_v59 = vperm.slane %v6626_v53, 1 }
0x1ea4   :  { %2780 = vmatpush.bf16.msra.mxu1 %v4555_v21  ;;  %v4903_v21 = vor.u32 %v5492_v14, %v4902_v13  ;;  %v2928_v0 = vperm.slane %v6626_v53, 2  ;;  %v2929_v6 = vperm.slane %v6626_v53, 3  ;;  %v3107_v43 = vperm.slane %v6662_v7, 3 }
0x1ea5   :  { %2793 = vmatpush.bf16.msrb.mxu2 %v4559_v15  ;;  %v5472_v15 = vld [vmem:[#allocation2 + $0x314] sm:$0xf]  ;;  %v2931_v35 = vperm.slane %v6626_v53, 5 }
0x1ea6   :  { %2767 = vmatpush.bf16.msrb.mxu0 %v4551_v10  ;;  %2806 = vmatpush.bf16.msra.mxu3 %v4563_v22  ;;  %v4904_v10 = vld [vmem:[#allocation2 + $0x3b0] sm:$0xf0] }
0x1ea7   :  { %5105 = vmatmul.msk.bf16.vlgmr.msra.gmra.mxu1 %vm2392_vm0, %v6549_v4  ;;  %v4907_v22 = vor.u32 %v5472_v15, %v4904_v10  ;;  %v3104_v15 = vperm.slane %v6662_v7, 0 }
0x1ea8   :  { %2829 = vmatpush.bf16.msrb.mxu1 %v5051_v28  ;;  %5106 = vmatmul.msk.bf16.vlgmr.msrb.gmra.mxu2 %vm2392_vm0, %v6549_v4  ;;  %v5452_v28 = vld [vmem:[#allocation2 + $0x26c] sm:$0xf0] }
0x1ea9   :  { %2842 = vmatpush.bf16.msra.mxu2 %v5055_v24  ;;  %5104 = vmatmul.msk.bf16.vlgmr.msrb.gmra.mxu0 %vm2392_vm0, %v6549_v4  ;;  %v4915_v24 = vor.u32 %v5473_v16, %v4912_v18  ;;  %v3105_v18 = vperm.slane %v6662_v7, 1 }
0x1eaa   :  { %2816 = vmatpush.bf16.msra.mxu0 %v5047_v25  ;;  %2855 = vmatpush.bf16.msrb.mxu3 %v5059_v29  ;;  %v4750_v25 = vld [vmem:[#allocation2 + $0x1d8] sm:$0xf]  ;;  %v5432_v29 = vld [vmem:[#allocation2 + $0x1d4] sm:$0xf] }
0x1eab   :  { %5107 = vmatmul.msk.bf16.vlgmr.msra.gmra.mxu3 %vm2392_vm0, %v6549_v4  ;;  %v4751_v33 = vor.u32 %v5453_v27, %v4750_v25  ;;  %v3100_v25 = vperm.slane %v6633_v55, 4 }
0x1eac   :  { %2830 = vmatpush.bf16.msrb.mxu1 %v4891_v17  ;;  %v5413_v17 = vld [vmem:[#allocation2 + $0x134] sm:$0xf0] }
0x1ead   :  { %2843 = vmatpush.bf16.msra.mxu2 %v4895_v9  ;;  %v4743_v9 = vor.u32 %v5452_v28, %v4742_v19 }
0x1eae   :  { %2817 = vmatpush.bf16.msra.mxu0 %v4887_v26  ;;  %2856 = vmatpush.bf16.msrb.mxu3 %v4899_v40  ;;  %v4590_v26 = vld [vmem:[#allocation2 + $0x98] sm:$0xf]  ;;  %v4747_v40 = vor.u32 %v5432_v29, %v4744_v23 }
0x1eaf   :  { %v4591_v45 = vor.u32 %v5413_v17, %v4590_v26  ;;  %v3106_v17 = vperm.slane %v6662_v7, 2 }
0x1eb0   :  { %2831 = vmatpush.bf16.msrb.mxu1 %v4731_v50 }
0x1eb1   :  { %2844 = vmatpush.bf16.msra.mxu2 %v4735_v46 }
0x1eb2   :  { %2818 = vmatpush.bf16.msra.mxu0 %v4727_v47  ;;  %2857 = vmatpush.bf16.msrb.mxu3 %v4739_v51  ;;  %v4587_v47 = vor.u32 %v5392_v44, %v4584_v34 }
0x1eb4   :  { %2832 = vmatpush.bf16.msrb.mxu1 %v4571_v2  ;;  %v2405_v56 = vpop.f32.mrf.mxu0  ;;  %v2418_v39 = vpop.f32.mrf.mxu1 }
0x1eb5   :  { %2845 = vmatpush.bf16.msra.mxu2 %v4575_v61  ;;  %v3006_v60 = vadd.f32 %v2926_v57, %v2405_v56  ;;  %v3097_v61 = vperm.slane %v6633_v55, 1  ;;  %v3176_v63 = vadd.f32 %v3096_v58, %v2405_v56  ;;  %v3102_v57 = vperm.slane %v6633_v55, 6 }
0x1eb6   :  { %2819 = vmatpush.bf16.msra.mxu0 %v4567_v1  ;;  %2858 = vmatpush.bf16.msrb.mxu3 %v4579_v3 }
0x1eb7   :  { %5109 = vmatmul.msk.bf16.vlgmr.msrb.gmra.mxu1 %vm2392_vm0, %v6549_v4  ;;  %5733 = vtanh.f32 %v3006_v60 }
0x1eb8   :  { %2881 = vmatpush.bf16.msra.mxu1 %v5067_v8  ;;  %5110 = vmatmul.msk.bf16.vlgmr.msra.gmra.mxu2 %vm2392_vm0, %v6549_v4  ;;  %v3177_v8 = vadd.f32 %v3097_v61, %v2418_v39  ;;  %5735 = vtanh.f32 %v3176_v63 }
0x1eb9   :  { %2894 = vmatpush.bf16.msrb.mxu2 %v5071_v36  ;;  %5108 = vmatmul.msk.bf16.vlgmr.msra.gmra.mxu0 %vm2392_vm0, %v6549_v4  ;;  %v3098_v36 = vperm.slane %v6633_v55, 2 }
0x1eba   :  { %2868 = vmatpush.bf16.msrb.mxu0 %v5063_v5  ;;  %2907 = vmatpush.bf16.msra.mxu3 %v5075_v11  ;;  %v3007_v5 = vadd.f32 %v2927_v59, %v2418_v39 }
0x1ebb   :  { %5111 = vmatmul.msk.bf16.vlgmr.msrb.gmra.mxu3 %vm2392_vm0, %v6549_v4  ;;  %v2431_v46 = vpop.f32.mrf.mxu2 }
0x1ebc   :  { %2882 = vmatpush.bf16.msra.mxu1 %v4907_v22  ;;  %v2444_v12 = vpop.f32.mrf.mxu3  ;;  %v2407_v49 = vpop.f32.mrf.mxu0  ;;  %v3008_v11 = vadd.f32 %v2928_v0, %v2431_v46  ;;  %v3178_v13 = vadd.f32 %v3098_v36, %v2431_v46  ;;  %5737 = vtanh.f32 %v3007_v5 }
0x1ebd   :  { %2895 = vmatpush.bf16.msrb.mxu2 %v4911_v20  ;;  %v2420_v50 = vpop.f32.mrf.mxu1  ;;  %v3009_v16 = vadd.f32 %v2929_v6, %v2444_v12  ;;  %5739 = vtanh.f32 %v3177_v8  ;;  %v3099_v20 = vperm.slane %v6633_v55, 3  ;;  %v5734_v28 = vpop.eup %5733 }
0x1ebe   :  { %2869 = vmatpush.bf16.msrb.mxu0 %v4903_v21  ;;  %2908 = vmatpush.bf16.msra.mxu3 %v4915_v24  ;;  %5741 = vtanh.f32 %v3008_v11  ;;  %v2930_v24 = vperm.slane %v6626_v53, 4  ;;  %v5736_v31 = vpop.eup %5735  ;;  %v3108_v11 = vperm.slane %v6662_v7, 4 }
0x1ebf   :  { %5743 = vtanh.f32 %v3178_v13  ;;  %v3179_v39 = vadd.f32 %v3099_v20, %v2444_v12  ;;  %v3296_v34 = vrot.slane %v5736_v31, 2  ;;  %v3109_v20 = vperm.slane %v6662_v7, 5 }
0x1ec0   :  { %2883 = vmatpush.bf16.msra.mxu1 %v4747_v40  ;;  %5745 = vtanh.f32 %v3009_v16 }
0x1ec1   :  { %2896 = vmatpush.bf16.msrb.mxu2 %v4751_v33  ;;  %v3376_v60 = vmul.f32 %v5734_v28, %v3296_v34 }
0x1ec2   :  { %2870 = vmatpush.bf16.msrb.mxu0 %v4743_v9  ;;  %2909 = vmatpush.bf16.msra.mxu3 %v4755_v41  ;;  %v5738_v9 = vpop.eup %5737 }
0x1ec3   :  { %v2433_v51 = vpop.f32.mrf.mxu2  ;;  %v5740_v41 = vpop.eup %5739 }
0x1ec4   :  { %2884 = vmatpush.bf16.msra.mxu1 %v4587_v47  ;;  %v2446_v52 = vpop.f32.mrf.mxu3  ;;  %v5742_v44 = vpop.eup %5741  ;;  %v3297_v61 = vrot.slane %v5740_v41, 2 }
0x1ec5   :  { %2897 = vmatpush.bf16.msrb.mxu2 %v4591_v45  ;;  %v6628_v30 = vpop.f32.mrf.mxu1  ;;  %v5744_v37 = vpop.eup %5743  ;;  %v3101_v45 = vperm.slane %v6633_v55, 5 }
0x1ec6   :  { %2871 = vmatpush.bf16.msrb.mxu0 %v4583_v38  ;;  %2910 = vmatpush.bf16.msra.mxu3 %v4595_v48  ;;  %v2457_v54 = vpop.f32.mrf.mxu0  ;;  %v2932_v38 = vperm.slane %v6626_v53, 6  ;;  %v6678_v48 = vpop.eup %5745  ;;  %v3011_v63 = vadd.f32 %v2931_v35, %v6628_v30 }
0x1ec7   :  { %5113 = vmatmul.msk.bf16.vlgmr.msra.gmra.mxu1 %vm2392_vm0, %v6549_v4  ;;  %v3010_v26 = vadd.f32 %v2930_v24, %v2457_v54  ;;  %v3180_v42 = vadd.f32 %v3100_v25, %v2457_v54 }
0x1ec8   :  { %5114 = vmatmul.msk.bf16.vlgmr.msrb.gmra.mxu2 %vm2392_vm0, %v6549_v4 }
0x1ec9   :  { %5112 = vmatmul.msk.bf16.vlgmr.msrb.gmra.mxu0 %vm2392_vm0, %v6549_v4 }
0x1ecb   :  { %5115 = vmatmul.msk.bf16.vlgmr.msra.gmra.mxu3 %vm2392_vm0, %v6549_v4  ;;  %v6647_v1 = vpop.f32.mrf.mxu2  ;;  %v6657_v4 = vld [vmem:[%s7211_s8 + $0x8] sm:$0xff] }
0x1ecc   :  { %v2934_v14 = vperm.slane %v6657_v4, 0  ;;  %v2935_v10 = vperm.slane %v6657_v4, 1  ;;  %v2936_v33 = vperm.slane %v6657_v4, 2  ;;  %v2937_v40 = vperm.slane %v6657_v4, 3 }
0x1ecd   :  { %v2472_v3 = vpop.f32.mrf.mxu1  ;;  %v3012_v6 = vadd.f32 %v2932_v38, %v6647_v1  ;;  %v2938_v8 = vperm.slane %v6657_v4, 4 }
0x1ece   :  { %v6649_v62 = vpop.f32.mrf.mxu3  ;;  %v2459_v2 = vpop.f32.mrf.mxu0  ;;  %v3181_v3 = vadd.f32 %v3101_v45, %v6628_v30  ;;  %v3182_v30 = vadd.f32 %v3102_v57, %v6647_v1 }
0x1ecf   :  { %v3298_v2 = vrot.slane %v5744_v37, 2  ;;  %v2941_v37 = vperm.slane %v6657_v4, 7 }
0x1ed3   :  { %v2485_v21 = vpop.f32.mrf.mxu2 }
0x1ed5   :  { %v2522_v19 = vpop.f32.mrf.mxu1 }
0x1ed6   :  { %v2498_v22 = vpop.f32.mrf.mxu3  ;;  %v2509_v27 = vpop.f32.mrf.mxu0  ;;  %v3015_v23 = vadd.f32 %v2935_v10, %v2522_v19  ;;  %v3185_v32 = vadd.f32 %v3105_v18, %v2522_v19  ;;  %v2939_v10 = vperm.slane %v6657_v4, 5  ;;  %v2933_v18 = vperm.slane %v6626_v53, 7 }
0x1ed7   :  { %v3014_v29 = vadd.f32 %v2934_v14, %v2509_v27  ;;  %v3184_v56 = vadd.f32 %v3104_v15, %v2509_v27  ;;  %v3377_v22 = vmul.f32 %v5738_v9, %v3297_v61 }
0x1ed9   :  { %5747 = vtanh.f32 %v3014_v29  ;;  %v3378_v29 = vmul.f32 %v5742_v44, %v3298_v2 }
0x1eda   :  { %5749 = vtanh.f32 %v3184_v56  ;;  %v3103_v56 = vperm.slane %v6633_v55, 7  ;;  %v3110_v55 = vperm.slane %v6662_v7, 6 }
0x1edb   :  { %5751 = vtanh.f32 %v3015_v23  ;;  %v2535_v46 = vpop.f32.mrf.mxu2 }
0x1edc   :  { %5753 = vtanh.f32 %v3185_v32  ;;  %v3016_v12 = vadd.f32 %v2936_v33, %v2535_v46  ;;  %v3186_v49 = vadd.f32 %v3106_v17, %v2535_v46  ;;  %v3183_v38 = vadd.f32 %v3103_v56, %v6649_v62 }
0x1edd   :  { %5755 = vtanh.f32 %v3179_v39  ;;  %v2524_v52 = vpop.f32.mrf.mxu1  ;;  %v3111_v46 = vperm.slane %v6662_v7, 7 }
0x1ede   :  { %v2548_v47 = vpop.f32.mrf.mxu3  ;;  %5757 = vtanh.f32 %v3010_v26  ;;  %v2511_v51 = vpop.f32.mrf.mxu0 }
0x1edf   :  { %v3017_v50 = vadd.f32 %v2937_v40, %v2548_v47  ;;  %v5748_v54 = vpop.eup %5747  ;;  %5759 = vtanh.f32 %v3180_v42  ;;  %v3187_v58 = vadd.f32 %v3107_v43, %v2548_v47  ;;  %v3013_v42 = vadd.f32 %v2933_v18, %v6649_v62 }
0x1ee0   :  { %v5750_v59 = vpop.eup %5749  ;;  %5761 = vtanh.f32 %v3016_v12  ;;  %v2940_v43 = vperm.slane %v6657_v4, 6 }
0x1ee1   :  { %v5752_v0 = vpop.eup %5751  ;;  %v3304_v36 = vrot.slane %v5750_v59, 2  ;;  %5763 = vtanh.f32 %v3186_v49 }
0x1ee2   :  { %v5754_v5 = vpop.eup %5753  ;;  %5765 = vtanh.f32 %v3017_v50 }
0x1ee3   :  { %v5756_v13 = vpop.eup %5755  ;;  %v3384_v14 = vmul.f32 %v5748_v54, %v3304_v36  ;;  %v3305_v15 = vrot.slane %v5754_v5, 2  ;;  %5767 = vtanh.f32 %v3187_v58  ;;  %v2537_v27 = vpop.f32.mrf.mxu2 }
0x1ee4   :  { %v6687_v16 = vpop.eup %5757  ;;  %5769 = vtanh.f32 %v3011_v63  ;;  %v3299_v26 = vrot.slane %v5756_v13, 2  ;;  %v6714_v63 = vld [vmem:[%s7211_s8 + $0x10] sm:$0xff] }
0x1ee5   :  { %v6692_v21 = vpop.eup %5759  ;;  %5771 = vtanh.f32 %v3181_v3  ;;  %v6694_v24 = vadd.f32 %v3384_v14, %v3376_v60  ;;  %v3385_v25 = vmul.f32 %v5752_v0, %v3305_v15  ;;  %v2574_v1 = vpop.f32.mrf.mxu1  ;;  %v6719_v0 = vld [vmem:[%s7212_s9 + $0x10] sm:$0xff] }
0x1ee6   :  { %v2550_v19 = vpop.f32.mrf.mxu3  ;;  %v5762_v28 = vpop.eup %5761  ;;  %5773 = vtanh.f32 %v3012_v6  ;;  %v3019_v33 = vadd.f32 %v2939_v10, %v2574_v1  ;;  %v3189_v40 = vadd.f32 %v3109_v20, %v2574_v1  ;;  %v3379_v12 = vmul.f32 %v6678_v48, %v3299_v26 }
0x1ee7   :  { %v2561_v23 = vpop.f32.mrf.mxu0  ;;  %v5764_v31 = vpop.eup %5763  ;;  %v6697_v53 = vadd.f32 %v3385_v25, %v3377_v22  ;;  %5775 = vtanh.f32 %v3182_v30  ;;  %v3300_v51 = vrot.slane %v6692_v21, 2  ;;  %v3112_v13 = vperm.slane %v6719_v0, 0 }
0x1ee8   :  { %v3018_v32 = vadd.f32 %v2938_v8, %v2561_v23  ;;  %v3188_v39 = vadd.f32 %v3108_v11, %v2561_v23  ;;  %v5766_v9 = vpop.eup %5765  ;;  %v3306_v17 = vrot.slane %v5764_v31, 2  ;;  %v2942_v11 = vperm.slane %v6714_v63, 0 }
0x1ee9   :  { %v5768_v41 = vpop.eup %5767  ;;  %v3380_v8 = vmul.f32 %v6687_v16, %v3300_v51  ;;  %v2943_v30 = vperm.slane %v6714_v63, 1  ;;  %v3113_v18 = vperm.slane %v6719_v0, 1 }
0x1eea   :  { %5777 = vtanh.f32 %v3018_v32  ;;  %v5770_v44 = vpop.eup %5769  ;;  %v3386_v34 = vmul.f32 %v5762_v28, %v3306_v17  ;;  %v3307_v35 = vrot.slane %v5768_v41, 2 }
0x1eeb   :  { %5779 = vtanh.f32 %v3188_v39  ;;  %v5772_v45 = vpop.eup %5771  ;;  %v2587_v52 = vpop.f32.mrf.mxu2 }
0x1eec   :  { %5781 = vtanh.f32 %v3019_v33  ;;  %v5774_v47 = vpop.eup %5773  ;;  %v6706_v49 = vadd.f32 %v3386_v34, %v3378_v29  ;;  %v3387_v50 = vmul.f32 %v5766_v9, %v3307_v35  ;;  %v3020_v58 = vadd.f32 %v2940_v43, %v2587_v52 }
0x1eed   :  { %5783 = vtanh.f32 %v3189_v40  ;;  %v5776_v57 = vpop.eup %5775  ;;  %v3190_v62 = vadd.f32 %v3110_v55, %v2587_v52  ;;  %v2576_v7 = vpop.f32.mrf.mxu1  ;;  %v3301_v36 = vrot.slane %v5772_v45, 2  ;;  %v3114_v43 = vperm.slane %v6719_v0, 2 }
0x1eee   :  { %5785 = vtanh.f32 %v3013_v42  ;;  %v2600_v54 = vpop.f32.mrf.mxu3  ;;  %v6709_v4 = vadd.f32 %v3387_v50, %v3379_v12  ;;  %v3302_v22 = vrot.slane %v5776_v57, 2  ;;  %v2944_v42 = vperm.slane %v6714_v63, 2 }
0x1eef   :  { %v3021_v59 = vadd.f32 %v2941_v37, %v2600_v54  ;;  %v2563_v60 = vpop.f32.mrf.mxu0  ;;  %5787 = vtanh.f32 %v3183_v38  ;;  %v3191_v48 = vadd.f32 %v3111_v46, %v2600_v54  ;;  %v3381_v21 = vmul.f32 %v5770_v44, %v3301_v36 }
0x1ef0   :  { %v5778_v61 = vpop.eup %5777  ;;  %5789 = vtanh.f32 %v3020_v58  ;;  %v3382_v41 = vmul.f32 %v5774_v47, %v3302_v22  ;;  %v2945_v34 = vperm.slane %v6714_v63, 3  ;;  %v3115_v35 = vperm.slane %v6719_v0, 3 }
0x1ef1   :  { %v5780_v2 = vpop.eup %5779  ;;  %5791 = vtanh.f32 %v3190_v62 }
0x1ef2   :  { %v5782_v3 = vpop.eup %5781  ;;  %v3308_v5 = vrot.slane %v5780_v2, 2  ;;  %5793 = vtanh.f32 %v3021_v59  ;;  %v3116_v2 = vperm.slane %v6719_v0, 4 }
0x1ef3   :  { %v5784_v6 = vpop.eup %5783  ;;  %5795 = vtanh.f32 %v3191_v48  ;;  %v2589_v16 = vpop.f32.mrf.mxu2  ;;  %v2946_v48 = vperm.slane %v6714_v63, 4 }
0x1ef4   :  { %v5786_v14 = vpop.eup %5785  ;;  %v3388_v15 = vmul.f32 %v5778_v61, %v3308_v5  ;;  %v3309_v10 = vrot.slane %v5784_v6, 2  ;;  %v2947_v5 = vperm.slane %v6714_v63, 5  ;;  %v3117_v6 = vperm.slane %v6719_v0, 5 }
0x1ef5   :  { %v5788_v20 = vpop.eup %5787  ;;  %v2626_v56 = vpop.f32.mrf.mxu1 }
0x1ef6   :  { %v6726_v25 = vadd.f32 %v3388_v15, %v3380_v8  ;;  %v3389_v27 = vmul.f32 %v5782_v3, %v3309_v10  ;;  %v2602_v19 = vpop.f32.mrf.mxu3  ;;  %v5790_v28 = vpop.eup %5789  ;;  %v3023_v39 = vadd.f32 %v2943_v30, %v2626_v56  ;;  %v3303_v9 = vrot.slane %v5788_v20, 2 }
0x1ef7   :  { %v2613_v29 = vpop.f32.mrf.mxu0  ;;  %v5792_v23 = vpop.eup %5791  ;;  %v3193_v17 = vadd.f32 %v3113_v18, %v2626_v56  ;;  %v3118_v56 = vperm.slane %v6719_v0, 6 }
0x1ef8   :  { %v6728_v1 = vadd.f32 %v3389_v27, %v3381_v21  ;;  %v3022_v31 = vadd.f32 %v2942_v11, %v2613_v29  ;;  %v3192_v32 = vadd.f32 %v3112_v13, %v2613_v29  ;;  %v5794_v33 = vpop.eup %5793  ;;  %v3310_v26 = vrot.slane %v5792_v23, 2 }
0x1ef9   :  { %v5796_v40 = vpop.eup %5795  ;;  %v3383_v37 = vmul.f32 %v5786_v14, %v3303_v9 }
0x1efa   :  { %5797 = vtanh.f32 %v3022_v31  ;;  %v3390_v55 = vmul.f32 %v5790_v28, %v3310_v26  ;;  %v3311_v44 = vrot.slane %v5796_v40, 2 }
0x1efb   :  { %5799 = vtanh.f32 %v3192_v32  ;;  %v2639_v46 = vpop.f32.mrf.mxu2  ;;  %v2949_v32 = vperm.slane %v6714_v63, 7 }
0x1efc   :  { %5801 = vtanh.f32 %v3023_v39  ;;  %v6734_v45 = vadd.f32 %v3390_v55, %v3382_v41  ;;  %v3391_v38 = vmul.f32 %v5794_v33, %v3311_v44  ;;  %v3024_v50 = vadd.f32 %v2944_v42, %v2639_v46 }
0x1efd   :  { %5803 = vtanh.f32 %v3193_v17  ;;  %v3194_v51 = vadd.f32 %v3114_v43, %v2639_v46  ;;  %v2628_v57 = vpop.f32.mrf.mxu1 }
0x1efe   :  { %v2652_v47 = vpop.f32.mrf.mxu3  ;;  %v6736_v12 = vadd.f32 %v3391_v38, %v3383_v37  ;;  %5805 = vtanh.f32 %v3024_v50 }
0x1eff   :  { %v3025_v52 = vadd.f32 %v2945_v34, %v2652_v47  ;;  %v2615_v54 = vpop.f32.mrf.mxu0  ;;  %v3195_v62 = vadd.f32 %v3115_v35, %v2652_v47  ;;  %5807 = vtanh.f32 %v3194_v51 }
0x1f00   :  { %v5798_v58 = vpop.eup %5797 }
0x1f01   :  { %v5800_v59 = vpop.eup %5799  ;;  %5809 = vtanh.f32 %v3025_v52 }
0x1f02   :  { %v5802_v60 = vpop.eup %5801  ;;  %v3312_v7 = vrot.slane %v5800_v59, 2  ;;  %5811 = vtanh.f32 %v3195_v62 }
0x1f03   :  { %v5804_v61 = vpop.eup %5803  ;;  %v2641_v13 = vpop.f32.mrf.mxu2 }
0x1f04   :  { %v3392_v3 = vmul.f32 %v5798_v58, %v3312_v7  ;;  %v3313_v36 = vrot.slane %v5804_v61, 2  ;;  %v5806_v15 = vpop.eup %5805 }
0x1f05   :  { %v2678_v30 = vpop.f32.mrf.mxu1  ;;  %v5808_v18 = vpop.eup %5807 }
0x1f06   :  { %v6743_v8 = vadd.f32 %v6694_v24, %v3392_v3  ;;  %v3393_v11 = vmul.f32 %v5802_v60, %v3313_v36  ;;  %v2654_v14 = vpop.f32.mrf.mxu3  ;;  %v3027_v27 = vadd.f32 %v2947_v5, %v2678_v30  ;;  %v3314_v19 = vrot.slane %v5808_v18, 2 }
0x1f07   :  { %v2665_v10 = vpop.f32.mrf.mxu0  ;;  %v5810_v16 = vpop.eup %5809  ;;  %v3197_v28 = vadd.f32 %v3117_v6, %v2678_v30  ;;  %v2948_v24 = vperm.slane %v6714_v63, 6 }
0x1f08   :  { %v6746_v20 = vadd.f32 %v6697_v53, %v3393_v11  ;;  %v3026_v21 = vadd.f32 %v2946_v48, %v2665_v10  ;;  %v3196_v22 = vadd.f32 %v3116_v2, %v2665_v10  ;;  %v5812_v29 = vpop.eup %5811  ;;  %v3394_v23 = vmul.f32 %v5806_v15, %v3314_v19 }
0x1f09   :  { %v3315_v31 = vrot.slane %v5812_v29, 2  ;;  %v3119_v53 = vperm.slane %v6719_v0, 7  ;;  %v6761_v0 = vld [vmem:[%s7211_s8 + $0x18] sm:$0xff] }
0x1f0a   :  { %5813 = vtanh.f32 %v3026_v21  ;;  %v6753_v39 = vadd.f32 %v6706_v49, %v3394_v23  ;;  %v6766_v49 = vld [vmem:[%s7212_s9 + $0x18] sm:$0xff]  ;;  %v2950_v38 = vperm.slane %v6761_v0, 0  ;;  %v2951_v51 = vperm.slane %v6761_v0, 1 }
0x1f0b   :  { %5815 = vtanh.f32 %v3196_v22  ;;  %v3395_v33 = vmul.f32 %v5810_v16, %v3315_v31  ;;  %v2691_v9 = vpop.f32.mrf.mxu2  ;;  %v3120_v46 = vperm.slane %v6766_v49, 0  ;;  %v3121_v52 = vperm.slane %v6766_v49, 1 }
0x1f0c   :  { %5817 = vtanh.f32 %v3027_v27  ;;  %v3028_v40 = vadd.f32 %v2948_v24, %v2691_v9  ;;  %v3198_v41 = vadd.f32 %v3118_v56, %v2691_v9  ;;  %v2952_v9 = vperm.slane %v6761_v0, 2 }
0x1f0d   :  { %5819 = vtanh.f32 %v3197_v28  ;;  %v6756_v17 = vadd.f32 %v6709_v4, %v3395_v33  ;;  %v2680_v55 = vpop.f32.mrf.mxu1 }
0x1f0e   :  { %v2704_v26 = vpop.f32.mrf.mxu3  ;;  %5821 = vtanh.f32 %v3028_v40  ;;  %v3123_v55 = vperm.slane %v6766_v49, 3 }
0x1f0f   :  { %v3029_v42 = vadd.f32 %v2949_v32, %v2704_v26  ;;  %v2667_v43 = vpop.f32.mrf.mxu0  ;;  %v3199_v63 = vadd.f32 %v3119_v53, %v2704_v26  ;;  %5823 = vtanh.f32 %v3198_v41  ;;  %v3122_v41 = vperm.slane %v6766_v49, 2 }
0x1f10   :  { %v5814_v44 = vpop.eup %5813  ;;  %v2953_v43 = vperm.slane %v6761_v0, 3 }
0x1f11   :  { %v5816_v34 = vpop.eup %5815  ;;  %5825 = vtanh.f32 %v3029_v42 }
0x1f12   :  { %v5818_v4 = vpop.eup %5817  ;;  %v3316_v35 = vrot.slane %v5816_v34, 2  ;;  %5827 = vtanh.f32 %v3199_v63 }
0x1f13   :  { %v5820_v37 = vpop.eup %5819  ;;  %v2693_v58 = vpop.f32.mrf.mxu2 }
0x1f14   :  { %v3396_v47 = vmul.f32 %v5814_v44, %v3316_v35  ;;  %v3317_v50 = vrot.slane %v5820_v37, 2  ;;  %v5822_v59 = vpop.eup %5821  ;;  %v6803_v44 = vld [vmem:[%s7211_s8 + $0x20] sm:$0xff]  ;;  %v2955_v58 = vperm.slane %v6761_v0, 5 }
0x1f15   :  { %v2730_v7 = vpop.f32.mrf.mxu1  ;;  %v5824_v61 = vpop.eup %5823  ;;  %v2958_v35 = vperm.slane %v6803_v44, 0 }
0x1f16   :  { %v6773_v54 = vadd.f32 %v6726_v25, %v3396_v47  ;;  %v3397_v57 = vmul.f32 %v5818_v4, %v3317_v50  ;;  %v2706_v62 = vpop.f32.mrf.mxu3  ;;  %v3031_v36 = vadd.f32 %v2951_v51, %v2730_v7  ;;  %v3318_v6 = vrot.slane %v5824_v61, 2 }
0x1f17   :  { %v2717_v60 = vpop.f32.mrf.mxu0  ;;  %v5826_v5 = vpop.eup %5825  ;;  %v3201_v11 = vadd.f32 %v3121_v52, %v2730_v7  ;;  %v2954_v50 = vperm.slane %v6761_v0, 4 }
0x1f18   :  { %v6776_v48 = vadd.f32 %v6728_v1, %v3397_v57  ;;  %v3030_v2 = vadd.f32 %v2950_v38, %v2717_v60  ;;  %v3200_v3 = vadd.f32 %v3120_v46, %v2717_v60  ;;  %v5828_v13 = vpop.eup %5827  ;;  %v3398_v25 = vmul.f32 %v5822_v59, %v3318_v6 }
0x1f19   :  { %v3319_v14 = vrot.slane %v5828_v13, 2  ;;  %v2959_v38 = vperm.slane %v6803_v44, 1  ;;  %v3124_v57 = vperm.slane %v6766_v49, 4 }
0x1f1a   :  { %5829 = vtanh.f32 %v3030_v2  ;;  %v6779_v15 = vadd.f32 %v6734_v45, %v3398_v25 }
0x1f1b   :  { %5831 = vtanh.f32 %v3200_v3  ;;  %v3399_v10 = vmul.f32 %v5826_v5, %v3319_v14  ;;  %v2743_v30 = vpop.f32.mrf.mxu2 }
0x1f1c   :  { %5833 = vtanh.f32 %v3031_v36  ;;  %v3032_v63 = vadd.f32 %v2952_v9, %v2743_v30  ;;  %v3202_v34 = vadd.f32 %v3122_v41, %v2743_v30  ;;  %v2960_v36 = vperm.slane %v6803_v44, 2 }
0x1f1d   :  { %5835 = vtanh.f32 %v3201_v11  ;;  %v6782_v18 = vadd.f32 %v6736_v12, %v3399_v10  ;;  %v2732_v22 = vpop.f32.mrf.mxu1  ;;  %v2961_v11 = vperm.slane %v6803_v44, 3  ;;  %v3125_v30 = vperm.slane %v6766_v49, 5 }
0x1f1e   :  { %v2756_v1 = vpop.f32.mrf.mxu3  ;;  %5837 = vtanh.f32 %v3032_v63  ;;  %v3126_v22 = vperm.slane %v6766_v49, 6  ;;  %v2957_v41 = vperm.slane %v6761_v0, 7 }
0x1f1f   :  { %v2719_v21 = vpop.f32.mrf.mxu0  ;;  %v3033_v4 = vadd.f32 %v2953_v43, %v2756_v1  ;;  %v3203_v46 = vadd.f32 %v3123_v55, %v2756_v1  ;;  %5839 = vtanh.f32 %v3202_v34 }
0x1f20   :  { %v5830_v27 = vpop.eup %5829  ;;  %v2956_v21 = vperm.slane %v6761_v0, 6  ;;  %v2962_v0 = vperm.slane %v6803_v44, 4 }
0x1f21   :  { %v5832_v16 = vpop.eup %5831  ;;  %5841 = vtanh.f32 %v3033_v4 }
0x1f22   :  { %v5834_v19 = vpop.eup %5833  ;;  %v3320_v28 = vrot.slane %v5832_v16, 2  ;;  %5843 = vtanh.f32 %v3203_v46 }
0x1f23   :  { %v5836_v29 = vpop.eup %5835  ;;  %v2745_v31 = vpop.f32.mrf.mxu2 }
0x1f24   :  { %v3400_v24 = vmul.f32 %v5830_v27, %v3320_v28  ;;  %v3321_v56 = vrot.slane %v5836_v29, 2  ;;  %v5838_v13 = vpop.eup %5837 }
0x1f25   :  { %v6787_v33 = vpop.f32.mrf.mxu1  ;;  %v5840_v10 = vpop.eup %5839 }
0x1f26   :  { %v6785_v23 = vadd.f32 %v6743_v8, %v3400_v24  ;;  %v3401_v45 = vmul.f32 %v5834_v19, %v3321_v56  ;;  %v2758_v32 = vpop.f32.mrf.mxu3  ;;  %v3035_v25 = vadd.f32 %v2955_v58, %v6787_v33  ;;  %v3205_v9 = vadd.f32 %v3125_v30, %v6787_v33 }
0x1f27   :  { %v2769_v53 = vpop.f32.mrf.mxu0  ;;  %v5842_v1 = vpop.eup %5841  ;;  %v3322_v63 = vrot.slane %v5840_v10, 2 }
0x1f28   :  { %v6790_v12 = vadd.f32 %v6746_v20, %v3401_v45  ;;  %v6808_v20 = vld [vmem:[%s7212_s9 + $0x20] sm:$0xff]  ;;  %v3034_v3 = vadd.f32 %v2954_v50, %v2769_v53  ;;  %v3204_v5 = vadd.f32 %v3124_v57, %v2769_v53  ;;  %v5844_v19 = vpop.eup %5843  ;;  %v2963_v50 = vperm.slane %v6803_v44, 5 }
0x1f29   :  { %v3128_v37 = vperm.slane %v6808_v20, 0  ;;  %v3129_v47 = vperm.slane %v6808_v20, 1  ;;  %v3130_v6 = vperm.slane %v6808_v20, 2  ;;  %v3131_v14 = vperm.slane %v6808_v20, 3 }
0x1f2a   :  { %v3132_v4 = vperm.slane %v6808_v20, 4  ;;  %v3323_v46 = vrot.slane %v5844_v19, 2 }
0x1f2b   :  { %v6793_v26 = vpop.f32.mrf.mxu2 }
0x1f2c   :  { %v3206_v34 = vadd.f32 %v3126_v22, %v6793_v26 }
0x1f2d   :  { %v2784_v8 = vpop.f32.mrf.mxu1 }
0x1f2e   :  { %v6795_v40 = vpop.f32.mrf.mxu3  ;;  %v3036_v8 = vadd.f32 %v2956_v21, %v6793_v26 }
0x1f2f   :  { %v2771_v42 = vpop.f32.mrf.mxu0 }
0x1f33   :  { %v2797_v51 = vpop.f32.mrf.mxu2 }
0x1f35   :  { %v2834_v59 = vpop.f32.mrf.mxu1 }
0x1f36   :  { %v2810_v52 = vpop.f32.mrf.mxu3  ;;  %v3039_v61 = vadd.f32 %v2959_v38, %v2834_v59  ;;  %v3209_v2 = vadd.f32 %v3129_v47, %v2834_v59  ;;  %v3037_v47 = vadd.f32 %v2957_v41, %v6795_v40 }
0x1f37   :  { %v2821_v62 = vpop.f32.mrf.mxu0 }
0x1f38   :  { %v3038_v60 = vadd.f32 %v2958_v35, %v2821_v62  ;;  %v3208_v7 = vadd.f32 %v3128_v37, %v2821_v62  ;;  %v3133_v62 = vperm.slane %v6808_v20, 5 }
0x1f3a   :  { %5845 = vtanh.f32 %v3038_v60  ;;  %v3402_v60 = vmul.f32 %v5838_v13, %v3322_v63 }
0x1f3b   :  { %5847 = vtanh.f32 %v3208_v7  ;;  %v2847_v27 = vpop.f32.mrf.mxu2  ;;  %v3127_v7 = vperm.slane %v6766_v49, 7 }
0x1f3c   :  { %5849 = vtanh.f32 %v3039_v61  ;;  %v3040_v28 = vadd.f32 %v2960_v36, %v2847_v27  ;;  %v3210_v29 = vadd.f32 %v3130_v6, %v2847_v27  ;;  %v3434_v21 = vadd.f32 %v6753_v39, %v3402_v60 }
0x1f3d   :  { %5851 = vtanh.f32 %v3209_v2  ;;  %v2836_v45 = vpop.f32.mrf.mxu1 }
0x1f3e   :  { %5853 = vtanh.f32 %v3034_v3  ;;  %v2860_v16 = vpop.f32.mrf.mxu3  ;;  %v2964_v45 = vperm.slane %v6803_v44, 6 }
0x1f3f   :  { %5855 = vtanh.f32 %v3204_v5  ;;  %v3041_v24 = vadd.f32 %v2961_v11, %v2860_v16  ;;  %v2823_v56 = vpop.f32.mrf.mxu0  ;;  %v3211_v32 = vadd.f32 %v3131_v14, %v2860_v16 }
0x1f40   :  { %v5846_v31 = vpop.eup %5845  ;;  %5857 = vtanh.f32 %v3035_v25 }
0x1f41   :  { %v5848_v53 = vpop.eup %5847  ;;  %5859 = vtanh.f32 %v3040_v28 }
0x1f42   :  { %v5850_v42 = vpop.eup %5849  ;;  %v3328_v43 = vrot.slane %v5848_v53, 2  ;;  %5861 = vtanh.f32 %v3210_v29 }
0x1f43   :  { %v5852_v55 = vpop.eup %5851  ;;  %5863 = vtanh.f32 %v3041_v24  ;;  %v2849_v57 = vpop.f32.mrf.mxu2 }
0x1f44   :  { %v6830_v35 = vpop.eup %5853  ;;  %v3408_v37 = vmul.f32 %v5846_v31, %v3328_v43  ;;  %v3329_v38 = vrot.slane %v5852_v55, 2  ;;  %5865 = vtanh.f32 %v3211_v32  ;;  %v3134_v31 = vperm.slane %v6808_v20, 6 }
0x1f45   :  { %v5856_v33 = vpop.eup %5855  ;;  %5867 = vtanh.f32 %v3205_v9  ;;  %v2886_v2 = vpop.f32.mrf.mxu1  ;;  %v2965_v55 = vperm.slane %v6803_v44, 7 }
0x1f46   :  { %v6835_v51 = vpop.eup %5857  ;;  %5869 = vtanh.f32 %v3036_v8  ;;  %v3440_v26 = vadd.f32 %v6785_v23, %v3408_v37  ;;  %v3409_v52 = vmul.f32 %v5850_v42, %v3329_v38  ;;  %v2862_v58 = vpop.f32.mrf.mxu3  ;;  %v3403_v23 = vmul.f32 %v5842_v1, %v3323_v46 }
0x1f47   :  { %v5860_v59 = vpop.eup %5859  ;;  %5871 = vtanh.f32 %v3206_v34  ;;  %v2873_v61 = vpop.f32.mrf.mxu0  ;;  %v3043_v14 = vadd.f32 %v2963_v50, %v2886_v2  ;;  %v3213_v30 = vadd.f32 %v3133_v62, %v2886_v2  ;;  %v3324_v16 = vrot.slane %v5856_v33, 2 }
0x1f48   :  { %v5862_v3 = vpop.eup %5861  ;;  %5873 = vtanh.f32 %v3440_v26  ;;  %v3441_v36 = vadd.f32 %v6790_v12, %v3409_v52  ;;  %v3042_v5 = vadd.f32 %v2962_v0, %v2873_v61  ;;  %v3212_v6 = vadd.f32 %v3132_v4, %v2873_v61 }
0x1f49   :  { %v5864_v11 = vpop.eup %5863  ;;  %5875 = vtanh.f32 %v3037_v47  ;;  %v3330_v25 = vrot.slane %v5862_v3, 2  ;;  %v3207_v12 = vadd.f32 %v3127_v7, %v6795_v40  ;;  %v3435_v1 = vadd.f32 %v6756_v17, %v3403_v23 }
0x1f4a   :  { %v5866_v10 = vpop.eup %5865  ;;  %5877 = vtanh.f32 %v3441_v36  ;;  %v3404_v43 = vmul.f32 %v6830_v35, %v3324_v16  ;;  %v3135_v46 = vperm.slane %v6808_v20, 7 }
0x1f4b   :  { %v5868_v13 = vpop.eup %5867  ;;  %v3410_v49 = vmul.f32 %v5860_v59, %v3330_v25  ;;  %v3331_v22 = vrot.slane %v5866_v10, 2  ;;  %5879 = vtanh.f32 %v3042_v5  ;;  %v2899_v39 = vpop.f32.mrf.mxu2 }
0x1f4c   :  { %v6842_v27 = vpop.eup %5869  ;;  %5881 = vtanh.f32 %v3212_v6  ;;  %v3325_v56 = vrot.slane %v5868_v13, 2  ;;  %v3044_v33 = vadd.f32 %v2964_v45, %v2899_v39  ;;  %v3214_v50 = vadd.f32 %v3134_v31, %v2899_v39 }
0x1f4d   :  { %v6845_v19 = vpop.eup %5871  ;;  %v3442_v28 = vadd.f32 %v3434_v21, %v3410_v49  ;;  %v3411_v29 = vmul.f32 %v5864_v11, %v3331_v22  ;;  %5883 = vtanh.f32 %v3043_v14  ;;  %v2888_v42 = vpop.f32.mrf.mxu1  ;;  %v3436_v58 = vadd.f32 %v6773_v54, %v3404_v43 }
0x1f4e   :  { %v5874_v24 = vpop.eup %5873  ;;  %5885 = vtanh.f32 %v3213_v30  ;;  %v2912_v32 = vpop.f32.mrf.mxu3  ;;  %v3405_v0 = vmul.f32 %v6835_v51, %v3325_v56  ;;  %v3326_v6 = vrot.slane %v6845_v19, 2 }
0x1f4f   :  { %v6850_v53 = vpop.eup %5875  ;;  %v6852_v40 = vmax.f32 %v5874_v24, 0.0  ;;  %v3560_v9 = vsub.f32 0.0, %v5874_v24  ;;  %5887 = vtanh.f32 %v3442_v28  ;;  %v3443_v41 = vadd.f32 %v3435_v1, %v3411_v29  ;;  %v2875_v17 = vpop.f32.mrf.mxu0 }
0x1f50   :  { %v5878_v8 = vpop.eup %5877  ;;  %5889 = vtanh.f32 %v3207_v12  ;;  %v3045_v52 = vadd.f32 %v2965_v55, %v2912_v32  ;;  %v3215_v20 = vadd.f32 %v3135_v46, %v2912_v32  ;;  %v3437_v2 = vadd.f32 %v6776_v48, %v3405_v0 }
0x1f51   :  { %v5880_v63 = vpop.eup %5879  ;;  %5891 = vrsqrt.f32 %v6852_v40  ;;  %v6857_v34 = vmax.f32 %v3560_v9, 0.0  ;;  %v6859_v4 = vmax.f32 %v5878_v8, 0.0  ;;  %v3561_v37 = vsub.f32 0.0, %v5878_v8 }
0x1f52   :  { %v5882_v38 = vpop.eup %5881  ;;  %5893 = vtanh.f32 %v3443_v41  ;;  %v3406_v16 = vmul.f32 %v6842_v27, %v3326_v6  ;;  %vm3471_vm15 = vcmp.eq.f32.partialorder %v6852_v40, inf  ;;  %vm3473_vm1 = vcmp.eq.f32.partialorder %v6852_v40, 0.0 }
0x1f53   :  { %v5884_v47 = vpop.eup %5883  ;;  %5895 = vrsqrt.f32 %v6857_v34  ;;  %v6864_v35 = vmax.f32 %v3561_v37, 0.0  ;;  %v3332_v44 = vrot.slane %v5882_v38, 2  ;;  %v2901_v60 = vpop.f32.mrf.mxu2  ;;  %vm3483_vm2 = vcmp.eq.f32.partialorder %v6859_v4, inf }
0x1f54   :  { %v5886_v26 = vpop.eup %5885  ;;  %5897 = vrsqrt.f32 %v6859_v4  ;;  %v3438_v31 = vadd.f32 %v6779_v15, %v3406_v16  ;;  %vm3485_vm3 = vcmp.eq.f32.partialorder %v6859_v4, 0.0  ;;  %vm3583_vm8 = vcmp.eq.f32.partialorder %v6857_v34, inf }
0x1f55   :  { %v5888_v57 = vpop.eup %5887  ;;  %5899 = vrsqrt.f32 %v6864_v35  ;;  %v3412_v51 = vmul.f32 %v5880_v63, %v3332_v44  ;;  %v3333_v62 = vrot.slane %v5886_v26, 2  ;;  %vm3595_vm9 = vcmp.eq.f32.partialorder %v6864_v35, inf }
0x1f56   :  { %v5890_v59 = vpop.eup %5889  ;;  %5901 = vtanh.f32 %v3044_v33  ;;  %v2914_v7 = vpop.f32.mrf.mxu3  ;;  %v6873_v54 = vmax.f32 %v5888_v57, 0.0  ;;  %v3562_v10 = vsub.f32 0.0, %v5888_v57  ;;  %vm3585_vm11 = vcmp.eq.f32.partialorder %v6857_v34, 0.0 }
0x1f57   :  { %v5892_v61 = vpop.eup %5891  ;;  %v3444_v3 = vadd.f32 %v3436_v58, %v3412_v51  ;;  %v3413_v36 = vmul.f32 %v5884_v47, %v3333_v62  ;;  %5903 = vtanh.f32 %v3214_v50  ;;  %v3327_v13 = vrot.slane %v5890_v59, 2 }
0x1f58   :  { %v6870_v5 = vpop.eup %5893  ;;  %5905 = vtanh.f32 %v3045_v52  ;;  %v3465_v11 = vmul.f32 %v5892_v61, %v6852_v40  ;;  %v6887_v28 = vmax.f32 %v3562_v10, 0.0  ;;  %vm3495_vm5 = vcmp.eq.f32.partialorder %v6873_v54, inf }
0x1f59   :  { %v6876_v23 = vpop.eup %5895  ;;  %v6879_v25 = vmax.f32 %v6870_v5, 0.0  ;;  %5907 = vtanh.f32 %v3444_v3  ;;  %v3445_v14 = vadd.f32 %v3437_v2, %v3413_v36  ;;  %v3407_v56 = vmul.f32 %v6850_v53, %v3327_v13 }
0x1f5a   :  { %v5898_v48 = vpop.eup %5897  ;;  %5909 = vtanh.f32 %v3215_v20  ;;  %v3466_v21 = vmul.f32 %v5892_v61, %v3465_v11  ;;  %v3577_v17 = vmul.f32 %v6876_v23, %v6857_v34  ;;  %v3563_v51 = vsub.f32 0.0, %v6870_v5 }
0x1f5b   :  { %v6881_v30 = vpop.eup %5899  ;;  %5911 = vtanh.f32 %v3445_v14  ;;  %v3477_v49 = vmul.f32 %v5898_v48, %v6859_v4  ;;  %v3439_v15 = vadd.f32 %v6782_v18, %v3407_v56  ;;  %v3474_v20 = vand.u32 2147483648, %v6852_v40 }
0x1f5c   :  { %v5902_v22 = vpop.eup %5901  ;;  %5913 = vrsqrt.f32 %v6873_v54  ;;  %v3467_v39 = vmul.f32 0.5, %v3466_v21  ;;  %v3589_v53 = vmul.f32 %v6881_v30, %v6864_v35  ;;  %v3578_v26 = vmul.f32 %v6876_v23, %v3577_v17 }
0x1f5d   :  { %v5904_v12 = vpop.eup %5903  ;;  %v3478_v19 = vmul.f32 %v5898_v48, %v3477_v49  ;;  %5915 = vrsqrt.f32 %v6879_v25  ;;  %v3586_v3 = vand.u32 2147483648, %v6857_v34  ;;  %v3498_v11 = vand.u32 2147483648, %v6873_v54 }
0x1f5e   :  { %v5906_v1 = vpop.eup %5905  ;;  %v3334_v29 = vrot.slane %v5904_v12, 2  ;;  %5917 = vrsqrt.f32 %v6887_v28  ;;  %v3468_v37 = vsub.f32 1.5, %v3467_v39  ;;  %v3590_v18 = vmul.f32 %v6881_v30, %v3589_v53 }
0x1f5f   :  { %v6889_v24 = vpop.eup %5907  ;;  %v3479_v27 = vmul.f32 0.5, %v3478_v19  ;;  %v3579_v2 = vmul.f32 0.5, %v3578_v26  ;;  %v6932_v10 = vmax.f32 %v3563_v51, 0.0  ;;  %v3510_v12 = vand.u32 2147483648, %v6879_v25 }
0x1f60   :  { %v5910_v45 = vpop.eup %5909  ;;  %v3414_v32 = vmul.f32 %v5902_v22, %v3334_v29  ;;  %v6898_v8 = vmax.f32 %v6889_v24, 0.0  ;;  %v3469_v52 = vmul.f32 %v5892_v61, %v3468_v37  ;;  %v3486_v61 = vand.u32 2147483648, %v6859_v4 }
0x1f61   :  { %v6893_v9 = vpop.eup %5911  ;;  %v3335_v41 = vrot.slane %v5910_v45, 2  ;;  %v3480_v33 = vsub.f32 1.5, %v3479_v27  ;;  %v3591_v36 = vmul.f32 0.5, %v3590_v18  ;;  %v3564_v13 = vsub.f32 0.0, %v6889_v24 }
0x1f62   :  { %v5914_v42 = vpop.eup %5913  ;;  %v3446_v43 = vadd.f32 %v3438_v31, %v3414_v32  ;;  %v6906_v0 = vmax.f32 %v6893_v9, 0.0  ;;  %v3470_v6 = vmul.f32 %v3469_v52, %v6852_v40  ;;  %v3565_v29 = vsub.f32 0.0, %v6893_v9 }
0x1f63   :  { %v5916_v55 = vpop.eup %5915  ;;  %v3415_v63 = vmul.f32 %v5906_v1, %v3335_v41  ;;  %v3489_v38 = vmul.f32 %v5914_v42, %v6873_v54  ;;  %v3481_v62 = vmul.f32 %v5898_v48, %v3480_v33  ;;  %v3580_v24 = vsub.f32 1.5, %v3579_v2 }
0x1f64   :  { %5919 = vtanh.f32 %v3446_v43  ;;  %v3501_v46 = vmul.f32 %v5916_v55, %v6879_v25  ;;  %v6913_v58 = vpop.eup %5917  ;;  %v3592_v39 = vsub.f32 1.5, %v3591_v36  ;;  %v3472_v45 = vsel %vm3471_vm15, %v6852_v40, %v3470_v6 }
0x1f65   :  { %v3447_v47 = vadd.f32 %v3439_v15, %v3415_v63  ;;  %v3490_v44 = vmul.f32 %v5914_v42, %v3489_v38  ;;  %5921 = vrsqrt.f32 %v6898_v8  ;;  %v3601_v14 = vmul.f32 %v6913_v58, %v6887_v28 }
0x1f66   :  { %v3502_v50 = vmul.f32 %v5916_v55, %v3501_v46  ;;  %v3482_v21 = vmul.f32 %v3481_v62, %v6859_v4  ;;  %v6951_v41 = vmax.f32 %v3564_v13, 0.0  ;;  %vm3497_vm6 = vcmp.eq.f32.partialorder %v6873_v54, 0.0 }
0x1f67   :  { %5923 = vtanh.f32 %v3447_v47  ;;  %v3491_v57 = vmul.f32 0.5, %v3490_v44  ;;  %v3602_v27 = vmul.f32 %v6913_v58, %v3601_v14  ;;  %vm3507_vm7 = vcmp.eq.f32.partialorder %v6879_v25, inf }
0x1f68   :  { %v3503_v59 = vmul.f32 0.5, %v3502_v50  ;;  %5925 = vrsqrt.f32 %v6906_v0  ;;  %v3484_v9 = vsel %vm3483_vm2, %v6859_v4, %v3482_v21  ;;  %v6963_v63 = vmax.f32 %v3565_v29, 0.0 }
0x1f69   :  { %v3492_v60 = vsub.f32 1.5, %v3491_v57  ;;  %v6967_v37 = vsel %vm3473_vm1, %v3474_v20, %v3472_v45  ;;  %v3593_v38 = vmul.f32 %v6881_v30, %v3592_v39  ;;  %vm3509_vm10 = vcmp.eq.f32.partialorder %v6879_v25, 0.0 }
0x1f6a   :  { %v6920_v7 = vpop.eup %5919  ;;  %v3504_v49 = vsub.f32 1.5, %v3503_v59  ;;  %v3522_v47 = vand.u32 2147483648, %v6898_v8  ;;  %v3603_v50 = vmul.f32 0.5, %v3602_v27  ;;  %v6978_v40 = vsel %vm3485_vm3, %v3486_v61, %v3484_v9 }
0x1f6b   :  { %v6925_v5 = vmax.f32 %v6920_v7, 0.0  ;;  %v5922_v48 = vpop.eup %5921  ;;  %v3493_v16 = vmul.f32 %v5914_v42, %v3492_v60  ;;  %v3598_v42 = vand.u32 2147483648, %v6864_v35  ;;  %v3566_v26 = vsub.f32 0.0, %v6920_v7 }
0x1f6c   :  { %v3513_v19 = vmul.f32 %v5922_v48, %v6898_v8  ;;  %v3505_v17 = vmul.f32 %v5916_v55, %v3504_v49  ;;  %v3581_v55 = vmul.f32 %v6876_v23, %v3580_v24  ;;  %vm3597_vm4 = vcmp.eq.f32.partialorder %v6864_v35, 0.0 }
0x1f6d   :  { %v6937_v22 = vpop.eup %5923  ;;  %5927 = vrsqrt.f32 %v6925_v5  ;;  %v3494_v43 = vmul.f32 %v3493_v16, %v6873_v54  ;;  %vm3519_vm12 = vcmp.eq.f32.partialorder %v6898_v8, inf  ;;  %vm3531_vm14 = vcmp.eq.f32.partialorder %v6906_v0, inf }
0x1f6e   :  { %v5926_v1 = vpop.eup %5925  ;;  %v6944_v56 = vmax.f32 %v6937_v22, 0.0  ;;  %v3514_v31 = vmul.f32 %v5922_v48, %v3513_v19  ;;  %v3567_v30 = vsub.f32 0.0, %v6937_v22  ;;  %v3506_v52 = vmul.f32 %v3505_v17, %v6879_v25 }
0x1f6f   :  { %v3525_v32 = vmul.f32 %v5926_v1, %v6906_v0  ;;  %v3496_v18 = vsel %vm3495_vm5, %v6873_v54, %v3494_v43  ;;  %v3582_v51 = vmul.f32 %v3581_v55, %v6857_v34  ;;  %v3594_v62 = vmul.f32 %v3593_v38, %v6864_v35 }
0x1f70   :  { %v3515_v53 = vmul.f32 0.5, %v3514_v31  ;;  %5929 = vrsqrt.f32 %v6944_v56  ;;  %v3604_v59 = vsub.f32 1.5, %v3603_v50  ;;  %v3534_v61 = vand.u32 2147483648, %v6906_v0 }
0x1f71   :  { %v3526_v15 = vmul.f32 %v5926_v1, %v3525_v32  ;;  %5931 = vrsqrt.f32 %v6932_v10  ;;  %vm3607_vm0 = vcmp.eq.f32.partialorder %v6887_v28, inf  ;;  %vm3609_vm15 = vcmp.eq.f32.partialorder %v6887_v28, 0.0 }
0x1f72   :  { %v3516_v46 = vsub.f32 1.5, %v3515_v53  ;;  %v3605_v6 = vmul.f32 %v6913_v58, %v3604_v59  ;;  %5933 = vrsqrt.f32 %v6951_v41  ;;  %v7004_v14 = vmax.f32 %v3566_v26, 0.0 }
0x1f73   :  { %v6971_v33 = vpop.eup %5927  ;;  %v3527_v44 = vmul.f32 0.5, %v3526_v15  ;;  %v7006_v13 = vmax.f32 %v3567_v30, 0.0  ;;  %v3508_v21 = vsel %vm3507_vm7, %v6879_v25, %v3506_v52  ;;  %vm3521_vm1 = vcmp.eq.f32.partialorder %v6898_v8, 0.0 }
0x1f74   :  { %v3537_v23 = vmul.f32 %v6971_v33, %v6925_v5  ;;  %v3517_v60 = vmul.f32 %v5922_v48, %v3516_v46  ;;  %v3499_v48 = vsel %vm3497_vm6, %v3498_v11, %v3496_v18  ;;  %vm3533_vm2 = vcmp.eq.f32.partialorder %v6906_v0, 0.0 }
0x1f75   :  { %v3528_v57 = vsub.f32 1.5, %v3527_v44  ;;  %v3584_v22 = vsel %vm3583_vm8, %v6857_v34, %v3582_v51  ;;  %v3596_v54 = vsel %vm3595_vm9, %v6864_v35, %v3594_v62  ;;  %v3606_v11 = vmul.f32 %v3605_v6, %v6887_v28 }
0x1f76   :  { %v3538_v4 = vmul.f32 %v6971_v33, %v3537_v23  ;;  %v6995_v20 = vpop.eup %5929  ;;  %v3518_v16 = vmul.f32 %v3517_v60, %v6898_v8  ;;  %5935 = vrsqrt.f32 %v6963_v63  ;;  %v7033_v29 = vsel %vm3509_vm10, %v3510_v12, %v3508_v21 }
0x1f77   :  { %v3529_v7 = vmul.f32 %v5926_v1, %v3528_v57  ;;  %v3549_v36 = vmul.f32 %v6995_v20, %v6944_v56  ;;  %v5932_v58 = vpop.eup %5931  ;;  %v3546_v39 = vand.u32 2147483648, %v6925_v5  ;;  %v3558_v45 = vand.u32 2147483648, %v6944_v56 }
0x1f78   :  { %v3539_v2 = vmul.f32 0.5, %v3538_v4  ;;  %v3613_v1 = vmul.f32 %v5932_v58, %v6932_v10  ;;  %v3587_v32 = vsel %vm3585_vm11, %v3586_v3, %v3584_v22  ;;  %v3610_v27 = vand.u32 2147483648, %v6887_v28  ;;  %v5934_v17 = vpop.eup %5933 }
0x1f79   :  { %v3550_v49 = vmul.f32 %v6995_v20, %v3549_v36  ;;  %v3530_v19 = vmul.f32 %v3529_v7, %v6906_v0  ;;  %v3599_v25 = vsel %vm3597_vm4, %v3598_v42, %v3596_v54  ;;  %v3608_v12 = vsel %vm3607_vm0, %v6887_v28, %v3606_v11 }
0x1f7a   :  { %v3540_v24 = vsub.f32 1.5, %v3539_v2  ;;  %v3614_v9 = vmul.f32 %v5932_v58, %v3613_v1  ;;  %vm3619_vm3 = vcmp.eq.f32.partialorder %v6932_v10, inf  ;;  %5937 = vrsqrt.f32 %v7004_v14 }
0x1f7b   :  { %v3551_v31 = vmul.f32 0.5, %v3550_v49  ;;  %v3520_v34 = vsel %vm3519_vm12, %v6898_v8, %v3518_v16  ;;  %v3532_v3 = vsel %vm3531_vm14, %v6906_v0, %v3530_v19  ;;  %v3625_v35 = vmul.f32 %v5934_v17, %v6951_v41 }
0x1f7c   :  { %v3615_v43 = vmul.f32 0.5, %v3614_v9  ;;  %v3541_v42 = vmul.f32 %v6971_v33, %v3540_v24  ;;  %vm3621_vm5 = vcmp.eq.f32.partialorder %v6932_v10, 0.0  ;;  %v3622_v53 = vand.u32 2147483648, %v6932_v10  ;;  %v5936_v15 = vpop.eup %5935 }
0x1f7d   :  { %5939 = vrsqrt.f32 %v7006_v13  ;;  %v3552_v55 = vsub.f32 1.5, %v3551_v31  ;;  %v3611_v38 = vsel %vm3609_vm15, %v3610_v27, %v3608_v12  ;;  %v3626_v44 = vmul.f32 %v5934_v17, %v3625_v35 }
0x1f7e   :  { %v3616_v46 = vsub.f32 1.5, %v3615_v43  ;;  %v3523_v50 = vsel %vm3521_vm1, %v3522_v47, %v3520_v34  ;;  %v7070_v33 = vsel %vm3533_vm2, %v3534_v61, %v3532_v3  ;;  %vm3631_vm6 = vcmp.eq.f32.partialorder %v6951_v41, inf }
0x1f7f   :  { %v3634_v26 = vand.u32 2147483648, %v6951_v41  ;;  %v3637_v23 = vmul.f32 %v5936_v15, %v6963_v63  ;;  %vm3543_vm7 = vcmp.eq.f32.partialorder %v6925_v5, inf  ;;  %v3627_v30 = vmul.f32 0.5, %v3626_v44 }
0x1f80   :  { %v3617_v28 = vmul.f32 %v5932_v58, %v3616_v46  ;;  %vm3633_vm8 = vcmp.eq.f32.partialorder %v6951_v41, 0.0  ;;  %v7078_v18 = vsub.f32 %v6967_v37, %v3587_v32  ;;  %v7081_v8 = vsub.f32 %v6978_v40, %v3599_v25  ;;  %v5938_v0 = vpop.eup %5937 }
0x1f81   :  { %v3542_v47 = vmul.f32 %v3541_v42, %v6925_v5  ;;  %v3638_v52 = vmul.f32 %v5936_v15, %v3637_v23  ;;  %v3646_v57 = vand.u32 2147483648, %v6963_v63  ;;  %v7085_v4 = vsub.f32 %v3499_v48, %v3611_v38 }
0x1f82   :  { %v3553_v51 = vmul.f32 %v6995_v20, %v3552_v55  ;;  %v3618_v62 = vmul.f32 %v3617_v28, %v6932_v10  ;;  %v3628_v59 = vsub.f32 1.5, %v3627_v30  ;;  %vm3643_vm9 = vcmp.eq.f32.partialorder %v6963_v63, inf }
0x1f83   :  { %v3649_v37 = vmul.f32 %v5938_v0, %v7004_v14  ;;  %v5940_v60 = vpop.eup %5939  ;;  %v3639_v40 = vmul.f32 0.5, %v3638_v52  ;;  %vm3645_vm10 = vcmp.eq.f32.partialorder %v6963_v63, 0.0  ;;  %v3680_v7 = vmul.f32 %v7078_v18, %v7078_v18 }
0x1f84   :  { %v3681_v61 = vmul.f32 %v7081_v8, %v7081_v8  ;;  %v3682_v20 = vmul.f32 %v7085_v4, %v7085_v4  ;;  %vm3545_vm11 = vcmp.eq.f32.partialorder %v6925_v5, 0.0  ;;  %v3620_v2 = vsel %vm3619_vm3, %v6932_v10, %v3618_v62 }
0x1f85   :  { %v3629_v36 = vmul.f32 %v5934_v17, %v3628_v59  ;;  %v3650_v6 = vmul.f32 %v5938_v0, %v3649_v37  ;;  %v3661_v48 = vmul.f32 %v5940_v60, %v7006_v13  ;;  %vm3555_vm4 = vcmp.eq.f32.partialorder %v6944_v56, inf }
0x1f86   :  { %v3623_v21 = vsel %vm3621_vm5, %v3622_v53, %v3620_v2  ;;  %v3640_v58 = vsub.f32 1.5, %v3639_v40  ;;  %v3688_v49 = vsel %vm814_vm13, %v3680_v7, 0.0  ;;  %v3689_v22 = vsel %vm814_vm13, %v3681_v61, 0.0 }
0x1f87   :  { %v3630_v54 = vmul.f32 %v3629_v36, %v6951_v41  ;;  %v3651_v11 = vmul.f32 0.5, %v3650_v6  ;;  %v3662_v16 = vmul.f32 %v5940_v60, %v3661_v48  ;;  %v7110_v19 = vsub.f32 %v7033_v29, %v3623_v21 }
0x1f88   :  { %v3641_v1 = vmul.f32 %v5936_v15, %v3640_v58  ;;  %vm3655_vm12 = vcmp.eq.f32.partialorder %v7004_v14, inf  ;;  %v3690_v24 = vadd.f32 %v3689_v22, %v3688_v49  ;;  %v3691_v31 = vsel %vm814_vm13, %v3682_v20, 0.0 }
0x1f89   :  { %v3632_v10 = vsel %vm3631_vm6, %v6951_v41, %v3630_v54  ;;  %v3652_v32 = vsub.f32 1.5, %v3651_v11  ;;  %v3663_v27 = vmul.f32 0.5, %v3662_v16  ;;  %v3683_v9 = vmul.f32 %v7110_v19, %v7110_v19 }
0x1f8a   :  { %v3544_v29 = vsel %vm3543_vm7, %v6925_v5, %v3542_v47  ;;  %v3635_v17 = vsel %vm3633_vm8, %v3634_v26, %v3632_v10  ;;  %v3642_v25 = vmul.f32 %v3641_v1, %v6963_v63  ;;  %v3692_v12 = vadd.f32 %v3691_v31, %v3690_v24 }
0x1f8b   :  { %v3554_v34 = vmul.f32 %v3553_v51, %v6944_v56  ;;  %v3653_v3 = vmul.f32 %v5938_v0, %v3652_v32  ;;  %v3664_v43 = vsub.f32 1.5, %v3663_v27  ;;  %v3676_v35 = vsub.f32 %v3523_v50, %v3635_v17 }
0x1f8c   :  { %v3644_v42 = vsel %vm3643_vm9, %v6963_v63, %v3642_v25  ;;  %vm3657_vm14 = vcmp.eq.f32.partialorder %v7004_v14, 0.0  ;;  %v3658_v53 = vand.u32 2147483648, %v7004_v14  ;;  %v3693_v15 = vsel %vm814_vm13, %v3683_v9, 0.0 }
0x1f8d   :  { %v3647_v41 = vsel %vm3645_vm10, %v3646_v57, %v3644_v42  ;;  %v3654_v55 = vmul.f32 %v3653_v3, %v7004_v14  ;;  %v3665_v38 = vmul.f32 %v5940_v60, %v3664_v43  ;;  %v3684_v46 = vmul.f32 %v3676_v35, %v3676_v35 }
0x1f8e   :  { %v3547_v44 = vsel %vm3545_vm11, %v3546_v39, %v3544_v29  ;;  %vm3667_vm0 = vcmp.eq.f32.partialorder %v7006_v13, inf  ;;  %v3677_v50 = vsub.f32 %v7070_v33, %v3647_v41  ;;  %v3694_v26 = vadd.f32 %v3693_v15, %v3692_v12 }
0x1f8f   :  { %v3556_v23 = vsel %vm3555_vm4, %v6944_v56, %v3554_v34  ;;  %v3656_v63 = vsel %vm3655_vm12, %v7004_v14, %v3654_v55  ;;  %v3666_v28 = vmul.f32 %v3665_v38, %v7006_v13  ;;  %v3695_v30 = vsel %vm814_vm13, %v3684_v46, 0.0 }
0x1f90   :  { %v3659_v0 = vsel %vm3657_vm14, %v3658_v53, %v3656_v63  ;;  %v3670_v5 = vand.u32 2147483648, %v7006_v13  ;;  %v3685_v39 = vmul.f32 %v3677_v50, %v3677_v50  ;;  %v3696_v47 = vadd.f32 %v3695_v30, %v3694_v26 }
0x1f91   :  { %vm3557_vm15 = vcmp.eq.f32.partialorder %v6944_v56, 0.0  ;;  %v3668_v33 = vsel %vm3667_vm0, %v7006_v13, %v3666_v28  ;;  %vm3669_vm1 = vcmp.eq.f32.partialorder %v7006_v13, 0.0  ;;  %v3678_v52 = vsub.f32 %v3547_v44, %v3659_v0 }
0x1f92   :  { %v3559_v57 = vsel %vm3557_vm15, %v3558_v45, %v3556_v23  ;;  %v3671_v14 = vsel %vm3669_vm1, %v3670_v5, %v3668_v33  ;;  %v3697_v59 = vsel %vm814_vm13, %v3685_v39, 0.0 }
0x1f93   :  { %v3679_v51 = vsub.f32 %v3559_v57, %v3671_v14  ;;  %v3686_v62 = vmul.f32 %v3678_v52, %v3678_v52  ;;  %v3698_v37 = vadd.f32 %v3697_v59, %v3696_v47 }
0x1f95   :  { %v3687_v60 = vmul.f32 %v3679_v51, %v3679_v51  ;;  %v3699_v40 = vsel %vm814_vm13, %v3686_v62, 0.0 }
0x1f96   :  { %v3700_v7 = vadd.f32 %v3699_v40, %v3698_v37 }
0x1f97   :  { %v3701_v61 = vsel %vm814_vm13, %v3687_v60, 0.0 }
0x1f98   :  { %v3702_v20 = vadd.f32 %v3701_v61, %v3700_v7 }
0x1f9a   :  { %3703 = vadd.xlane.f32.xlu0 %v3702_v20 }
0x200d   :  { %v3704_v2 = vpop.xlane.xlu0 %3703 }
0x200e   :  { %v3705_v13 = vmax.f32 %v3704_v2, 1e-24 }
0x2010   :  { %5941 = vrsqrt.f32 %v3705_v13  ;;  %vm3712_vm3 = vweird.f32 %v3705_v13 }
0x2016   :  { %v5942_v36 = vpop.eup %5941 }
0x2017   :  { %v3707_v56 = vmul.f32 %v5942_v36, %v3705_v13  ;;  %vm3713_vm2 = vweird.f32 %v5942_v36 }
0x2018   :  { %vm3714_vm5 = vmor %vm3712_vm3, %vm3713_vm2 }
0x2019   :  { %v3708_v45 = vmul.f32 %v5942_v36, %v3707_v56 }
0x201b   :  { %v3709_v6 = vmul.f32 0.5, %v3708_v45 }
0x201d   :  { %v3710_v48 = vsub.f32 1.5, %v3709_v6 }
0x201f   :  { %v3711_v21 = vmul.f32 %v5942_v36, %v3710_v48 }
0x2021   :  { %v3715_v58 = vsel %vm3714_vm5, %v5942_v36, %v3711_v21 }
0x2022   :  { %v7159_v49 = vmul.f32 %v3715_v58, %v7078_v18  ;;  %v7162_v22 = vmul.f32 %v3715_v58, %v7081_v8  ;;  %v7165_v54 = vmul.f32 %v3715_v58, %v7085_v4  ;;  %v7168_v11 = vmul.f32 %v3715_v58, %v7110_v19 }
0x2023   :  { %v7170_v16 = vmul.f32 %v3715_v58, %v3676_v35  ;;  %v7172_v1 = vmul.f32 %v3715_v58, %v3677_v50  ;;  %v7174_v24 = vmul.f32 %v3715_v58, %v3678_v52  ;;  %v7176_v31 = vmul.f32 %v3715_v58, %v3679_v51 }
0x2024   :  { %5998 = dma.done.wait [#allocation4 + $0x1], 8192 }
0x2025   :  { %5999 = vsyncadd [#allocation4 + $0x1], 4294959104  ;;  %v5541_v18 = vld [vmem:[#allocation3 + $0x48] sm:$0xff]  ;;  %v5549_v10 = vld [vmem:[#allocation3 + $0x60] sm:$0xff]  ;;  %v3730_v57 = vpack.c.bf16 %v7165_v54, %v7165_v54  ;;  %v3728_v14 = vpack.c.bf16 %v7159_v49, %v7159_v49  ;;  %v3731_v51 = vpack.c.bf16 %v7168_v11, %v7168_v11  ;;  %v3729_v62 = vpack.c.bf16 %v7162_v22, %v7162_v22  ;;  %s4376_s4 = sshll.u32 %s7216_s13, 4  ;;  %s4377_s4 = int_to_ptr.hbm [resolvable:$true] %s4376_s4 }
0x2026   :  { %v5557_v8 = vld [vmem:[#allocation3 + $0x28] sm:$0xff]  ;;  %4252 = vmatpush.bf16.msra.mxu0 %v5541_v18  ;;  %4265 = vmatpush.bf16.msrb.mxu1 %v5549_v10  ;;  %v5540_v4 = vld [vmem:[#allocation3 + $0x130] sm:$0xff]  ;;  %v5556_v19 = vld [vmem:[#allocation3 + $0x1b8] sm:$0xff]  ;;  %vm4356_vm13 = vcmask 123904  }
0x2027   :  { %v5565_v32 = vld [vmem:[#allocation3 + $0x8] sm:$0xff]  ;;  %4278 = vmatpush.bf16.msra.mxu2 %v5557_v8  ;;  %v5564_v9 = vld [vmem:[#allocation3 + $0xf0] sm:$0xff]  ;;  %v5563_v12 = vld [vmem:[#allocation3] sm:$0xff] }
0x2028   :  { %v5548_v27 = vld [vmem:[#allocation3 + $0x108] sm:$0xff]  ;;  %4291 = vmatpush.bf16.msrb.mxu3 %v5565_v32  ;;  %v5547_v17 = vld [vmem:[#allocation3 + $0x150] sm:$0xff]  ;;  %v5546_v3 = vld [vmem:[#allocation3 + $0x120] sm:$0xff] }
0x2029   :  { %v5539_v29 = vld [vmem:[#allocation3 + $0x168] sm:$0xff]  ;;  %v5538_v34 = vld [vmem:[#allocation3 + $0x50] sm:$0xff]  ;;  %v5554_v43 = vld [vmem:[#allocation3 + $0x80] sm:$0xff] }
0x202a   :  { %4253 = vmatpush.bf16.msra.mxu0 %v5540_v4  ;;  %4266 = vmatpush.bf16.msrb.mxu1 %v5548_v27  ;;  %v5555_v25 = vld [vmem:[#allocation3 + $0x1a8] sm:$0xff]  ;;  %v5562_v35 = vld [vmem:[#allocation3 + $0x1e0] sm:$0xff]  ;;  %v5537_v42 = vld [vmem:[#allocation3 + $0x18] sm:$0xff] }
0x202b   :  { %4279 = vmatpush.bf16.msra.mxu2 %v5556_v19  ;;  %v5545_v53 = vld [vmem:[#allocation3 + $0x98] sm:$0xff]  ;;  %v5553_v15 = vld [vmem:[#allocation3 + $0x140] sm:$0xff]  ;;  %v5561_v41 = vld [vmem:[#allocation3 + $0x30] sm:$0xff] }
0x202c   :  { %4292 = vmatpush.bf16.msrb.mxu3 %v5564_v9  ;;  %v5536_v55 = vld [vmem:[#allocation3 + $0xd8] sm:$0xff]  ;;  %v5560_v44 = vld [vmem:[#allocation3 + $0x160] sm:$0xff]  ;;  %v5535_v50 = vld [vmem:[#allocation3 + $0x1b0] sm:$0xff] }
0x202d   :  { %v5544_v38 = vld [vmem:[#allocation3 + $0x118] sm:$0xff]  ;;  %v5543_v26 = vld [vmem:[#allocation3 + $0x110] sm:$0xff]  ;;  %v5551_v23 = vld [vmem:[#allocation3 + $0x188] sm:$0xff] }
0x202e   :  { %4254 = vmatpush.bf16.msra.mxu0 %v5539_v29  ;;  %4267 = vmatpush.bf16.msrb.mxu1 %v5547_v17  ;;  %v5552_v46 = vld [vmem:[#allocation3 + $0x138] sm:$0xff]  ;;  %v5534_v28 = vld [vmem:[#allocation3 + $0xb0] sm:$0xff]  ;;  %v5542_v30 = vld [vmem:[#allocation3 + $0x180] sm:$0xff]  ;;  %v3732_v29 = vpack.c.bf16 %v7170_v16, %v7170_v16  ;;  %v3733_v17 = vpack.c.bf16 %v7172_v1, %v7172_v1 }
0x202f   :  { %4280 = vmatpush.bf16.msra.mxu2 %v5555_v25  ;;  %v5559_v63 = vld [vmem:[#allocation3 + $0xf8] sm:$0xff]  ;;  %v5550_v0 = vld [vmem:[#allocation3 + $0xe0] sm:$0xff]  ;;  %v5558_v5 = vld [vmem:[#allocation3 + $0x1e8] sm:$0xff]  ;;  %v3734_v25 = vpack.c.bf16 %v7174_v24, %v7174_v24 }
0x2030   :  { %4293 = vmatpush.bf16.msrb.mxu3 %v5563_v12  ;;  %v5573_v39 = vld [vmem:[#allocation3 + $0x128] sm:$0xff]  ;;  %v5581_v47 = vld [vmem:[#allocation3 + $0xd0] sm:$0xff]  ;;  %v5597_v52 = vld [vmem:[#allocation3 + $0xa0] sm:$0xff]  ;;  %v3735_v12 = vpack.c.bf16 %v7176_v31, %v7176_v31 }
0x2031   :  { %v5589_v33 = vld [vmem:[#allocation3 + $0x190] sm:$0xff]  ;;  %v5572_v59 = vld [vmem:[#allocation3 + $0x20] sm:$0xff]  ;;  %v5580_v37 = vld [vmem:[#allocation3 + $0x1d8] sm:$0xff] }
0x2032   :  { %4255 = vmatpush.bf16.msra.mxu0 %v5538_v34  ;;  %4268 = vmatpush.bf16.msrb.mxu1 %v5546_v3  ;;  %v5588_v60 = vld [vmem:[#allocation3 + $0x68] sm:$0xff]  ;;  %v5596_v40 = vld [vmem:[#allocation3 + $0x58] sm:$0xff]  ;;  %v5579_v61 = vld [vmem:[#allocation3 + $0x90] sm:$0xff] }
0x2033   :  { %4281 = vmatpush.bf16.msra.mxu2 %v5554_v43  ;;  %v5571_v7 = vld [vmem:[#allocation3 + $0x1f8] sm:$0xff]  ;;  %v5595_v2 = vld [vmem:[#allocation3 + $0x10] sm:$0xff]  ;;  %v5570_v13 = vld [vmem:[#allocation3 + $0x40] sm:$0xff] }
0x2034   :  { %4294 = vmatpush.bf16.msrb.mxu3 %v5562_v35  ;;  %v5587_v20 = vld [vmem:[#allocation3 + $0x178] sm:$0xff]  ;;  %v5578_v36 = vld [vmem:[#allocation3 + $0x70] sm:$0xff]  ;;  %v5569_v6 = vld [vmem:[#allocation3 + $0xc8] sm:$0xff] }
0x2035   :  { %v5586_v56 = vld [vmem:[#allocation3 + $0x170] sm:$0xff]  ;;  %v5594_v45 = vld [vmem:[#allocation3 + $0x158] sm:$0xff]  ;;  %v5585_v21 = vld [vmem:[#allocation3 + $0x1c8] sm:$0xff] }
0x2036   :  { %4256 = vmatpush.bf16.msra.mxu0 %v5537_v42  ;;  %4269 = vmatpush.bf16.msrb.mxu1 %v5545_v53  ;;  %v5577_v48 = vld [vmem:[#allocation3 + $0x78] sm:$0xff]  ;;  %v5593_v58 = vld [vmem:[#allocation3 + $0x1c0] sm:$0xff]  ;;  %v5576_v22 = vld [vmem:[#allocation3 + $0xe8] sm:$0xff] }
0x2037   :  { %4282 = vmatpush.bf16.msra.mxu2 %v5553_v15  ;;  %v5568_v49 = vld [vmem:[#allocation3 + $0x100] sm:$0xff]  ;;  %v5584_v54 = vld [vmem:[#allocation3 + $0xa8] sm:$0xff]  ;;  %v5567_v18 = vld [vmem:[#allocation3 + $0x1d0] sm:$0xff] }
0x2038   :  { %4295 = vmatpush.bf16.msrb.mxu3 %v5561_v41  ;;  %v5592_v11 = vld [vmem:[#allocation3 + $0xc0] sm:$0xff]  ;;  %v5575_v10 = vld [vmem:[#allocation3 + $0x1f0] sm:$0xff]  ;;  %v5583_v8 = vld [vmem:[#allocation3 + $0x88] sm:$0xff] }
0x2039   :  { %v5591_v32 = vld [vmem:[#allocation3 + $0x38] sm:$0xff]  ;;  %v5566_v4 = vld [vmem:[#allocation3 + $0x148] sm:$0xff]  ;;  %v5574_v27 = vld [vmem:[#allocation3 + $0x1a0] sm:$0xff] }
0x203a   :  { %4257 = vmatpush.bf16.msra.mxu0 %v5536_v55  ;;  %4270 = vmatpush.bf16.msrb.mxu1 %v5544_v38  ;;  %v5582_v19 = vld [vmem:[#allocation3 + $0xb8] sm:$0xff]  ;;  %v5943_v42 = vld [vmem:[%s7213_s10] ss:$0 sm:$0xff]  ;;  %s6006_s10 = smov [#allocation5]  }
0x203b   :  { %4283 = vmatpush.bf16.msra.mxu2 %v5552_v46  ;;  %v5590_v9 = vld [vmem:[#allocation3 + $0x198] sm:$0xff]  ;;  %s4374_s27 = sshll.u32 %s6006_s10, 4  ;;  %s4375_s27 = int_to_ptr.vmem [resolvable:$true] %s4374_s27 }
0x203c   :  { %4296 = vmatpush.bf16.msrb.mxu3 %v5560_v44 }
0x203e   :  { %4258 = vmatpush.bf16.msra.mxu0 %v5535_v50  ;;  %4271 = vmatpush.bf16.msrb.mxu1 %v5543_v26 }
0x203f   :  { %4284 = vmatpush.bf16.msra.mxu2 %v5551_v23 }
0x2040   :  { %4297 = vmatpush.bf16.msrb.mxu3 %v5559_v63 }
0x2042   :  { %4259 = vmatpush.bf16.msra.mxu0 %v5534_v28  ;;  %4272 = vmatpush.bf16.msrb.mxu1 %v5542_v30 }
0x2043   :  { %4285 = vmatpush.bf16.msra.mxu2 %v5550_v0 }
0x2044   :  { %4298 = vmatpush.bf16.msrb.mxu3 %v5558_v5 }
0x2045   :  { %4260 = vmatmul.bf16.vlgmr.msra.gmra.mxu0 %v3728_v14  ;;  %4273 = vmatmul.bf16.vlgmr.msrb.gmra.mxu1 %v3729_v62 }
0x2046   :  { %4304 = vmatpush.bf16.msrb.mxu0 %v5573_v39  ;;  %4317 = vmatpush.bf16.msra.mxu1 %v5581_v47 }
0x2047   :  { %4330 = vmatpush.bf16.msrb.mxu2 %v5589_v33  ;;  %4299 = vmatmul.bf16.vlgmr.msrb.gmra.mxu3 %v3731_v51 }
0x2048   :  { %4343 = vmatpush.bf16.msra.mxu3 %v5597_v52  ;;  %4286 = vmatmul.bf16.vlgmr.msra.gmra.mxu2 %v3730_v57 }
0x204a   :  { %4305 = vmatpush.bf16.msrb.mxu0 %v5572_v59  ;;  %4318 = vmatpush.bf16.msra.mxu1 %v5580_v37 }
0x204b   :  { %4331 = vmatpush.bf16.msrb.mxu2 %v5588_v60 }
0x204c   :  { %4344 = vmatpush.bf16.msra.mxu3 %v5596_v40 }
0x204e   :  { %4306 = vmatpush.bf16.msrb.mxu0 %v5571_v7  ;;  %4319 = vmatpush.bf16.msra.mxu1 %v5579_v61 }
0x204f   :  { %4332 = vmatpush.bf16.msrb.mxu2 %v5587_v20 }
0x2050   :  { %4345 = vmatpush.bf16.msra.mxu3 %v5595_v2 }
0x2052   :  { %4307 = vmatpush.bf16.msrb.mxu0 %v5570_v13  ;;  %4320 = vmatpush.bf16.msra.mxu1 %v5578_v36 }
0x2053   :  { %4333 = vmatpush.bf16.msrb.mxu2 %v5586_v56 }
0x2054   :  { %4346 = vmatpush.bf16.msra.mxu3 %v5594_v45 }
0x2056   :  { %4308 = vmatpush.bf16.msrb.mxu0 %v5569_v6  ;;  %4321 = vmatpush.bf16.msra.mxu1 %v5577_v48 }
0x2057   :  { %4334 = vmatpush.bf16.msrb.mxu2 %v5585_v21 }
0x2058   :  { %4347 = vmatpush.bf16.msra.mxu3 %v5593_v58 }
0x205a   :  { %4309 = vmatpush.bf16.msrb.mxu0 %v5568_v49  ;;  %4322 = vmatpush.bf16.msra.mxu1 %v5576_v22 }
0x205b   :  { %4335 = vmatpush.bf16.msrb.mxu2 %v5584_v54 }
0x205c   :  { %4348 = vmatpush.bf16.msra.mxu3 %v5592_v11 }
0x205e   :  { %4310 = vmatpush.bf16.msrb.mxu0 %v5567_v18  ;;  %4323 = vmatpush.bf16.msra.mxu1 %v5575_v10 }
0x205f   :  { %4336 = vmatpush.bf16.msrb.mxu2 %v5583_v8 }
0x2060   :  { %4349 = vmatpush.bf16.msra.mxu3 %v5591_v32 }
0x2062   :  { %4311 = vmatpush.bf16.msrb.mxu0 %v5566_v4  ;;  %4324 = vmatpush.bf16.msra.mxu1 %v5574_v27 }
0x2063   :  { %4337 = vmatpush.bf16.msrb.mxu2 %v5582_v19 }
0x2064   :  { %4350 = vmatpush.bf16.msra.mxu3 %v5590_v9 }
0x2065   :  { %4312 = vmatmul.bf16.vlgmr.msrb.gmra.mxu0 %v3732_v29  ;;  %4325 = vmatmul.bf16.vlgmr.msra.gmra.mxu1 %v3733_v17 }
0x2066   :  { %4338 = vmatmul.bf16.vlgmr.msrb.gmra.mxu2 %v3734_v25 }
0x2067   :  { %4351 = vmatmul.bf16.vlgmr.msra.gmra.mxu3 %v3735_v12 }
0x20c2   :  { %v4261_v34 = vpop.f32.mrf.mxu0  ;;  %v4274_v3 = vpop.f32.mrf.mxu1 }
0x20c3   :  { %v4262_v15 = vadd.f32 %v5943_v42, %v4261_v34 }
0x20c5   :  { %v4275_v31 = vadd.f32 %v4274_v3, %v4262_v15 }
0x20ca   :  { %v4300_v43 = vpop.f32.mrf.mxu3  ;;  %v4263_v35 = vpop.f32.mrf.mxu0 }
0x20cb   :  { %v4287_v16 = vpop.f32.mrf.mxu2  ;;  %v4276_v1 = vpop.f32.mrf.mxu1 }
0x20cc   :  { %v4288_v41 = vadd.f32 %v4287_v16, %v4275_v31 }
0x20ce   :  { %v4301_v55 = vadd.f32 %v4300_v43, %v4288_v41 }
0x20d2   :  { %v4302_v53 = vpop.f32.mrf.mxu3 }
0x20d3   :  { %v4289_v24 = vpop.f32.mrf.mxu2 }
0x20e2   :  { %v4313_v38 = vpop.f32.mrf.mxu0  ;;  %v4326_v46 = vpop.f32.mrf.mxu1 }
0x20e3   :  { %v4314_v44 = vadd.f32 %v4313_v38, %v4301_v55 }
0x20e5   :  { %v4327_v50 = vadd.f32 %v4326_v46, %v4314_v44 }
0x20e9   :  { %v4339_v26 = vpop.f32.mrf.mxu2 }
0x20ea   :  { %v4352_v23 = vpop.f32.mrf.mxu3  ;;  %v4340_v63 = vadd.f32 %v4339_v26, %v4327_v50  ;;  %v4315_v28 = vpop.f32.mrf.mxu0 }
0x20eb   :  { %v4328_v30 = vpop.f32.mrf.mxu1 }
0x20ec   :  { %v4353_v0 = vadd.f32 %v4352_v23, %v4340_v63 }
0x20ee   :  { %v4357_v5 = vsel %vm4356_vm13, %v4353_v0, -inf }
0x20ef   :  { %4358 = vmax.xlane.f32.xlu0 %v4357_v5 }
0x20f1   :  { %v4341_v39 = vpop.f32.mrf.mxu2 }
0x20f2   :  { %v4354_v47 = vpop.f32.mrf.mxu3 }
0x2162   :  { %v4359_v33 = vpop.xlane.xlu0 %4358 }
0x2163   :  { %v4360_v52 = vsub.f32 %v4353_v0, %v4359_v33 }
0x2165   :  { %v4361_v57 = vmul.f32 1.442695, %v4360_v52 }
0x2167   :  { %5944 = vpow2.f32 %v4361_v57 }
0x216d   :  { %v5945_v14 = vpop.eup %5944 }
0x216e   :  { %v4363_v51 = vsel %vm4356_vm13, %v5945_v14, 0.0 }
0x216f   :  { %4364 = vadd.xlane.f32.xlu0 %v4363_v51 }
0x21e2   :  { %v4365_v62 = vpop.xlane.xlu0 %4364 }
0x21e3   :  { %5946 = vrcp.f32 %v4365_v62 }
0x21e9   :  { %v5947_v59 = vpop.eup %5946 }
0x21ea   :  { %v4367_v37 = vmul.f32 %v5947_v59, %v5945_v14 }
0x21ec   :  { %4368 = vst.msk [vmem:[#allocation5] sm:$0x3] %vm4356_vm13, %v4367_v37 }
0x21ed   :  { %4379 = dma.vmem_to_hbm [thread:$0]  %s4375_s27, 32, %s4377_s4, [#allocation6]  }
0x21ee   :  { %6000 = dma.done.wait [#allocation6], 32  }
0x21ef   :  { %6001 = vsyncadd [#allocation6], 4294967264 }
0x21f0   :  { %4384 = vsyncpa [#allocation6], 1 }
0x21f1   :  { %4385 = vsyncmov [#allocation4] }
0x21f4   :  { %s4386_s15 = vpop.sfrf %4385 }
0x21f5   :  { %p5372_p0 = scmp.ne.s32.totalorder %s4386_s15, 0 }
0x21f7   :  { %4390 = shalt.err (%p5372_p0)  }
0x21f8   :  { %4392 = vsyncmov [#allocation4 + $0x1] }
0x21fb   :  { %s4393_s16 = vpop.sfrf %4392 }
0x21fc   :  { %p5373_p1 = scmp.ne.s32.totalorder %s4393_s16, 0 }
0x21fe   :  { %4397 = shalt.err (%p5373_p1)  }

</bundles_post_ra>
